<compile_context>
chip_gen: v7x
topology: tpu7x:2x2x1
jax: 0.10.0
libtpu: 0.0.40
codegen_flags: <defaults>
</compile_context>

<pallas_src>
import functools
import math

import jax
import jax.numpy as jnp
from jax import lax
from jax.experimental import pallas as pl
from jax.experimental.pallas import tpu as pltpu


# ---------------------------------------------------------------------------
# Fused BiLSTM (+ MLP head) kernel builder
# ---------------------------------------------------------------------------
def _build_bilstm_kernel(num_layers, T, Bp, H):
    """Fused kernel: `num_layers` bidirectional LSTM layers + MLP head.

    Weight layout per layer (all transposed vs. PyTorch):
      wih_f (Din_l, 4H), b_f (1, 4H), wih_r (Din_l, 4H), b_r (1, 4H),
      whh_fr (H, 8H) = [Whh_fwd.T | Whh_rev.T]   (gate order i, f, g, o)
    """
    H4 = 4 * H
    n_lstm = 5 * num_layers          # wih_f, b_f, wih_r, b_r, whh_fr per layer
    n_in = 1 + n_lstm + 6            # + x + MLP head (w1, b1, w2, b2, w3, b3)

    def kernel(*args):
        x_ref = args[0]                                     # (T*Bp, Din)
        lstm_refs = args[1:1 + n_lstm]
        lw1, lb1, lw2, lb2, lw3, lb3 = args[1 + n_lstm:n_in]
        out_ref = args[n_in]                                # (T*Bp, Pout)
        gxf, gxr, sAf, sAr, sBf, sBr, hstk, cstk = args[n_in + 1:]

        f32 = jnp.float32
        # Row mask selecting the forward-direction half of the stacked state
        # (rows [0,Bp) = fwd, rows [Bp,2Bp) = rev).  Hoisted: built once.
        fwd_rows = lax.broadcasted_iota(jnp.int32, (2 * Bp, H4), 0) < Bp

        def run_layer(whh_ref, seqf, seqr):
            """One bidirectional layer, both directions fused into one recurrence."""
            hstk[...] = jnp.zeros_like(hstk)
            cstk[...] = jnp.zeros_like(cstk)
            whh = whh_ref[...]                              # (H, 8H) = [Whh_f | Whh_r]

            def step(s, carry):
                rf = s * Bp                                 # fwd rows: time s
                rr = (T - 1 - s) * Bp                       # rev rows: time T-1-s
                # Precomputed input gates for both directions (hoisted matmuls).
                gx = jnp.concatenate(
                    [gxf[pl.ds(rf, Bp), :], gxr[pl.ds(rr, Bp), :]], axis=0)
                # Single MXU push serves both directions' recurrent gates.
                gw = jnp.dot(hstk[...], whh, preferred_element_type=f32)   # (2Bp, 8H)
                gates = gx + jnp.where(fwd_rows, gw[:, :H4], gw[:, H4:])
                # Two full-width EUP passes instead of four quarter-width ones.
                sig = jax.nn.sigmoid(gates)
                tnh = jnp.tanh(gates)
                i = sig[:, 0:H]
                f = sig[:, H:2 * H]
                g = tnh[:, 2 * H:3 * H]
                o = sig[:, 3 * H:4 * H]
                c = f * cstk[...] + i * g
                h = o * jnp.tanh(c)
                cstk[...] = c
                hstk[...] = h
                seqf[pl.ds(rf, Bp), :] = h[:Bp, :]
                seqr[pl.ds(rr, Bp), :] = h[Bp:, :]
                return carry

            # T is static and small: fully unroll the serial recurrence so the
            # scheduler can overlap step t's VPU/EUP work with step t+1's MXU push.
            if T <= 16:
                for s in range(T):
                    step(s, 0)
            else:
                lax.fori_loop(0, T, step, 0)

        bufs = ((sAf, sAr), (sBf, sBr))
        prev = None
        for layer in range(num_layers):
            wf_ref, bf_ref, wr_ref, br_ref, whh_ref = \
                lstm_refs[5 * layer:5 * layer + 5]
            # Input projection hoisted out of the recurrence: one large MXU matmul
            # (+ one bias broadcast) per direction instead of T tiny ones on the
            # serial critical path.
            if layer == 0:
                xv = x_ref[...]
                gf = jnp.dot(xv, wf_ref[...], preferred_element_type=f32) + bf_ref[...]
                gr = jnp.dot(xv, wr_ref[...], preferred_element_type=f32) + br_ref[...]
            else:
                pf = prev[0][...]                           # (T*Bp, H) fwd features
                pr = prev[1][...]                           # (T*Bp, H) rev features
                wf = wf_ref[...]                            # (2H, 4H)
                wr = wr_ref[...]
                gf = (jnp.dot(pf, wf[:H, :], preferred_element_type=f32)
                      + jnp.dot(pr, wf[H:, :], preferred_element_type=f32)
                      + bf_ref[...])
                gr = (jnp.dot(pf, wr[:H, :], preferred_element_type=f32)
                      + jnp.dot(pr, wr[H:, :], preferred_element_type=f32)
                      + br_ref[...])
            gxf[...] = gf
            gxr[...] = gr
            seqf, seqr = bufs[layer % 2]
            run_layer(whh_ref, seqf, seqr)
            prev = (seqf, seqr)

        # MLP head: Linear(2H,64) -> ReLU -> Linear(64,32) -> Linear(32,out).
        # Dropout(0.2) is identity in eval mode.
        # TODO(synk): training-mode stochastic dropout mask not implemented.
        ff = prev[0][...]
        fr = prev[1][...]
        w1 = lw1[...]
        h1 = (jnp.dot(ff, w1[:H, :], preferred_element_type=f32)
              + jnp.dot(fr, w1[H:, :], preferred_element_type=f32) + lb1[...])
        h1 = jnp.maximum(h1, 0.0)
        h2 = jnp.dot(h1, lw2[...], preferred_element_type=f32) + lb2[...]
        out_ref[...] = jnp.dot(h2, lw3[...], preferred_element_type=f32) + lb3[...]

    return kernel


# ---------------------------------------------------------------------------
# Wrapper: pad/pack inputs, single pallas_call, unpad outputs
# ---------------------------------------------------------------------------
def bilstm_forward(x, params):
    """Eval-mode forward: x (B, T, input_size) -> (B, T, output_size)."""
    B, T, Din = x.shape
    H = params["lstm"][0]["fwd"][1].shape[0]
    out_dim = params["w3"].shape[1]
    num_layers = len(params["lstm"])

    Bp = max(8, ((B + 7) // 8) * 8)              # pad batch to a sublane multiple
    Pout = ((out_dim + 127) // 128) * 128        # lane-dense padded output width

    # Time-major, batch-padded, flattened to (T*Bp, Din) rows (layout plumbing in XLA).
    x_tm = jnp.transpose(x, (1, 0, 2))
    x_tm = jnp.pad(x_tm, ((0, 0), (0, Bp - B), (0, 0)))
    x_flat = x_tm.reshape(T * Bp, Din)

    ins = [x_flat]
    for layer in params["lstm"]:
        wih_f, whh_f, b_f = layer["fwd"]
        wih_r, whh_r, b_r = layer["rev"]
        ins += [wih_f, b_f.reshape(1, -1), wih_r, b_r.reshape(1, -1),
                jnp.concatenate([whh_f, whh_r], axis=1)]            # (H, 8H)
    w3p = jnp.pad(params["w3"], ((0, 0), (0, Pout - out_dim)))
    b3p = jnp.pad(params["b3"].reshape(1, -1), ((0, 0), (0, Pout - out_dim)))
    ins += [params["w1"], params["b1"].reshape(1, -1),
            params["w2"], params["b2"].reshape(1, -1), w3p, b3p]

    H4 = 4 * H
    out_flat = pl.pallas_call(
        _build_bilstm_kernel(num_layers, T, Bp, H),
        out_shape=jax.ShapeDtypeStruct((T * Bp, Pout), jnp.float32),
        in_specs=[pl.BlockSpec(memory_space=pltpu.MemorySpace.VMEM)] * len(ins),
        out_specs=pl.BlockSpec(memory_space=pltpu.MemorySpace.VMEM),
        scratch_shapes=[
            pltpu.VMEM((T * Bp, H4), jnp.float32),   # gxf: fwd input gates (all t)
            pltpu.VMEM((T * Bp, H4), jnp.float32),   # gxr: rev input gates (all t)
            pltpu.VMEM((T * Bp, H), jnp.float32),    # layer output ping (fwd)
            pltpu.VMEM((T * Bp, H), jnp.float32),    # layer output ping (rev)
            pltpu.VMEM((T * Bp, H), jnp.float32),    # layer output pong (fwd)
            pltpu.VMEM((T * Bp, H), jnp.float32),    # layer output pong (rev)
            pltpu.VMEM((2 * Bp, H), jnp.float32),    # stacked fwd/rev hidden state
            pltpu.VMEM((2 * Bp, H), jnp.float32),    # stacked fwd/rev cell state
        ],
    )(*ins)

    out = out_flat.reshape(T, Bp, Pout)[:, :B, :out_dim]
    return jnp.transpose(out, (1, 0, 2))


# ---------------------------------------------------------------------------
# Deterministic parameter init (PyTorch-style uniform ranges)
# ---------------------------------------------------------------------------
def init_params(key, input_size, hidden_size, num_layers, output_size):
    H = hidden_size
    k_lstm = 1.0 / math.sqrt(H)
    keys = iter(jax.random.split(key, 8 * num_layers + 6))

    def u(k, shape, bound):
        return jax.random.uniform(k, shape, jnp.float32, -bound, bound)

    lstm_layers = []
    for layer in range(num_layers):
        din = input_size if layer == 0 else 2 * H
        layer_params = {}
        for direction in ("fwd", "rev"):
            wih_t = u(next(keys), (din, 4 * H), k_lstm)    # weight_ih.T
            whh_t = u(next(keys), (H, 4 * H), k_lstm)      # weight_hh.T
            bias = u(next(keys), (4 * H,), k_lstm) + u(next(keys), (4 * H,), k_lstm)
            layer_params[direction] = (wih_t, whh_t, bias)
        lstm_layers.append(layer_params)

    def linear(kw, kb, fan_in, fan_out):
        bound = 1.0 / math.sqrt(fan_in)
        return u(kw, (fan_in, fan_out), bound), u(kb, (fan_out,), bound)

    w1, b1 = linear(next(keys), next(keys), 2 * H, 64)
    w2, b2 = linear(next(keys), next(keys), 64, 32)
    w3, b3 = linear(next(keys), next(keys), 32, output_size)

    return {"lstm": lstm_layers, "w1": w1, "b1": b1,
            "w2": w2, "b2": b2, "w3": w3, "b3": b3}


# ---------------------------------------------------------------------------
# Pure-JAX reference (sanity check)
# ---------------------------------------------------------------------------
def _ref_lstm_dir(x_tm, wih_t, whh_t, bias):
    T, B, _ = x_tm.shape
    H = whh_t.shape[0]

    def step(carry, x_t):
        h, c = carry
        gates = x_t @ wih_t + h @ whh_t + bias
        i = jax.nn.sigmoid(gates[:, :H])
        f = jax.nn.sigmoid(gates[:, H:2 * H])
        g = jnp.tanh(gates[:, 2 * H:3 * H])
        o = jax.nn.sigmoid(gates[:, 3 * H:])
        c = f * c + i * g
        h = o * jnp.tanh(c)
        return (h, c), h

    (_, _), hs = lax.scan(step, (jnp.zeros((B, H)), jnp.zeros((B, H))), x_tm)
    return hs


def ref_forward(x, params):
    B, T, _ = x.shape
    h = jnp.transpose(x, (1, 0, 2))
    for layer in params["lstm"]:
        fwd = _ref_lstm_dir(h, *layer["fwd"])
        rev = _ref_lstm_dir(h[::-1], *layer["rev"])[::-1]
        h = jnp.concatenate([fwd, rev], axis=-1)
    feats = jnp.transpose(h, (1, 0, 2)).reshape(B * T, -1)
    h1 = jnp.maximum(feats @ params["w1"] + params["b1"], 0.0)
    h2 = h1 @ params["w2"] + params["b2"]
    out = h2 @ params["w3"] + params["b3"]
    return out.reshape(B, T, -1)


# ---------------------------------------------------------------------------
if __name__ == "__main__":
    input_size = 4
    hidden_size = 32
    num_layers = 2
    output_size = 1
    batch, seq = 2, 8

    key = jax.random.PRNGKey(0)
    kx, kp = jax.random.split(key)
    x = jax.random.normal(kx, (batch, seq, input_size), dtype=jnp.float32)
    params = init_params(kp, input_size, hidden_size, num_layers, output_size)

    fwd = jax.jit(functools.partial(bilstm_forward, params=params))
    out = jax.block_until_ready(fwd(x))
    assert out.shape == (batch, seq, output_size), out.shape

    ref = jax.block_until_ready(ref_forward(x, params))
    err = float(jnp.max(jnp.abs(out - ref)))
    # NOTE: tolerance kept at 1e-2 rather than ~1e-5: XLA's DEFAULT f32 matmul
    # precision on TPU may round operands to bf16 while the Mosaic MXU path may use
    # full-f32 passes (or vice versa), so ~1e-3-level reference/kernel discrepancies
    # are expected and benign for this all-f32 model.
    assert err < 1e-2, f"max abs diff {err}"

    print("KERNEL_OK")
</pallas_src>

<mosaic_0001>
module attributes {stable_mosaic.version = 11 : i64} {
  func.func @kernel(%arg0: memref<64x4xf32, #tpu.memory_space<vmem>>, %arg1: memref<4x128xf32, #tpu.memory_space<vmem>>, %arg2: memref<1x128xf32, #tpu.memory_space<vmem>>, %arg3: memref<4x128xf32, #tpu.memory_space<vmem>>, %arg4: memref<1x128xf32, #tpu.memory_space<vmem>>, %arg5: memref<32x256xf32, #tpu.memory_space<vmem>>, %arg6: memref<64x128xf32, #tpu.memory_space<vmem>>, %arg7: memref<1x128xf32, #tpu.memory_space<vmem>>, %arg8: memref<64x128xf32, #tpu.memory_space<vmem>>, %arg9: memref<1x128xf32, #tpu.memory_space<vmem>>, %arg10: memref<32x256xf32, #tpu.memory_space<vmem>>, %arg11: memref<64x64xf32, #tpu.memory_space<vmem>>, %arg12: memref<1x64xf32, #tpu.memory_space<vmem>>, %arg13: memref<64x32xf32, #tpu.memory_space<vmem>>, %arg14: memref<1x32xf32, #tpu.memory_space<vmem>>, %arg15: memref<32x128xf32, #tpu.memory_space<vmem>>, %arg16: memref<1x128xf32, #tpu.memory_space<vmem>>, %arg17: memref<64x128xf32, #tpu.memory_space<vmem>>, %arg18: memref<64x128xf32, #tpu.memory_space<vmem>>, %arg19: memref<64x128xf32, #tpu.memory_space<vmem>>, %arg20: memref<64x32xf32, #tpu.memory_space<vmem>>, %arg21: memref<64x32xf32, #tpu.memory_space<vmem>>, %arg22: memref<64x32xf32, #tpu.memory_space<vmem>>, %arg23: memref<64x32xf32, #tpu.memory_space<vmem>>, %arg24: memref<16x32xf32, #tpu.memory_space<vmem>>, %arg25: memref<16x32xf32, #tpu.memory_space<vmem>>) attributes {dimension_semantics = [], scalar_prefetch = 0 : i64, scratch_operands = 8 : i64, tpu.core_type = #tpu.core_type<tc>} {
    %0 = tpu.iota {dimensions = array<i32: 0>} : vector<16x128xi32>
    %c8_i32 = arith.constant 8 : i32
    %1 = vector.broadcast %c8_i32 : i32 to vector<16x128xi32>
    %2 = arith.cmpi slt, %0, %1 : vector<16x128xi32>
    %c0 = arith.constant 0 : index
    %c0_0 = arith.constant 0 : index
    %3 = vector.load %arg0[%c0, %c0_0] : memref<64x4xf32, #tpu.memory_space<vmem>>, vector<64x4xf32>
    %c0_1 = arith.constant 0 : index
    %c0_2 = arith.constant 0 : index
    %4 = vector.load %arg1[%c0_1, %c0_2] : memref<4x128xf32, #tpu.memory_space<vmem>>, vector<4x128xf32>
    %cst = arith.constant dense<0.000000e+00> : vector<64x128xf32>
    %5 = tpu.matmul %3, %4, %cst {dimension_numbers = #tpu.dot_dimension_numbers<[1], [0], [0], [1], [0, 0, 1, 1], [], []>} : vector<64x4xf32>, vector<4x128xf32>, vector<64x128xf32> -> vector<64x128xf32>
    %c0_3 = arith.constant 0 : index
    %c0_4 = arith.constant 0 : index
    %6 = vector.load %arg2[%c0_3, %c0_4] : memref<1x128xf32, #tpu.memory_space<vmem>>, vector<1x128xf32>
    %7 = vector.broadcast %6 : vector<1x128xf32> to vector<64x128xf32>
    %8 = arith.addf %5, %7 : vector<64x128xf32>
    %c0_5 = arith.constant 0 : index
    %c0_6 = arith.constant 0 : index
    %9 = vector.load %arg3[%c0_5, %c0_6] : memref<4x128xf32, #tpu.memory_space<vmem>>, vector<4x128xf32>
    %cst_7 = arith.constant dense<0.000000e+00> : vector<64x128xf32>
    %10 = tpu.matmul %3, %9, %cst_7 {dimension_numbers = #tpu.dot_dimension_numbers<[1], [0], [0], [1], [0, 0, 1, 1], [], []>} : vector<64x4xf32>, vector<4x128xf32>, vector<64x128xf32> -> vector<64x128xf32>
    %c0_8 = arith.constant 0 : index
    %c0_9 = arith.constant 0 : index
    %11 = vector.load %arg4[%c0_8, %c0_9] : memref<1x128xf32, #tpu.memory_space<vmem>>, vector<1x128xf32>
    %12 = vector.broadcast %11 : vector<1x128xf32> to vector<64x128xf32>
    %13 = arith.addf %10, %12 : vector<64x128xf32>
    %c0_10 = arith.constant 0 : index
    %c0_11 = arith.constant 0 : index
    %14 = vector.load %arg18[%c0_10, %c0_11] : memref<64x128xf32, #tpu.memory_space<vmem>>, vector<64x128xf32>
    tpu.vector_store %arg18[%c0_10, %c0_11], %8 {strides = array<i32>} : memref<64x128xf32, #tpu.memory_space<vmem>>, vector<64x128xf32>,
    %c0_12 = arith.constant 0 : index
    %c0_13 = arith.constant 0 : index
    %15 = vector.load %arg19[%c0_12, %c0_13] : memref<64x128xf32, #tpu.memory_space<vmem>>, vector<64x128xf32>
    tpu.vector_store %arg19[%c0_12, %c0_13], %13 {strides = array<i32>} : memref<64x128xf32, #tpu.memory_space<vmem>>, vector<64x128xf32>,
    %cst_14 = arith.constant 0.000000e+00 : f32
    %16 = vector.broadcast %cst_14 : f32 to vector<16x32xf32>
    %c0_15 = arith.constant 0 : index
    %c0_16 = arith.constant 0 : index
    %17 = vector.load %arg24[%c0_15, %c0_16] : memref<16x32xf32, #tpu.memory_space<vmem>>, vector<16x32xf32>
    tpu.vector_store %arg24[%c0_15, %c0_16], %16 {strides = array<i32>} : memref<16x32xf32, #tpu.memory_space<vmem>>, vector<16x32xf32>,
    %cst_17 = arith.constant 0.000000e+00 : f32
    %18 = vector.broadcast %cst_17 : f32 to vector<16x32xf32>
    %c0_18 = arith.constant 0 : index
    %c0_19 = arith.constant 0 : index
    %19 = vector.load %arg25[%c0_18, %c0_19] : memref<16x32xf32, #tpu.memory_space<vmem>>, vector<16x32xf32>
    tpu.vector_store %arg25[%c0_18, %c0_19], %18 {strides = array<i32>} : memref<16x32xf32, #tpu.memory_space<vmem>>, vector<16x32xf32>,
    %c0_20 = arith.constant 0 : index
    %c0_21 = arith.constant 0 : index
    %20 = vector.load %arg5[%c0_20, %c0_21] : memref<32x256xf32, #tpu.memory_space<vmem>>, vector<32x256xf32>
    %c0_22 = arith.constant 0 : index
    %c0_23 = arith.constant 0 : index
    %21 = vector.load %arg18[%c0_22, %c0_23] : memref<64x128xf32, #tpu.memory_space<vmem>>, vector<8x128xf32>
    %c56 = arith.constant 56 : index
    %c0_24 = arith.constant 0 : index
    %22 = vector.load %arg19[%c56, %c0_24] : memref<64x128xf32, #tpu.memory_space<vmem>>, vector<8x128xf32>
    %23 = tpu.concatenate %21, %22 in 0 : vector<8x128xf32>, vector<8x128xf32> -> vector<16x128xf32>
    %c0_25 = arith.constant 0 : index
    %c0_26 = arith.constant 0 : index
    %24 = vector.load %arg24[%c0_25, %c0_26] : memref<16x32xf32, #tpu.memory_space<vmem>>, vector<16x32xf32>
    %cst_27 = arith.constant dense<0.000000e+00> : vector<16x256xf32>
    %25 = tpu.matmul %24, %20, %cst_27 {dimension_numbers = #tpu.dot_dimension_numbers<[1], [0], [0], [1], [0, 0, 1, 1], [], []>} : vector<16x32xf32>, vector<32x256xf32>, vector<16x256xf32> -> vector<16x256xf32>
    %26 = vector.extract_strided_slice %25 {offsets = [0, 0], sizes = [16, 128], strides = [1, 1]} : vector<16x256xf32> to vector<16x128xf32>
    %27 = vector.extract_strided_slice %25 {offsets = [0, 128], sizes = [16, 128], strides = [1, 1]} : vector<16x256xf32> to vector<16x128xf32>
    %28 = arith.select %2, %26, %27 : vector<16x128xi1>, vector<16x128xf32>
    %29 = arith.addf %23, %28 : vector<16x128xf32>
    %30 = arith.negf %29 : vector<16x128xf32>
    %31 = math.exp %30 : vector<16x128xf32>
    %cst_28 = arith.constant 1.000000e+00 : f32
    %32 = vector.broadcast %cst_28 : f32 to vector<16x128xf32>
    %33 = arith.addf %32, %31 : vector<16x128xf32>
    %34 = arith.divf %32, %33 : vector<16x128xf32>
    %35 = math.tanh %29 : vector<16x128xf32>
    %36 = vector.extract_strided_slice %34 {offsets = [0, 0], sizes = [16, 32], strides = [1, 1]} : vector<16x128xf32> to vector<16x32xf32>
    %37 = vector.extract_strided_slice %34 {offsets = [0, 32], sizes = [16, 32], strides = [1, 1]} : vector<16x128xf32> to vector<16x32xf32>
    %38 = vector.extract_strided_slice %35 {offsets = [0, 64], sizes = [16, 32], strides = [1, 1]} : vector<16x128xf32> to vector<16x32xf32>
    %39 = vector.extract_strided_slice %34 {offsets = [0, 96], sizes = [16, 32], strides = [1, 1]} : vector<16x128xf32> to vector<16x32xf32>
    %c0_29 = arith.constant 0 : index
    %c0_30 = arith.constant 0 : index
    %40 = vector.load %arg25[%c0_29, %c0_30] : memref<16x32xf32, #tpu.memory_space<vmem>>, vector<16x32xf32>
    %41 = arith.mulf %37, %40 : vector<16x32xf32>
    %42 = arith.mulf %36, %38 : vector<16x32xf32>
    %43 = arith.addf %41, %42 : vector<16x32xf32>
    %44 = math.tanh %43 : vector<16x32xf32>
    %45 = arith.mulf %39, %44 : vector<16x32xf32>
    %c0_31 = arith.constant 0 : index
    %c0_32 = arith.constant 0 : index
    %46 = vector.load %arg25[%c0_31, %c0_32] : memref<16x32xf32, #tpu.memory_space<vmem>>, vector<16x32xf32>
    tpu.vector_store %arg25[%c0_31, %c0_32], %43 {strides = array<i32>} : memref<16x32xf32, #tpu.memory_space<vmem>>, vector<16x32xf32>,
    %c0_33 = arith.constant 0 : index
    %c0_34 = arith.constant 0 : index
    %47 = vector.load %arg24[%c0_33, %c0_34] : memref<16x32xf32, #tpu.memory_space<vmem>>, vector<16x32xf32>
    tpu.vector_store %arg24[%c0_33, %c0_34], %45 {strides = array<i32>} : memref<16x32xf32, #tpu.memory_space<vmem>>, vector<16x32xf32>,
    %48 = vector.extract_strided_slice %45 {offsets = [0, 0], sizes = [8, 32], strides = [1, 1]} : vector<16x32xf32> to vector<8x32xf32>
    %c0_35 = arith.constant 0 : index
    %c0_36 = arith.constant 0 : index
    %49 = vector.load %arg20[%c0_35, %c0_36] : memref<64x32xf32, #tpu.memory_space<vmem>>, vector<8x32xf32>
    tpu.vector_store %arg20[%c0_35, %c0_36], %48 {strides = array<i32>} : memref<64x32xf32, #tpu.memory_space<vmem>>, vector<8x32xf32>,
    %50 = vector.extract_strided_slice %45 {offsets = [8, 0], sizes = [8, 32], strides = [1, 1]} : vector<16x32xf32> to vector<8x32xf32>
    %c56_37 = arith.constant 56 : index
    %c0_38 = arith.constant 0 : index
    %51 = vector.load %arg21[%c56_37, %c0_38] : memref<64x32xf32, #tpu.memory_space<vmem>>, vector<8x32xf32>
    tpu.vector_store %arg21[%c56_37, %c0_38], %50 {strides = array<i32>} : memref<64x32xf32, #tpu.memory_space<vmem>>, vector<8x32xf32>,
    %c8 = arith.constant 8 : index
    %c0_39 = arith.constant 0 : index
    %52 = vector.load %arg18[%c8, %c0_39] : memref<64x128xf32, #tpu.memory_space<vmem>>, vector<8x128xf32>
    %c48 = arith.constant 48 : index
    %c0_40 = arith.constant 0 : index
    %53 = vector.load %arg19[%c48, %c0_40] : memref<64x128xf32, #tpu.memory_space<vmem>>, vector<8x128xf32>
    %54 = tpu.concatenate %52, %53 in 0 : vector<8x128xf32>, vector<8x128xf32> -> vector<16x128xf32>
    %c0_41 = arith.constant 0 : index
    %c0_42 = arith.constant 0 : index
    %55 = vector.load %arg24[%c0_41, %c0_42] : memref<16x32xf32, #tpu.memory_space<vmem>>, vector<16x32xf32>
    %cst_43 = arith.constant dense<0.000000e+00> : vector<16x256xf32>
    %56 = tpu.matmul %55, %20, %cst_43 {dimension_numbers = #tpu.dot_dimension_numbers<[1], [0], [0], [1], [0, 0, 1, 1], [], []>} : vector<16x32xf32>, vector<32x256xf32>, vector<16x256xf32> -> vector<16x256xf32>
    %57 = vector.extract_strided_slice %56 {offsets = [0, 0], sizes = [16, 128], strides = [1, 1]} : vector<16x256xf32> to vector<16x128xf32>
    %58 = vector.extract_strided_slice %56 {offsets = [0, 128], sizes = [16, 128], strides = [1, 1]} : vector<16x256xf32> to vector<16x128xf32>
    %59 = arith.select %2, %57, %58 : vector<16x128xi1>, vector<16x128xf32>
    %60 = arith.addf %54, %59 : vector<16x128xf32>
    %61 = arith.negf %60 : vector<16x128xf32>
    %62 = math.exp %61 : vector<16x128xf32>
    %cst_44 = arith.constant 1.000000e+00 : f32
    %63 = vector.broadcast %cst_44 : f32 to vector<16x128xf32>
    %64 = arith.addf %63, %62 : vector<16x128xf32>
    %65 = arith.divf %63, %64 : vector<16x128xf32>
    %66 = math.tanh %60 : vector<16x128xf32>
    %67 = vector.extract_strided_slice %65 {offsets = [0, 0], sizes = [16, 32], strides = [1, 1]} : vector<16x128xf32> to vector<16x32xf32>
    %68 = vector.extract_strided_slice %65 {offsets = [0, 32], sizes = [16, 32], strides = [1, 1]} : vector<16x128xf32> to vector<16x32xf32>
    %69 = vector.extract_strided_slice %66 {offsets = [0, 64], sizes = [16, 32], strides = [1, 1]} : vector<16x128xf32> to vector<16x32xf32>
    %70 = vector.extract_strided_slice %65 {offsets = [0, 96], sizes = [16, 32], strides = [1, 1]} : vector<16x128xf32> to vector<16x32xf32>
    %c0_45 = arith.constant 0 : index
    %c0_46 = arith.constant 0 : index
    %71 = vector.load %arg25[%c0_45, %c0_46] : memref<16x32xf32, #tpu.memory_space<vmem>>, vector<16x32xf32>
    %72 = arith.mulf %68, %71 : vector<16x32xf32>
    %73 = arith.mulf %67, %69 : vector<16x32xf32>
    %74 = arith.addf %72, %73 : vector<16x32xf32>
    %75 = math.tanh %74 : vector<16x32xf32>
    %76 = arith.mulf %70, %75 : vector<16x32xf32>
    %c0_47 = arith.constant 0 : index
    %c0_48 = arith.constant 0 : index
    %77 = vector.load %arg25[%c0_47, %c0_48] : memref<16x32xf32, #tpu.memory_space<vmem>>, vector<16x32xf32>
    tpu.vector_store %arg25[%c0_47, %c0_48], %74 {strides = array<i32>} : memref<16x32xf32, #tpu.memory_space<vmem>>, vector<16x32xf32>,
    %c0_49 = arith.constant 0 : index
    %c0_50 = arith.constant 0 : index
    %78 = vector.load %arg24[%c0_49, %c0_50] : memref<16x32xf32, #tpu.memory_space<vmem>>, vector<16x32xf32>
    tpu.vector_store %arg24[%c0_49, %c0_50], %76 {strides = array<i32>} : memref<16x32xf32, #tpu.memory_space<vmem>>, vector<16x32xf32>,
    %79 = vector.extract_strided_slice %76 {offsets = [0, 0], sizes = [8, 32], strides = [1, 1]} : vector<16x32xf32> to vector<8x32xf32>
    %c8_51 = arith.constant 8 : index
    %c0_52 = arith.constant 0 : index
    %80 = vector.load %arg20[%c8_51, %c0_52] : memref<64x32xf32, #tpu.memory_space<vmem>>, vector<8x32xf32>
    tpu.vector_store %arg20[%c8_51, %c0_52], %79 {strides = array<i32>} : memref<64x32xf32, #tpu.memory_space<vmem>>, vector<8x32xf32>,
    %81 = vector.extract_strided_slice %76 {offsets = [8, 0], sizes = [8, 32], strides = [1, 1]} : vector<16x32xf32> to vector<8x32xf32>
    %c48_53 = arith.constant 48 : index
    %c0_54 = arith.constant 0 : index
    %82 = vector.load %arg21[%c48_53, %c0_54] : memref<64x32xf32, #tpu.memory_space<vmem>>, vector<8x32xf32>
    tpu.vector_store %arg21[%c48_53, %c0_54], %81 {strides = array<i32>} : memref<64x32xf32, #tpu.memory_space<vmem>>, vector<8x32xf32>,
    %c16 = arith.constant 16 : index
    %c0_55 = arith.constant 0 : index
    %83 = vector.load %arg18[%c16, %c0_55] : memref<64x128xf32, #tpu.memory_space<vmem>>, vector<8x128xf32>
    %c40 = arith.constant 40 : index
    %c0_56 = arith.constant 0 : index
    %84 = vector.load %arg19[%c40, %c0_56] : memref<64x128xf32, #tpu.memory_space<vmem>>, vector<8x128xf32>
    %85 = tpu.concatenate %83, %84 in 0 : vector<8x128xf32>, vector<8x128xf32> -> vector<16x128xf32>
    %c0_57 = arith.constant 0 : index
    %c0_58 = arith.constant 0 : index
    %86 = vector.load %arg24[%c0_57, %c0_58] : memref<16x32xf32, #tpu.memory_space<vmem>>, vector<16x32xf32>
    %cst_59 = arith.constant dense<0.000000e+00> : vector<16x256xf32>
    %87 = tpu.matmul %86, %20, %cst_59 {dimension_numbers = #tpu.dot_dimension_numbers<[1], [0], [0], [1], [0, 0, 1, 1], [], []>} : vector<16x32xf32>, vector<32x256xf32>, vector<16x256xf32> -> vector<16x256xf32>
    %88 = vector.extract_strided_slice %87 {offsets = [0, 0], sizes = [16, 128], strides = [1, 1]} : vector<16x256xf32> to vector<16x128xf32>
    %89 = vector.extract_strided_slice %87 {offsets = [0, 128], sizes = [16, 128], strides = [1, 1]} : vector<16x256xf32> to vector<16x128xf32>
    %90 = arith.select %2, %88, %89 : vector<16x128xi1>, vector<16x128xf32>
    %91 = arith.addf %85, %90 : vector<16x128xf32>
    %92 = arith.negf %91 : vector<16x128xf32>
    %93 = math.exp %92 : vector<16x128xf32>
    %cst_60 = arith.constant 1.000000e+00 : f32
    %94 = vector.broadcast %cst_60 : f32 to vector<16x128xf32>
    %95 = arith.addf %94, %93 : vector<16x128xf32>
    %96 = arith.divf %94, %95 : vector<16x128xf32>
    %97 = math.tanh %91 : vector<16x128xf32>
    %98 = vector.extract_strided_slice %96 {offsets = [0, 0], sizes = [16, 32], strides = [1, 1]} : vector<16x128xf32> to vector<16x32xf32>
    %99 = vector.extract_strided_slice %96 {offsets = [0, 32], sizes = [16, 32], strides = [1, 1]} : vector<16x128xf32> to vector<16x32xf32>
    %100 = vector.extract_strided_slice %97 {offsets = [0, 64], sizes = [16, 32], strides = [1, 1]} : vector<16x128xf32> to vector<16x32xf32>
    %101 = vector.extract_strided_slice %96 {offsets = [0, 96], sizes = [16, 32], strides = [1, 1]} : vector<16x128xf32> to vector<16x32xf32>
    %c0_61 = arith.constant 0 : index
    %c0_62 = arith.constant 0 : index
    %102 = vector.load %arg25[%c0_61, %c0_62] : memref<16x32xf32, #tpu.memory_space<vmem>>, vector<16x32xf32>
    %103 = arith.mulf %99, %102 : vector<16x32xf32>
    %104 = arith.mulf %98, %100 : vector<16x32xf32>
    %105 = arith.addf %103, %104 : vector<16x32xf32>
    %106 = math.tanh %105 : vector<16x32xf32>
    %107 = arith.mulf %101, %106 : vector<16x32xf32>
    %c0_63 = arith.constant 0 : index
    %c0_64 = arith.constant 0 : index
    %108 = vector.load %arg25[%c0_63, %c0_64] : memref<16x32xf32, #tpu.memory_space<vmem>>, vector<16x32xf32>
    tpu.vector_store %arg25[%c0_63, %c0_64], %105 {strides = array<i32>} : memref<16x32xf32, #tpu.memory_space<vmem>>, vector<16x32xf32>,
    %c0_65 = arith.constant 0 : index
    %c0_66 = arith.constant 0 : index
    %109 = vector.load %arg24[%c0_65, %c0_66] : memref<16x32xf32, #tpu.memory_space<vmem>>, vector<16x32xf32>
    tpu.vector_store %arg24[%c0_65, %c0_66], %107 {strides = array<i32>} : memref<16x32xf32, #tpu.memory_space<vmem>>, vector<16x32xf32>,
    %110 = vector.extract_strided_slice %107 {offsets = [0, 0], sizes = [8, 32], strides = [1, 1]} : vector<16x32xf32> to vector<8x32xf32>
    %c16_67 = arith.constant 16 : index
    %c0_68 = arith.constant 0 : index
    %111 = vector.load %arg20[%c16_67, %c0_68] : memref<64x32xf32, #tpu.memory_space<vmem>>, vector<8x32xf32>
    tpu.vector_store %arg20[%c16_67, %c0_68], %110 {strides = array<i32>} : memref<64x32xf32, #tpu.memory_space<vmem>>, vector<8x32xf32>,
    %112 = vector.extract_strided_slice %107 {offsets = [8, 0], sizes = [8, 32], strides = [1, 1]} : vector<16x32xf32> to vector<8x32xf32>
    %c40_69 = arith.constant 40 : index
    %c0_70 = arith.constant 0 : index
    %113 = vector.load %arg21[%c40_69, %c0_70] : memref<64x32xf32, #tpu.memory_space<vmem>>, vector<8x32xf32>
    tpu.vector_store %arg21[%c40_69, %c0_70], %112 {strides = array<i32>} : memref<64x32xf32, #tpu.memory_space<vmem>>, vector<8x32xf32>,
    %c24 = arith.constant 24 : index
    %c0_71 = arith.constant 0 : index
    %114 = vector.load %arg18[%c24, %c0_71] : memref<64x128xf32, #tpu.memory_space<vmem>>, vector<8x128xf32>
    %c32 = arith.constant 32 : index
    %c0_72 = arith.constant 0 : index
    %115 = vector.load %arg19[%c32, %c0_72] : memref<64x128xf32, #tpu.memory_space<vmem>>, vector<8x128xf32>
    %116 = tpu.concatenate %114, %115 in 0 : vector<8x128xf32>, vector<8x128xf32> -> vector<16x128xf32>
    %c0_73 = arith.constant 0 : index
    %c0_74 = arith.constant 0 : index
    %117 = vector.load %arg24[%c0_73, %c0_74] : memref<16x32xf32, #tpu.memory_space<vmem>>, vector<16x32xf32>
    %cst_75 = arith.constant dense<0.000000e+00> : vector<16x256xf32>
    %118 = tpu.matmul %117, %20, %cst_75 {dimension_numbers = #tpu.dot_dimension_numbers<[1], [0], [0], [1], [0, 0, 1, 1], [], []>} : vector<16x32xf32>, vector<32x256xf32>, vector<16x256xf32> -> vector<16x256xf32>
    %119 = vector.extract_strided_slice %118 {offsets = [0, 0], sizes = [16, 128], strides = [1, 1]} : vector<16x256xf32> to vector<16x128xf32>
    %120 = vector.extract_strided_slice %118 {offsets = [0, 128], sizes = [16, 128], strides = [1, 1]} : vector<16x256xf32> to vector<16x128xf32>
    %121 = arith.select %2, %119, %120 : vector<16x128xi1>, vector<16x128xf32>
    %122 = arith.addf %116, %121 : vector<16x128xf32>
    %123 = arith.negf %122 : vector<16x128xf32>
    %124 = math.exp %123 : vector<16x128xf32>
    %cst_76 = arith.constant 1.000000e+00 : f32
    %125 = vector.broadcast %cst_76 : f32 to vector<16x128xf32>
    %126 = arith.addf %125, %124 : vector<16x128xf32>
    %127 = arith.divf %125, %126 : vector<16x128xf32>
    %128 = math.tanh %122 : vector<16x128xf32>
    %129 = vector.extract_strided_slice %127 {offsets = [0, 0], sizes = [16, 32], strides = [1, 1]} : vector<16x128xf32> to vector<16x32xf32>
    %130 = vector.extract_strided_slice %127 {offsets = [0, 32], sizes = [16, 32], strides = [1, 1]} : vector<16x128xf32> to vector<16x32xf32>
    %131 = vector.extract_strided_slice %128 {offsets = [0, 64], sizes = [16, 32], strides = [1, 1]} : vector<16x128xf32> to vector<16x32xf32>
    %132 = vector.extract_strided_slice %127 {offsets = [0, 96], sizes = [16, 32], strides = [1, 1]} : vector<16x128xf32> to vector<16x32xf32>
    %c0_77 = arith.constant 0 : index
    %c0_78 = arith.constant 0 : index
    %133 = vector.load %arg25[%c0_77, %c0_78] : memref<16x32xf32, #tpu.memory_space<vmem>>, vector<16x32xf32>
    %134 = arith.mulf %130, %133 : vector<16x32xf32>
    %135 = arith.mulf %129, %131 : vector<16x32xf32>
    %136 = arith.addf %134, %135 : vector<16x32xf32>
    %137 = math.tanh %136 : vector<16x32xf32>
    %138 = arith.mulf %132, %137 : vector<16x32xf32>
    %c0_79 = arith.constant 0 : index
    %c0_80 = arith.constant 0 : index
    %139 = vector.load %arg25[%c0_79, %c0_80] : memref<16x32xf32, #tpu.memory_space<vmem>>, vector<16x32xf32>
    tpu.vector_store %arg25[%c0_79, %c0_80], %136 {strides = array<i32>} : memref<16x32xf32, #tpu.memory_space<vmem>>, vector<16x32xf32>,
    %c0_81 = arith.constant 0 : index
    %c0_82 = arith.constant 0 : index
    %140 = vector.load %arg24[%c0_81, %c0_82] : memref<16x32xf32, #tpu.memory_space<vmem>>, vector<16x32xf32>
    tpu.vector_store %arg24[%c0_81, %c0_82], %138 {strides = array<i32>} : memref<16x32xf32, #tpu.memory_space<vmem>>, vector<16x32xf32>,
    %141 = vector.extract_strided_slice %138 {offsets = [0, 0], sizes = [8, 32], strides = [1, 1]} : vector<16x32xf32> to vector<8x32xf32>
    %c24_83 = arith.constant 24 : index
    %c0_84 = arith.constant 0 : index
    %142 = vector.load %arg20[%c24_83, %c0_84] : memref<64x32xf32, #tpu.memory_space<vmem>>, vector<8x32xf32>
    tpu.vector_store %arg20[%c24_83, %c0_84], %141 {strides = array<i32>} : memref<64x32xf32, #tpu.memory_space<vmem>>, vector<8x32xf32>,
    %143 = vector.extract_strided_slice %138 {offsets = [8, 0], sizes = [8, 32], strides = [1, 1]} : vector<16x32xf32> to vector<8x32xf32>
    %c32_85 = arith.constant 32 : index
    %c0_86 = arith.constant 0 : index
    %144 = vector.load %arg21[%c32_85, %c0_86] : memref<64x32xf32, #tpu.memory_space<vmem>>, vector<8x32xf32>
    tpu.vector_store %arg21[%c32_85, %c0_86], %143 {strides = array<i32>} : memref<64x32xf32, #tpu.memory_space<vmem>>, vector<8x32xf32>,
    %c32_87 = arith.constant 32 : index
    %c0_88 = arith.constant 0 : index
    %145 = vector.load %arg18[%c32_87, %c0_88] : memref<64x128xf32, #tpu.memory_space<vmem>>, vector<8x128xf32>
    %c24_89 = arith.constant 24 : index
    %c0_90 = arith.constant 0 : index
    %146 = vector.load %arg19[%c24_89, %c0_90] : memref<64x128xf32, #tpu.memory_space<vmem>>, vector<8x128xf32>
    %147 = tpu.concatenate %145, %146 in 0 : vector<8x128xf32>, vector<8x128xf32> -> vector<16x128xf32>
    %c0_91 = arith.constant 0 : index
    %c0_92 = arith.constant 0 : index
    %148 = vector.load %arg24[%c0_91, %c0_92] : memref<16x32xf32, #tpu.memory_space<vmem>>, vector<16x32xf32>
    %cst_93 = arith.constant dense<0.000000e+00> : vector<16x256xf32>
    %149 = tpu.matmul %148, %20, %cst_93 {dimension_numbers = #tpu.dot_dimension_numbers<[1], [0], [0], [1], [0, 0, 1, 1], [], []>} : vector<16x32xf32>, vector<32x256xf32>, vector<16x256xf32> -> vector<16x256xf32>
    %150 = vector.extract_strided_slice %149 {offsets = [0, 0], sizes = [16, 128], strides = [1, 1]} : vector<16x256xf32> to vector<16x128xf32>
    %151 = vector.extract_strided_slice %149 {offsets = [0, 128], sizes = [16, 128], strides = [1, 1]} : vector<16x256xf32> to vector<16x128xf32>
    %152 = arith.select %2, %150, %151 : vector<16x128xi1>, vector<16x128xf32>
    %153 = arith.addf %147, %152 : vector<16x128xf32>
    %154 = arith.negf %153 : vector<16x128xf32>
    %155 = math.exp %154 : vector<16x128xf32>
    %cst_94 = arith.constant 1.000000e+00 : f32
    %156 = vector.broadcast %cst_94 : f32 to vector<16x128xf32>
    %157 = arith.addf %156, %155 : vector<16x128xf32>
    %158 = arith.divf %156, %157 : vector<16x128xf32>
    %159 = math.tanh %153 : vector<16x128xf32>
    %160 = vector.extract_strided_slice %158 {offsets = [0, 0], sizes = [16, 32], strides = [1, 1]} : vector<16x128xf32> to vector<16x32xf32>
    %161 = vector.extract_strided_slice %158 {offsets = [0, 32], sizes = [16, 32], strides = [1, 1]} : vector<16x128xf32> to vector<16x32xf32>
    %162 = vector.extract_strided_slice %159 {offsets = [0, 64], sizes = [16, 32], strides = [1, 1]} : vector<16x128xf32> to vector<16x32xf32>
    %163 = vector.extract_strided_slice %158 {offsets = [0, 96], sizes = [16, 32], strides = [1, 1]} : vector<16x128xf32> to vector<16x32xf32>
    %c0_95 = arith.constant 0 : index
    %c0_96 = arith.constant 0 : index
    %164 = vector.load %arg25[%c0_95, %c0_96] : memref<16x32xf32, #tpu.memory_space<vmem>>, vector<16x32xf32>
    %165 = arith.mulf %161, %164 : vector<16x32xf32>
    %166 = arith.mulf %160, %162 : vector<16x32xf32>
    %167 = arith.addf %165, %166 : vector<16x32xf32>
    %168 = math.tanh %167 : vector<16x32xf32>
    %169 = arith.mulf %163, %168 : vector<16x32xf32>
    %c0_97 = arith.constant 0 : index
    %c0_98 = arith.constant 0 : index
    %170 = vector.load %arg25[%c0_97, %c0_98] : memref<16x32xf32, #tpu.memory_space<vmem>>, vector<16x32xf32>
    tpu.vector_store %arg25[%c0_97, %c0_98], %167 {strides = array<i32>} : memref<16x32xf32, #tpu.memory_space<vmem>>, vector<16x32xf32>,
    %c0_99 = arith.constant 0 : index
    %c0_100 = arith.constant 0 : index
    %171 = vector.load %arg24[%c0_99, %c0_100] : memref<16x32xf32, #tpu.memory_space<vmem>>, vector<16x32xf32>
    tpu.vector_store %arg24[%c0_99, %c0_100], %169 {strides = array<i32>} : memref<16x32xf32, #tpu.memory_space<vmem>>, vector<16x32xf32>,
    %172 = vector.extract_strided_slice %169 {offsets = [0, 0], sizes = [8, 32], strides = [1, 1]} : vector<16x32xf32> to vector<8x32xf32>
    %c32_101 = arith.constant 32 : index
    %c0_102 = arith.constant 0 : index
    %173 = vector.load %arg20[%c32_101, %c0_102] : memref<64x32xf32, #tpu.memory_space<vmem>>, vector<8x32xf32>
    tpu.vector_store %arg20[%c32_101, %c0_102], %172 {strides = array<i32>} : memref<64x32xf32, #tpu.memory_space<vmem>>, vector<8x32xf32>,
    %174 = vector.extract_strided_slice %169 {offsets = [8, 0], sizes = [8, 32], strides = [1, 1]} : vector<16x32xf32> to vector<8x32xf32>
    %c24_103 = arith.constant 24 : index
    %c0_104 = arith.constant 0 : index
    %175 = vector.load %arg21[%c24_103, %c0_104] : memref<64x32xf32, #tpu.memory_space<vmem>>, vector<8x32xf32>
    tpu.vector_store %arg21[%c24_103, %c0_104], %174 {strides = array<i32>} : memref<64x32xf32, #tpu.memory_space<vmem>>, vector<8x32xf32>,
    %c40_105 = arith.constant 40 : index
    %c0_106 = arith.constant 0 : index
    %176 = vector.load %arg18[%c40_105, %c0_106] : memref<64x128xf32, #tpu.memory_space<vmem>>, vector<8x128xf32>
    %c16_107 = arith.constant 16 : index
    %c0_108 = arith.constant 0 : index
    %177 = vector.load %arg19[%c16_107, %c0_108] : memref<64x128xf32, #tpu.memory_space<vmem>>, vector<8x128xf32>
    %178 = tpu.concatenate %176, %177 in 0 : vector<8x128xf32>, vector<8x128xf32> -> vector<16x128xf32>
    %c0_109 = arith.constant 0 : index
    %c0_110 = arith.constant 0 : index
    %179 = vector.load %arg24[%c0_109, %c0_110] : memref<16x32xf32, #tpu.memory_space<vmem>>, vector<16x32xf32>
    %cst_111 = arith.constant dense<0.000000e+00> : vector<16x256xf32>
    %180 = tpu.matmul %179, %20, %cst_111 {dimension_numbers = #tpu.dot_dimension_numbers<[1], [0], [0], [1], [0, 0, 1, 1], [], []>} : vector<16x32xf32>, vector<32x256xf32>, vector<16x256xf32> -> vector<16x256xf32>
    %181 = vector.extract_strided_slice %180 {offsets = [0, 0], sizes = [16, 128], strides = [1, 1]} : vector<16x256xf32> to vector<16x128xf32>
    %182 = vector.extract_strided_slice %180 {offsets = [0, 128], sizes = [16, 128], strides = [1, 1]} : vector<16x256xf32> to vector<16x128xf32>
    %183 = arith.select %2, %181, %182 : vector<16x128xi1>, vector<16x128xf32>
    %184 = arith.addf %178, %183 : vector<16x128xf32>
    %185 = arith.negf %184 : vector<16x128xf32>
    %186 = math.exp %185 : vector<16x128xf32>
    %cst_112 = arith.constant 1.000000e+00 : f32
    %187 = vector.broadcast %cst_112 : f32 to vector<16x128xf32>
    %188 = arith.addf %187, %186 : vector<16x128xf32>
    %189 = arith.divf %187, %188 : vector<16x128xf32>
    %190 = math.tanh %184 : vector<16x128xf32>
    %191 = vector.extract_strided_slice %189 {offsets = [0, 0], sizes = [16, 32], strides = [1, 1]} : vector<16x128xf32> to vector<16x32xf32>
    %192 = vector.extract_strided_slice %189 {offsets = [0, 32], sizes = [16, 32], strides = [1, 1]} : vector<16x128xf32> to vector<16x32xf32>
    %193 = vector.extract_strided_slice %190 {offsets = [0, 64], sizes = [16, 32], strides = [1, 1]} : vector<16x128xf32> to vector<16x32xf32>
    %194 = vector.extract_strided_slice %189 {offsets = [0, 96], sizes = [16, 32], strides = [1, 1]} : vector<16x128xf32> to vector<16x32xf32>
    %c0_113 = arith.constant 0 : index
    %c0_114 = arith.constant 0 : index
    %195 = vector.load %arg25[%c0_113, %c0_114] : memref<16x32xf32, #tpu.memory_space<vmem>>, vector<16x32xf32>
    %196 = arith.mulf %192, %195 : vector<16x32xf32>
    %197 = arith.mulf %191, %193 : vector<16x32xf32>
    %198 = arith.addf %196, %197 : vector<16x32xf32>
    %199 = math.tanh %198 : vector<16x32xf32>
    %200 = arith.mulf %194, %199 : vector<16x32xf32>
    %c0_115 = arith.constant 0 : index
    %c0_116 = arith.constant 0 : index
    %201 = vector.load %arg25[%c0_115, %c0_116] : memref<16x32xf32, #tpu.memory_space<vmem>>, vector<16x32xf32>
    tpu.vector_store %arg25[%c0_115, %c0_116], %198 {strides = array<i32>} : memref<16x32xf32, #tpu.memory_space<vmem>>, vector<16x32xf32>,
    %c0_117 = arith.constant 0 : index
    %c0_118 = arith.constant 0 : index
    %202 = vector.load %arg24[%c0_117, %c0_118] : memref<16x32xf32, #tpu.memory_space<vmem>>, vector<16x32xf32>
    tpu.vector_store %arg24[%c0_117, %c0_118], %200 {strides = array<i32>} : memref<16x32xf32, #tpu.memory_space<vmem>>, vector<16x32xf32>,
    %203 = vector.extract_strided_slice %200 {offsets = [0, 0], sizes = [8, 32], strides = [1, 1]} : vector<16x32xf32> to vector<8x32xf32>
    %c40_119 = arith.constant 40 : index
    %c0_120 = arith.constant 0 : index
    %204 = vector.load %arg20[%c40_119, %c0_120] : memref<64x32xf32, #tpu.memory_space<vmem>>, vector<8x32xf32>
    tpu.vector_store %arg20[%c40_119, %c0_120], %203 {strides = array<i32>} : memref<64x32xf32, #tpu.memory_space<vmem>>, vector<8x32xf32>,
    %205 = vector.extract_strided_slice %200 {offsets = [8, 0], sizes = [8, 32], strides = [1, 1]} : vector<16x32xf32> to vector<8x32xf32>
    %c16_121 = arith.constant 16 : index
    %c0_122 = arith.constant 0 : index
    %206 = vector.load %arg21[%c16_121, %c0_122] : memref<64x32xf32, #tpu.memory_space<vmem>>, vector<8x32xf32>
    tpu.vector_store %arg21[%c16_121, %c0_122], %205 {strides = array<i32>} : memref<64x32xf32, #tpu.memory_space<vmem>>, vector<8x32xf32>,
    %c48_123 = arith.constant 48 : index
    %c0_124 = arith.constant 0 : index
    %207 = vector.load %arg18[%c48_123, %c0_124] : memref<64x128xf32, #tpu.memory_space<vmem>>, vector<8x128xf32>
    %c8_125 = arith.constant 8 : index
    %c0_126 = arith.constant 0 : index
    %208 = vector.load %arg19[%c8_125, %c0_126] : memref<64x128xf32, #tpu.memory_space<vmem>>, vector<8x128xf32>
    %209 = tpu.concatenate %207, %208 in 0 : vector<8x128xf32>, vector<8x128xf32> -> vector<16x128xf32>
    %c0_127 = arith.constant 0 : index
    %c0_128 = arith.constant 0 : index
    %210 = vector.load %arg24[%c0_127, %c0_128] : memref<16x32xf32, #tpu.memory_space<vmem>>, vector<16x32xf32>
    %cst_129 = arith.constant dense<0.000000e+00> : vector<16x256xf32>
    %211 = tpu.matmul %210, %20, %cst_129 {dimension_numbers = #tpu.dot_dimension_numbers<[1], [0], [0], [1], [0, 0, 1, 1], [], []>} : vector<16x32xf32>, vector<32x256xf32>, vector<16x256xf32> -> vector<16x256xf32>
    %212 = vector.extract_strided_slice %211 {offsets = [0, 0], sizes = [16, 128], strides = [1, 1]} : vector<16x256xf32> to vector<16x128xf32>
    %213 = vector.extract_strided_slice %211 {offsets = [0, 128], sizes = [16, 128], strides = [1, 1]} : vector<16x256xf32> to vector<16x128xf32>
    %214 = arith.select %2, %212, %213 : vector<16x128xi1>, vector<16x128xf32>
    %215 = arith.addf %209, %214 : vector<16x128xf32>
    %216 = arith.negf %215 : vector<16x128xf32>
    %217 = math.exp %216 : vector<16x128xf32>
    %cst_130 = arith.constant 1.000000e+00 : f32
    %218 = vector.broadcast %cst_130 : f32 to vector<16x128xf32>
    %219 = arith.addf %218, %217 : vector<16x128xf32>
    %220 = arith.divf %218, %219 : vector<16x128xf32>
    %221 = math.tanh %215 : vector<16x128xf32>
    %222 = vector.extract_strided_slice %220 {offsets = [0, 0], sizes = [16, 32], strides = [1, 1]} : vector<16x128xf32> to vector<16x32xf32>
    %223 = vector.extract_strided_slice %220 {offsets = [0, 32], sizes = [16, 32], strides = [1, 1]} : vector<16x128xf32> to vector<16x32xf32>
    %224 = vector.extract_strided_slice %221 {offsets = [0, 64], sizes = [16, 32], strides = [1, 1]} : vector<16x128xf32> to vector<16x32xf32>
    %225 = vector.extract_strided_slice %220 {offsets = [0, 96], sizes = [16, 32], strides = [1, 1]} : vector<16x128xf32> to vector<16x32xf32>
    %c0_131 = arith.constant 0 : index
    %c0_132 = arith.constant 0 : index
    %226 = vector.load %arg25[%c0_131, %c0_132] : memref<16x32xf32, #tpu.memory_space<vmem>>, vector<16x32xf32>
    %227 = arith.mulf %223, %226 : vector<16x32xf32>
    %228 = arith.mulf %222, %224 : vector<16x32xf32>
    %229 = arith.addf %227, %228 : vector<16x32xf32>
    %230 = math.tanh %229 : vector<16x32xf32>
    %231 = arith.mulf %225, %230 : vector<16x32xf32>
    %c0_133 = arith.constant 0 : index
    %c0_134 = arith.constant 0 : index
    %232 = vector.load %arg25[%c0_133, %c0_134] : memref<16x32xf32, #tpu.memory_space<vmem>>, vector<16x32xf32>
    tpu.vector_store %arg25[%c0_133, %c0_134], %229 {strides = array<i32>} : memref<16x32xf32, #tpu.memory_space<vmem>>, vector<16x32xf32>,
    %c0_135 = arith.constant 0 : index
    %c0_136 = arith.constant 0 : index
    %233 = vector.load %arg24[%c0_135, %c0_136] : memref<16x32xf32, #tpu.memory_space<vmem>>, vector<16x32xf32>
    tpu.vector_store %arg24[%c0_135, %c0_136], %231 {strides = array<i32>} : memref<16x32xf32, #tpu.memory_space<vmem>>, vector<16x32xf32>,
    %234 = vector.extract_strided_slice %231 {offsets = [0, 0], sizes = [8, 32], strides = [1, 1]} : vector<16x32xf32> to vector<8x32xf32>
    %c48_137 = arith.constant 48 : index
    %c0_138 = arith.constant 0 : index
    %235 = vector.load %arg20[%c48_137, %c0_138] : memref<64x32xf32, #tpu.memory_space<vmem>>, vector<8x32xf32>
    tpu.vector_store %arg20[%c48_137, %c0_138], %234 {strides = array<i32>} : memref<64x32xf32, #tpu.memory_space<vmem>>, vector<8x32xf32>,
    %236 = vector.extract_strided_slice %231 {offsets = [8, 0], sizes = [8, 32], strides = [1, 1]} : vector<16x32xf32> to vector<8x32xf32>
    %c8_139 = arith.constant 8 : index
    %c0_140 = arith.constant 0 : index
    %237 = vector.load %arg21[%c8_139, %c0_140] : memref<64x32xf32, #tpu.memory_space<vmem>>, vector<8x32xf32>
    tpu.vector_store %arg21[%c8_139, %c0_140], %236 {strides = array<i32>} : memref<64x32xf32, #tpu.memory_space<vmem>>, vector<8x32xf32>,
    %c56_141 = arith.constant 56 : index
    %c0_142 = arith.constant 0 : index
    %238 = vector.load %arg18[%c56_141, %c0_142] : memref<64x128xf32, #tpu.memory_space<vmem>>, vector<8x128xf32>
    %c0_143 = arith.constant 0 : index
    %c0_144 = arith.constant 0 : index
    %239 = vector.load %arg19[%c0_143, %c0_144] : memref<64x128xf32, #tpu.memory_space<vmem>>, vector<8x128xf32>
    %240 = tpu.concatenate %238, %239 in 0 : vector<8x128xf32>, vector<8x128xf32> -> vector<16x128xf32>
    %c0_145 = arith.constant 0 : index
    %c0_146 = arith.constant 0 : index
    %241 = vector.load %arg24[%c0_145, %c0_146] : memref<16x32xf32, #tpu.memory_space<vmem>>, vector<16x32xf32>
    %cst_147 = arith.constant dense<0.000000e+00> : vector<16x256xf32>
    %242 = tpu.matmul %241, %20, %cst_147 {dimension_numbers = #tpu.dot_dimension_numbers<[1], [0], [0], [1], [0, 0, 1, 1], [], []>} : vector<16x32xf32>, vector<32x256xf32>, vector<16x256xf32> -> vector<16x256xf32>
    %243 = vector.extract_strided_slice %242 {offsets = [0, 0], sizes = [16, 128], strides = [1, 1]} : vector<16x256xf32> to vector<16x128xf32>
    %244 = vector.extract_strided_slice %242 {offsets = [0, 128], sizes = [16, 128], strides = [1, 1]} : vector<16x256xf32> to vector<16x128xf32>
    %245 = arith.select %2, %243, %244 : vector<16x128xi1>, vector<16x128xf32>
    %246 = arith.addf %240, %245 : vector<16x128xf32>
    %247 = arith.negf %246 : vector<16x128xf32>
    %248 = math.exp %247 : vector<16x128xf32>
    %cst_148 = arith.constant 1.000000e+00 : f32
    %249 = vector.broadcast %cst_148 : f32 to vector<16x128xf32>
    %250 = arith.addf %249, %248 : vector<16x128xf32>
    %251 = arith.divf %249, %250 : vector<16x128xf32>
    %252 = math.tanh %246 : vector<16x128xf32>
    %253 = vector.extract_strided_slice %251 {offsets = [0, 0], sizes = [16, 32], strides = [1, 1]} : vector<16x128xf32> to vector<16x32xf32>
    %254 = vector.extract_strided_slice %251 {offsets = [0, 32], sizes = [16, 32], strides = [1, 1]} : vector<16x128xf32> to vector<16x32xf32>
    %255 = vector.extract_strided_slice %252 {offsets = [0, 64], sizes = [16, 32], strides = [1, 1]} : vector<16x128xf32> to vector<16x32xf32>
    %256 = vector.extract_strided_slice %251 {offsets = [0, 96], sizes = [16, 32], strides = [1, 1]} : vector<16x128xf32> to vector<16x32xf32>
    %c0_149 = arith.constant 0 : index
    %c0_150 = arith.constant 0 : index
    %257 = vector.load %arg25[%c0_149, %c0_150] : memref<16x32xf32, #tpu.memory_space<vmem>>, vector<16x32xf32>
    %258 = arith.mulf %254, %257 : vector<16x32xf32>
    %259 = arith.mulf %253, %255 : vector<16x32xf32>
    %260 = arith.addf %258, %259 : vector<16x32xf32>
    %261 = math.tanh %260 : vector<16x32xf32>
    %262 = arith.mulf %256, %261 : vector<16x32xf32>
    %c0_151 = arith.constant 0 : index
    %c0_152 = arith.constant 0 : index
    %263 = vector.load %arg25[%c0_151, %c0_152] : memref<16x32xf32, #tpu.memory_space<vmem>>, vector<16x32xf32>
    tpu.vector_store %arg25[%c0_151, %c0_152], %260 {strides = array<i32>} : memref<16x32xf32, #tpu.memory_space<vmem>>, vector<16x32xf32>,
    %c0_153 = arith.constant 0 : index
    %c0_154 = arith.constant 0 : index
    %264 = vector.load %arg24[%c0_153, %c0_154] : memref<16x32xf32, #tpu.memory_space<vmem>>, vector<16x32xf32>
    tpu.vector_store %arg24[%c0_153, %c0_154], %262 {strides = array<i32>} : memref<16x32xf32, #tpu.memory_space<vmem>>, vector<16x32xf32>,
    %265 = vector.extract_strided_slice %262 {offsets = [0, 0], sizes = [8, 32], strides = [1, 1]} : vector<16x32xf32> to vector<8x32xf32>
    %c56_155 = arith.constant 56 : index
    %c0_156 = arith.constant 0 : index
    %266 = vector.load %arg20[%c56_155, %c0_156] : memref<64x32xf32, #tpu.memory_space<vmem>>, vector<8x32xf32>
    tpu.vector_store %arg20[%c56_155, %c0_156], %265 {strides = array<i32>} : memref<64x32xf32, #tpu.memory_space<vmem>>, vector<8x32xf32>,
    %267 = vector.extract_strided_slice %262 {offsets = [8, 0], sizes = [8, 32], strides = [1, 1]} : vector<16x32xf32> to vector<8x32xf32>
    %c0_157 = arith.constant 0 : index
    %c0_158 = arith.constant 0 : index
    %268 = vector.load %arg21[%c0_157, %c0_158] : memref<64x32xf32, #tpu.memory_space<vmem>>, vector<8x32xf32>
    tpu.vector_store %arg21[%c0_157, %c0_158], %267 {strides = array<i32>} : memref<64x32xf32, #tpu.memory_space<vmem>>, vector<8x32xf32>,
    %c0_159 = arith.constant 0 : index
    %c0_160 = arith.constant 0 : index
    %269 = vector.load %arg20[%c0_159, %c0_160] : memref<64x32xf32, #tpu.memory_space<vmem>>, vector<64x32xf32>
    %c0_161 = arith.constant 0 : index
    %c0_162 = arith.constant 0 : index
    %270 = vector.load %arg21[%c0_161, %c0_162] : memref<64x32xf32, #tpu.memory_space<vmem>>, vector<64x32xf32>
    %c0_163 = arith.constant 0 : index
    %c0_164 = arith.constant 0 : index
    %271 = vector.load %arg6[%c0_163, %c0_164] : memref<64x128xf32, #tpu.memory_space<vmem>>, vector<64x128xf32>
    %c0_165 = arith.constant 0 : index
    %c0_166 = arith.constant 0 : index
    %272 = vector.load %arg8[%c0_165, %c0_166] : memref<64x128xf32, #tpu.memory_space<vmem>>, vector<64x128xf32>
    %273 = vector.extract_strided_slice %271 {offsets = [0, 0], sizes = [32, 128], strides = [1, 1]} : vector<64x128xf32> to vector<32x128xf32>
    %cst_167 = arith.constant dense<0.000000e+00> : vector<64x128xf32>
    %274 = tpu.matmul %269, %273, %cst_167 {dimension_numbers = #tpu.dot_dimension_numbers<[1], [0], [0], [1], [0, 0, 1, 1], [], []>} : vector<64x32xf32>, vector<32x128xf32>, vector<64x128xf32> -> vector<64x128xf32>
    %275 = vector.extract_strided_slice %271 {offsets = [32, 0], sizes = [32, 128], strides = [1, 1]} : vector<64x128xf32> to vector<32x128xf32>
    %cst_168 = arith.constant dense<0.000000e+00> : vector<64x128xf32>
    %276 = tpu.matmul %270, %275, %cst_168 {dimension_numbers = #tpu.dot_dimension_numbers<[1], [0], [0], [1], [0, 0, 1, 1], [], []>} : vector<64x32xf32>, vector<32x128xf32>, vector<64x128xf32> -> vector<64x128xf32>
    %277 = arith.addf %274, %276 : vector<64x128xf32>
    %c0_169 = arith.constant 0 : index
    %c0_170 = arith.constant 0 : index
    %278 = vector.load %arg7[%c0_169, %c0_170] : memref<1x128xf32, #tpu.memory_space<vmem>>, vector<1x128xf32>
    %279 = vector.broadcast %278 : vector<1x128xf32> to vector<64x128xf32>
    %280 = arith.addf %277, %279 : vector<64x128xf32>
    %281 = vector.extract_strided_slice %272 {offsets = [0, 0], sizes = [32, 128], strides = [1, 1]} : vector<64x128xf32> to vector<32x128xf32>
    %cst_171 = arith.constant dense<0.000000e+00> : vector<64x128xf32>
    %282 = tpu.matmul %269, %281, %cst_171 {dimension_numbers = #tpu.dot_dimension_numbers<[1], [0], [0], [1], [0, 0, 1, 1], [], []>} : vector<64x32xf32>, vector<32x128xf32>, vector<64x128xf32> -> vector<64x128xf32>
    %283 = vector.extract_strided_slice %272 {offsets = [32, 0], sizes = [32, 128], strides = [1, 1]} : vector<64x128xf32> to vector<32x128xf32>
    %cst_172 = arith.constant dense<0.000000e+00> : vector<64x128xf32>
    %284 = tpu.matmul %270, %283, %cst_172 {dimension_numbers = #tpu.dot_dimension_numbers<[1], [0], [0], [1], [0, 0, 1, 1], [], []>} : vector<64x32xf32>, vector<32x128xf32>, vector<64x128xf32> -> vector<64x128xf32>
    %285 = arith.addf %282, %284 : vector<64x128xf32>
    %c0_173 = arith.constant 0 : index
    %c0_174 = arith.constant 0 : index
    %286 = vector.load %arg9[%c0_173, %c0_174] : memref<1x128xf32, #tpu.memory_space<vmem>>, vector<1x128xf32>
    %287 = vector.broadcast %286 : vector<1x128xf32> to vector<64x128xf32>
    %288 = arith.addf %285, %287 : vector<64x128xf32>
    %c0_175 = arith.constant 0 : index
    %c0_176 = arith.constant 0 : index
    %289 = vector.load %arg18[%c0_175, %c0_176] : memref<64x128xf32, #tpu.memory_space<vmem>>, vector<64x128xf32>
    tpu.vector_store %arg18[%c0_175, %c0_176], %280 {strides = array<i32>} : memref<64x128xf32, #tpu.memory_space<vmem>>, vector<64x128xf32>,
    %c0_177 = arith.constant 0 : index
    %c0_178 = arith.constant 0 : index
    %290 = vector.load %arg19[%c0_177, %c0_178] : memref<64x128xf32, #tpu.memory_space<vmem>>, vector<64x128xf32>
    tpu.vector_store %arg19[%c0_177, %c0_178], %288 {strides = array<i32>} : memref<64x128xf32, #tpu.memory_space<vmem>>, vector<64x128xf32>,
    %cst_179 = arith.constant 0.000000e+00 : f32
    %291 = vector.broadcast %cst_179 : f32 to vector<16x32xf32>
    %c0_180 = arith.constant 0 : index
    %c0_181 = arith.constant 0 : index
    %292 = vector.load %arg24[%c0_180, %c0_181] : memref<16x32xf32, #tpu.memory_space<vmem>>, vector<16x32xf32>
    tpu.vector_store %arg24[%c0_180, %c0_181], %291 {strides = array<i32>} : memref<16x32xf32, #tpu.memory_space<vmem>>, vector<16x32xf32>,
    %cst_182 = arith.constant 0.000000e+00 : f32
    %293 = vector.broadcast %cst_182 : f32 to vector<16x32xf32>
    %c0_183 = arith.constant 0 : index
    %c0_184 = arith.constant 0 : index
    %294 = vector.load %arg25[%c0_183, %c0_184] : memref<16x32xf32, #tpu.memory_space<vmem>>, vector<16x32xf32>
    tpu.vector_store %arg25[%c0_183, %c0_184], %293 {strides = array<i32>} : memref<16x32xf32, #tpu.memory_space<vmem>>, vector<16x32xf32>,
    %c0_185 = arith.constant 0 : index
    %c0_186 = arith.constant 0 : index
    %295 = vector.load %arg10[%c0_185, %c0_186] : memref<32x256xf32, #tpu.memory_space<vmem>>, vector<32x256xf32>
    %c0_187 = arith.constant 0 : index
    %c0_188 = arith.constant 0 : index
    %296 = vector.load %arg18[%c0_187, %c0_188] : memref<64x128xf32, #tpu.memory_space<vmem>>, vector<8x128xf32>
    %c56_189 = arith.constant 56 : index
    %c0_190 = arith.constant 0 : index
    %297 = vector.load %arg19[%c56_189, %c0_190] : memref<64x128xf32, #tpu.memory_space<vmem>>, vector<8x128xf32>
    %298 = tpu.concatenate %296, %297 in 0 : vector<8x128xf32>, vector<8x128xf32> -> vector<16x128xf32>
    %c0_191 = arith.constant 0 : index
    %c0_192 = arith.constant 0 : index
    %299 = vector.load %arg24[%c0_191, %c0_192] : memref<16x32xf32, #tpu.memory_space<vmem>>, vector<16x32xf32>
    %cst_193 = arith.constant dense<0.000000e+00> : vector<16x256xf32>
    %300 = tpu.matmul %299, %295, %cst_193 {dimension_numbers = #tpu.dot_dimension_numbers<[1], [0], [0], [1], [0, 0, 1, 1], [], []>} : vector<16x32xf32>, vector<32x256xf32>, vector<16x256xf32> -> vector<16x256xf32>
    %301 = vector.extract_strided_slice %300 {offsets = [0, 0], sizes = [16, 128], strides = [1, 1]} : vector<16x256xf32> to vector<16x128xf32>
    %302 = vector.extract_strided_slice %300 {offsets = [0, 128], sizes = [16, 128], strides = [1, 1]} : vector<16x256xf32> to vector<16x128xf32>
    %303 = arith.select %2, %301, %302 : vector<16x128xi1>, vector<16x128xf32>
    %304 = arith.addf %298, %303 : vector<16x128xf32>
    %305 = arith.negf %304 : vector<16x128xf32>
    %306 = math.exp %305 : vector<16x128xf32>
    %cst_194 = arith.constant 1.000000e+00 : f32
    %307 = vector.broadcast %cst_194 : f32 to vector<16x128xf32>
    %308 = arith.addf %307, %306 : vector<16x128xf32>
    %309 = arith.divf %307, %308 : vector<16x128xf32>
    %310 = math.tanh %304 : vector<16x128xf32>
    %311 = vector.extract_strided_slice %309 {offsets = [0, 0], sizes = [16, 32], strides = [1, 1]} : vector<16x128xf32> to vector<16x32xf32>
    %312 = vector.extract_strided_slice %309 {offsets = [0, 32], sizes = [16, 32], strides = [1, 1]} : vector<16x128xf32> to vector<16x32xf32>
    %313 = vector.extract_strided_slice %310 {offsets = [0, 64], sizes = [16, 32], strides = [1, 1]} : vector<16x128xf32> to vector<16x32xf32>
    %314 = vector.extract_strided_slice %309 {offsets = [0, 96], sizes = [16, 32], strides = [1, 1]} : vector<16x128xf32> to vector<16x32xf32>
    %c0_195 = arith.constant 0 : index
    %c0_196 = arith.constant 0 : index
    %315 = vector.load %arg25[%c0_195, %c0_196] : memref<16x32xf32, #tpu.memory_space<vmem>>, vector<16x32xf32>
    %316 = arith.mulf %312, %315 : vector<16x32xf32>
    %317 = arith.mulf %311, %313 : vector<16x32xf32>
    %318 = arith.addf %316, %317 : vector<16x32xf32>
    %319 = math.tanh %318 : vector<16x32xf32>
    %320 = arith.mulf %314, %319 : vector<16x32xf32>
    %c0_197 = arith.constant 0 : index
    %c0_198 = arith.constant 0 : index
    %321 = vector.load %arg25[%c0_197, %c0_198] : memref<16x32xf32, #tpu.memory_space<vmem>>, vector<16x32xf32>
    tpu.vector_store %arg25[%c0_197, %c0_198], %318 {strides = array<i32>} : memref<16x32xf32, #tpu.memory_space<vmem>>, vector<16x32xf32>,
    %c0_199 = arith.constant 0 : index
    %c0_200 = arith.constant 0 : index
    %322 = vector.load %arg24[%c0_199, %c0_200] : memref<16x32xf32, #tpu.memory_space<vmem>>, vector<16x32xf32>
    tpu.vector_store %arg24[%c0_199, %c0_200], %320 {strides = array<i32>} : memref<16x32xf32, #tpu.memory_space<vmem>>, vector<16x32xf32>,
    %323 = vector.extract_strided_slice %320 {offsets = [0, 0], sizes = [8, 32], strides = [1, 1]} : vector<16x32xf32> to vector<8x32xf32>
    %c0_201 = arith.constant 0 : index
    %c0_202 = arith.constant 0 : index
    %324 = vector.load %arg22[%c0_201, %c0_202] : memref<64x32xf32, #tpu.memory_space<vmem>>, vector<8x32xf32>
    tpu.vector_store %arg22[%c0_201, %c0_202], %323 {strides = array<i32>} : memref<64x32xf32, #tpu.memory_space<vmem>>, vector<8x32xf32>,
    %325 = vector.extract_strided_slice %320 {offsets = [8, 0], sizes = [8, 32], strides = [1, 1]} : vector<16x32xf32> to vector<8x32xf32>
    %c56_203 = arith.constant 56 : index
    %c0_204 = arith.constant 0 : index
    %326 = vector.load %arg23[%c56_203, %c0_204] : memref<64x32xf32, #tpu.memory_space<vmem>>, vector<8x32xf32>
    tpu.vector_store %arg23[%c56_203, %c0_204], %325 {strides = array<i32>} : memref<64x32xf32, #tpu.memory_space<vmem>>, vector<8x32xf32>,
    %c8_205 = arith.constant 8 : index
    %c0_206 = arith.constant 0 : index
    %327 = vector.load %arg18[%c8_205, %c0_206] : memref<64x128xf32, #tpu.memory_space<vmem>>, vector<8x128xf32>
    %c48_207 = arith.constant 48 : index
    %c0_208 = arith.constant 0 : index
    %328 = vector.load %arg19[%c48_207, %c0_208] : memref<64x128xf32, #tpu.memory_space<vmem>>, vector<8x128xf32>
    %329 = tpu.concatenate %327, %328 in 0 : vector<8x128xf32>, vector<8x128xf32> -> vector<16x128xf32>
    %c0_209 = arith.constant 0 : index
    %c0_210 = arith.constant 0 : index
    %330 = vector.load %arg24[%c0_209, %c0_210] : memref<16x32xf32, #tpu.memory_space<vmem>>, vector<16x32xf32>
    %cst_211 = arith.constant dense<0.000000e+00> : vector<16x256xf32>
    %331 = tpu.matmul %330, %295, %cst_211 {dimension_numbers = #tpu.dot_dimension_numbers<[1], [0], [0], [1], [0, 0, 1, 1], [], []>} : vector<16x32xf32>, vector<32x256xf32>, vector<16x256xf32> -> vector<16x256xf32>
    %332 = vector.extract_strided_slice %331 {offsets = [0, 0], sizes = [16, 128], strides = [1, 1]} : vector<16x256xf32> to vector<16x128xf32>
    %333 = vector.extract_strided_slice %331 {offsets = [0, 128], sizes = [16, 128], strides = [1, 1]} : vector<16x256xf32> to vector<16x128xf32>
    %334 = arith.select %2, %332, %333 : vector<16x128xi1>, vector<16x128xf32>
    %335 = arith.addf %329, %334 : vector<16x128xf32>
    %336 = arith.negf %335 : vector<16x128xf32>
    %337 = math.exp %336 : vector<16x128xf32>
    %cst_212 = arith.constant 1.000000e+00 : f32
    %338 = vector.broadcast %cst_212 : f32 to vector<16x128xf32>
    %339 = arith.addf %338, %337 : vector<16x128xf32>
    %340 = arith.divf %338, %339 : vector<16x128xf32>
    %341 = math.tanh %335 : vector<16x128xf32>
    %342 = vector.extract_strided_slice %340 {offsets = [0, 0], sizes = [16, 32], strides = [1, 1]} : vector<16x128xf32> to vector<16x32xf32>
    %343 = vector.extract_strided_slice %340 {offsets = [0, 32], sizes = [16, 32], strides = [1, 1]} : vector<16x128xf32> to vector<16x32xf32>
    %344 = vector.extract_strided_slice %341 {offsets = [0, 64], sizes = [16, 32], strides = [1, 1]} : vector<16x128xf32> to vector<16x32xf32>
    %345 = vector.extract_strided_slice %340 {offsets = [0, 96], sizes = [16, 32], strides = [1, 1]} : vector<16x128xf32> to vector<16x32xf32>
    %c0_213 = arith.constant 0 : index
    %c0_214 = arith.constant 0 : index
    %346 = vector.load %arg25[%c0_213, %c0_214] : memref<16x32xf32, #tpu.memory_space<vmem>>, vector<16x32xf32>
    %347 = arith.mulf %343, %346 : vector<16x32xf32>
    %348 = arith.mulf %342, %344 : vector<16x32xf32>
    %349 = arith.addf %347, %348 : vector<16x32xf32>
    %350 = math.tanh %349 : vector<16x32xf32>
    %351 = arith.mulf %345, %350 : vector<16x32xf32>
    %c0_215 = arith.constant 0 : index
    %c0_216 = arith.constant 0 : index
    %352 = vector.load %arg25[%c0_215, %c0_216] : memref<16x32xf32, #tpu.memory_space<vmem>>, vector<16x32xf32>
    tpu.vector_store %arg25[%c0_215, %c0_216], %349 {strides = array<i32>} : memref<16x32xf32, #tpu.memory_space<vmem>>, vector<16x32xf32>,
    %c0_217 = arith.constant 0 : index
    %c0_218 = arith.constant 0 : index
    %353 = vector.load %arg24[%c0_217, %c0_218] : memref<16x32xf32, #tpu.memory_space<vmem>>, vector<16x32xf32>
    tpu.vector_store %arg24[%c0_217, %c0_218], %351 {strides = array<i32>} : memref<16x32xf32, #tpu.memory_space<vmem>>, vector<16x32xf32>,
    %354 = vector.extract_strided_slice %351 {offsets = [0, 0], sizes = [8, 32], strides = [1, 1]} : vector<16x32xf32> to vector<8x32xf32>
    %c8_219 = arith.constant 8 : index
    %c0_220 = arith.constant 0 : index
    %355 = vector.load %arg22[%c8_219, %c0_220] : memref<64x32xf32, #tpu.memory_space<vmem>>, vector<8x32xf32>
    tpu.vector_store %arg22[%c8_219, %c0_220], %354 {strides = array<i32>} : memref<64x32xf32, #tpu.memory_space<vmem>>, vector<8x32xf32>,
    %356 = vector.extract_strided_slice %351 {offsets = [8, 0], sizes = [8, 32], strides = [1, 1]} : vector<16x32xf32> to vector<8x32xf32>
    %c48_221 = arith.constant 48 : index
    %c0_222 = arith.constant 0 : index
    %357 = vector.load %arg23[%c48_221, %c0_222] : memref<64x32xf32, #tpu.memory_space<vmem>>, vector<8x32xf32>
    tpu.vector_store %arg23[%c48_221, %c0_222], %356 {strides = array<i32>} : memref<64x32xf32, #tpu.memory_space<vmem>>, vector<8x32xf32>,
    %c16_223 = arith.constant 16 : index
    %c0_224 = arith.constant 0 : index
    %358 = vector.load %arg18[%c16_223, %c0_224] : memref<64x128xf32, #tpu.memory_space<vmem>>, vector<8x128xf32>
    %c40_225 = arith.constant 40 : index
    %c0_226 = arith.constant 0 : index
    %359 = vector.load %arg19[%c40_225, %c0_226] : memref<64x128xf32, #tpu.memory_space<vmem>>, vector<8x128xf32>
    %360 = tpu.concatenate %358, %359 in 0 : vector<8x128xf32>, vector<8x128xf32> -> vector<16x128xf32>
    %c0_227 = arith.constant 0 : index
    %c0_228 = arith.constant 0 : index
    %361 = vector.load %arg24[%c0_227, %c0_228] : memref<16x32xf32, #tpu.memory_space<vmem>>, vector<16x32xf32>
    %cst_229 = arith.constant dense<0.000000e+00> : vector<16x256xf32>
    %362 = tpu.matmul %361, %295, %cst_229 {dimension_numbers = #tpu.dot_dimension_numbers<[1], [0], [0], [1], [0, 0, 1, 1], [], []>} : vector<16x32xf32>, vector<32x256xf32>, vector<16x256xf32> -> vector<16x256xf32>
    %363 = vector.extract_strided_slice %362 {offsets = [0, 0], sizes = [16, 128], strides = [1, 1]} : vector<16x256xf32> to vector<16x128xf32>
    %364 = vector.extract_strided_slice %362 {offsets = [0, 128], sizes = [16, 128], strides = [1, 1]} : vector<16x256xf32> to vector<16x128xf32>
    %365 = arith.select %2, %363, %364 : vector<16x128xi1>, vector<16x128xf32>
    %366 = arith.addf %360, %365 : vector<16x128xf32>
    %367 = arith.negf %366 : vector<16x128xf32>
    %368 = math.exp %367 : vector<16x128xf32>
    %cst_230 = arith.constant 1.000000e+00 : f32
    %369 = vector.broadcast %cst_230 : f32 to vector<16x128xf32>
    %370 = arith.addf %369, %368 : vector<16x128xf32>
    %371 = arith.divf %369, %370 : vector<16x128xf32>
    %372 = math.tanh %366 : vector<16x128xf32>
    %373 = vector.extract_strided_slice %371 {offsets = [0, 0], sizes = [16, 32], strides = [1, 1]} : vector<16x128xf32> to vector<16x32xf32>
    %374 = vector.extract_strided_slice %371 {offsets = [0, 32], sizes = [16, 32], strides = [1, 1]} : vector<16x128xf32> to vector<16x32xf32>
    %375 = vector.extract_strided_slice %372 {offsets = [0, 64], sizes = [16, 32], strides = [1, 1]} : vector<16x128xf32> to vector<16x32xf32>
    %376 = vector.extract_strided_slice %371 {offsets = [0, 96], sizes = [16, 32], strides = [1, 1]} : vector<16x128xf32> to vector<16x32xf32>
    %c0_231 = arith.constant 0 : index
    %c0_232 = arith.constant 0 : index
    %377 = vector.load %arg25[%c0_231, %c0_232] : memref<16x32xf32, #tpu.memory_space<vmem>>, vector<16x32xf32>
    %378 = arith.mulf %374, %377 : vector<16x32xf32>
    %379 = arith.mulf %373, %375 : vector<16x32xf32>
    %380 = arith.addf %378, %379 : vector<16x32xf32>
    %381 = math.tanh %380 : vector<16x32xf32>
    %382 = arith.mulf %376, %381 : vector<16x32xf32>
    %c0_233 = arith.constant 0 : index
    %c0_234 = arith.constant 0 : index
    %383 = vector.load %arg25[%c0_233, %c0_234] : memref<16x32xf32, #tpu.memory_space<vmem>>, vector<16x32xf32>
    tpu.vector_store %arg25[%c0_233, %c0_234], %380 {strides = array<i32>} : memref<16x32xf32, #tpu.memory_space<vmem>>, vector<16x32xf32>,
    %c0_235 = arith.constant 0 : index
    %c0_236 = arith.constant 0 : index
    %384 = vector.load %arg24[%c0_235, %c0_236] : memref<16x32xf32, #tpu.memory_space<vmem>>, vector<16x32xf32>
    tpu.vector_store %arg24[%c0_235, %c0_236], %382 {strides = array<i32>} : memref<16x32xf32, #tpu.memory_space<vmem>>, vector<16x32xf32>,
    %385 = vector.extract_strided_slice %382 {offsets = [0, 0], sizes = [8, 32], strides = [1, 1]} : vector<16x32xf32> to vector<8x32xf32>
    %c16_237 = arith.constant 16 : index
    %c0_238 = arith.constant 0 : index
    %386 = vector.load %arg22[%c16_237, %c0_238] : memref<64x32xf32, #tpu.memory_space<vmem>>, vector<8x32xf32>
    tpu.vector_store %arg22[%c16_237, %c0_238], %385 {strides = array<i32>} : memref<64x32xf32, #tpu.memory_space<vmem>>, vector<8x32xf32>,
    %387 = vector.extract_strided_slice %382 {offsets = [8, 0], sizes = [8, 32], strides = [1, 1]} : vector<16x32xf32> to vector<8x32xf32>
    %c40_239 = arith.constant 40 : index
    %c0_240 = arith.constant 0 : index
    %388 = vector.load %arg23[%c40_239, %c0_240] : memref<64x32xf32, #tpu.memory_space<vmem>>, vector<8x32xf32>
    tpu.vector_store %arg23[%c40_239, %c0_240], %387 {strides = array<i32>} : memref<64x32xf32, #tpu.memory_space<vmem>>, vector<8x32xf32>,
    %c24_241 = arith.constant 24 : index
    %c0_242 = arith.constant 0 : index
    %389 = vector.load %arg18[%c24_241, %c0_242] : memref<64x128xf32, #tpu.memory_space<vmem>>, vector<8x128xf32>
    %c32_243 = arith.constant 32 : index
    %c0_244 = arith.constant 0 : index
    %390 = vector.load %arg19[%c32_243, %c0_244] : memref<64x128xf32, #tpu.memory_space<vmem>>, vector<8x128xf32>
    %391 = tpu.concatenate %389, %390 in 0 : vector<8x128xf32>, vector<8x128xf32> -> vector<16x128xf32>
    %c0_245 = arith.constant 0 : index
    %c0_246 = arith.constant 0 : index
    %392 = vector.load %arg24[%c0_245, %c0_246] : memref<16x32xf32, #tpu.memory_space<vmem>>, vector<16x32xf32>
    %cst_247 = arith.constant dense<0.000000e+00> : vector<16x256xf32>
    %393 = tpu.matmul %392, %295, %cst_247 {dimension_numbers = #tpu.dot_dimension_numbers<[1], [0], [0], [1], [0, 0, 1, 1], [], []>} : vector<16x32xf32>, vector<32x256xf32>, vector<16x256xf32> -> vector<16x256xf32>
    %394 = vector.extract_strided_slice %393 {offsets = [0, 0], sizes = [16, 128], strides = [1, 1]} : vector<16x256xf32> to vector<16x128xf32>
    %395 = vector.extract_strided_slice %393 {offsets = [0, 128], sizes = [16, 128], strides = [1, 1]} : vector<16x256xf32> to vector<16x128xf32>
    %396 = arith.select %2, %394, %395 : vector<16x128xi1>, vector<16x128xf32>
    %397 = arith.addf %391, %396 : vector<16x128xf32>
    %398 = arith.negf %397 : vector<16x128xf32>
    %399 = math.exp %398 : vector<16x128xf32>
    %cst_248 = arith.constant 1.000000e+00 : f32
    %400 = vector.broadcast %cst_248 : f32 to vector<16x128xf32>
    %401 = arith.addf %400, %399 : vector<16x128xf32>
    %402 = arith.divf %400, %401 : vector<16x128xf32>
    %403 = math.tanh %397 : vector<16x128xf32>
    %404 = vector.extract_strided_slice %402 {offsets = [0, 0], sizes = [16, 32], strides = [1, 1]} : vector<16x128xf32> to vector<16x32xf32>
    %405 = vector.extract_strided_slice %402 {offsets = [0, 32], sizes = [16, 32], strides = [1, 1]} : vector<16x128xf32> to vector<16x32xf32>
    %406 = vector.extract_strided_slice %403 {offsets = [0, 64], sizes = [16, 32], strides = [1, 1]} : vector<16x128xf32> to vector<16x32xf32>
    %407 = vector.extract_strided_slice %402 {offsets = [0, 96], sizes = [16, 32], strides = [1, 1]} : vector<16x128xf32> to vector<16x32xf32>
    %c0_249 = arith.constant 0 : index
    %c0_250 = arith.constant 0 : index
    %408 = vector.load %arg25[%c0_249, %c0_250] : memref<16x32xf32, #tpu.memory_space<vmem>>, vector<16x32xf32>
    %409 = arith.mulf %405, %408 : vector<16x32xf32>
    %410 = arith.mulf %404, %406 : vector<16x32xf32>
    %411 = arith.addf %409, %410 : vector<16x32xf32>
    %412 = math.tanh %411 : vector<16x32xf32>
    %413 = arith.mulf %407, %412 : vector<16x32xf32>
    %c0_251 = arith.constant 0 : index
    %c0_252 = arith.constant 0 : index
    %414 = vector.load %arg25[%c0_251, %c0_252] : memref<16x32xf32, #tpu.memory_space<vmem>>, vector<16x32xf32>
    tpu.vector_store %arg25[%c0_251, %c0_252], %411 {strides = array<i32>} : memref<16x32xf32, #tpu.memory_space<vmem>>, vector<16x32xf32>,
    %c0_253 = arith.constant 0 : index
    %c0_254 = arith.constant 0 : index
    %415 = vector.load %arg24[%c0_253, %c0_254] : memref<16x32xf32, #tpu.memory_space<vmem>>, vector<16x32xf32>
    tpu.vector_store %arg24[%c0_253, %c0_254], %413 {strides = array<i32>} : memref<16x32xf32, #tpu.memory_space<vmem>>, vector<16x32xf32>,
    %416 = vector.extract_strided_slice %413 {offsets = [0, 0], sizes = [8, 32], strides = [1, 1]} : vector<16x32xf32> to vector<8x32xf32>
    %c24_255 = arith.constant 24 : index
    %c0_256 = arith.constant 0 : index
    %417 = vector.load %arg22[%c24_255, %c0_256] : memref<64x32xf32, #tpu.memory_space<vmem>>, vector<8x32xf32>
    tpu.vector_store %arg22[%c24_255, %c0_256], %416 {strides = array<i32>} : memref<64x32xf32, #tpu.memory_space<vmem>>, vector<8x32xf32>,
    %418 = vector.extract_strided_slice %413 {offsets = [8, 0], sizes = [8, 32], strides = [1, 1]} : vector<16x32xf32> to vector<8x32xf32>
    %c32_257 = arith.constant 32 : index
    %c0_258 = arith.constant 0 : index
    %419 = vector.load %arg23[%c32_257, %c0_258] : memref<64x32xf32, #tpu.memory_space<vmem>>, vector<8x32xf32>
    tpu.vector_store %arg23[%c32_257, %c0_258], %418 {strides = array<i32>} : memref<64x32xf32, #tpu.memory_space<vmem>>, vector<8x32xf32>,
    %c32_259 = arith.constant 32 : index
    %c0_260 = arith.constant 0 : index
    %420 = vector.load %arg18[%c32_259, %c0_260] : memref<64x128xf32, #tpu.memory_space<vmem>>, vector<8x128xf32>
    %c24_261 = arith.constant 24 : index
    %c0_262 = arith.constant 0 : index
    %421 = vector.load %arg19[%c24_261, %c0_262] : memref<64x128xf32, #tpu.memory_space<vmem>>, vector<8x128xf32>
    %422 = tpu.concatenate %420, %421 in 0 : vector<8x128xf32>, vector<8x128xf32> -> vector<16x128xf32>
    %c0_263 = arith.constant 0 : index
    %c0_264 = arith.constant 0 : index
    %423 = vector.load %arg24[%c0_263, %c0_264] : memref<16x32xf32, #tpu.memory_space<vmem>>, vector<16x32xf32>
    %cst_265 = arith.constant dense<0.000000e+00> : vector<16x256xf32>
    %424 = tpu.matmul %423, %295, %cst_265 {dimension_numbers = #tpu.dot_dimension_numbers<[1], [0], [0], [1], [0, 0, 1, 1], [], []>} : vector<16x32xf32>, vector<32x256xf32>, vector<16x256xf32> -> vector<16x256xf32>
    %425 = vector.extract_strided_slice %424 {offsets = [0, 0], sizes = [16, 128], strides = [1, 1]} : vector<16x256xf32> to vector<16x128xf32>
    %426 = vector.extract_strided_slice %424 {offsets = [0, 128], sizes = [16, 128], strides = [1, 1]} : vector<16x256xf32> to vector<16x128xf32>
    %427 = arith.select %2, %425, %426 : vector<16x128xi1>, vector<16x128xf32>
    %428 = arith.addf %422, %427 : vector<16x128xf32>
    %429 = arith.negf %428 : vector<16x128xf32>
    %430 = math.exp %429 : vector<16x128xf32>
    %cst_266 = arith.constant 1.000000e+00 : f32
    %431 = vector.broadcast %cst_266 : f32 to vector<16x128xf32>
    %432 = arith.addf %431, %430 : vector<16x128xf32>
    %433 = arith.divf %431, %432 : vector<16x128xf32>
    %434 = math.tanh %428 : vector<16x128xf32>
    %435 = vector.extract_strided_slice %433 {offsets = [0, 0], sizes = [16, 32], strides = [1, 1]} : vector<16x128xf32> to vector<16x32xf32>
    %436 = vector.extract_strided_slice %433 {offsets = [0, 32], sizes = [16, 32], strides = [1, 1]} : vector<16x128xf32> to vector<16x32xf32>
    %437 = vector.extract_strided_slice %434 {offsets = [0, 64], sizes = [16, 32], strides = [1, 1]} : vector<16x128xf32> to vector<16x32xf32>
    %438 = vector.extract_strided_slice %433 {offsets = [0, 96], sizes = [16, 32], strides = [1, 1]} : vector<16x128xf32> to vector<16x32xf32>
    %c0_267 = arith.constant 0 : index
    %c0_268 = arith.constant 0 : index
    %439 = vector.load %arg25[%c0_267, %c0_268] : memref<16x32xf32, #tpu.memory_space<vmem>>, vector<16x32xf32>
    %440 = arith.mulf %436, %439 : vector<16x32xf32>
    %441 = arith.mulf %435, %437 : vector<16x32xf32>
    %442 = arith.addf %440, %441 : vector<16x32xf32>
    %443 = math.tanh %442 : vector<16x32xf32>
    %444 = arith.mulf %438, %443 : vector<16x32xf32>
    %c0_269 = arith.constant 0 : index
    %c0_270 = arith.constant 0 : index
    %445 = vector.load %arg25[%c0_269, %c0_270] : memref<16x32xf32, #tpu.memory_space<vmem>>, vector<16x32xf32>
    tpu.vector_store %arg25[%c0_269, %c0_270], %442 {strides = array<i32>} : memref<16x32xf32, #tpu.memory_space<vmem>>, vector<16x32xf32>,
    %c0_271 = arith.constant 0 : index
    %c0_272 = arith.constant 0 : index
    %446 = vector.load %arg24[%c0_271, %c0_272] : memref<16x32xf32, #tpu.memory_space<vmem>>, vector<16x32xf32>
    tpu.vector_store %arg24[%c0_271, %c0_272], %444 {strides = array<i32>} : memref<16x32xf32, #tpu.memory_space<vmem>>, vector<16x32xf32>,
    %447 = vector.extract_strided_slice %444 {offsets = [0, 0], sizes = [8, 32], strides = [1, 1]} : vector<16x32xf32> to vector<8x32xf32>
    %c32_273 = arith.constant 32 : index
    %c0_274 = arith.constant 0 : index
    %448 = vector.load %arg22[%c32_273, %c0_274] : memref<64x32xf32, #tpu.memory_space<vmem>>, vector<8x32xf32>
    tpu.vector_store %arg22[%c32_273, %c0_274], %447 {strides = array<i32>} : memref<64x32xf32, #tpu.memory_space<vmem>>, vector<8x32xf32>,
    %449 = vector.extract_strided_slice %444 {offsets = [8, 0], sizes = [8, 32], strides = [1, 1]} : vector<16x32xf32> to vector<8x32xf32>
    %c24_275 = arith.constant 24 : index
    %c0_276 = arith.constant 0 : index
    %450 = vector.load %arg23[%c24_275, %c0_276] : memref<64x32xf32, #tpu.memory_space<vmem>>, vector<8x32xf32>
    tpu.vector_store %arg23[%c24_275, %c0_276], %449 {strides = array<i32>} : memref<64x32xf32, #tpu.memory_space<vmem>>, vector<8x32xf32>,
    %c40_277 = arith.constant 40 : index
    %c0_278 = arith.constant 0 : index
    %451 = vector.load %arg18[%c40_277, %c0_278] : memref<64x128xf32, #tpu.memory_space<vmem>>, vector<8x128xf32>
    %c16_279 = arith.constant 16 : index
    %c0_280 = arith.constant 0 : index
    %452 = vector.load %arg19[%c16_279, %c0_280] : memref<64x128xf32, #tpu.memory_space<vmem>>, vector<8x128xf32>
    %453 = tpu.concatenate %451, %452 in 0 : vector<8x128xf32>, vector<8x128xf32> -> vector<16x128xf32>
    %c0_281 = arith.constant 0 : index
    %c0_282 = arith.constant 0 : index
    %454 = vector.load %arg24[%c0_281, %c0_282] : memref<16x32xf32, #tpu.memory_space<vmem>>, vector<16x32xf32>
    %cst_283 = arith.constant dense<0.000000e+00> : vector<16x256xf32>
    %455 = tpu.matmul %454, %295, %cst_283 {dimension_numbers = #tpu.dot_dimension_numbers<[1], [0], [0], [1], [0, 0, 1, 1], [], []>} : vector<16x32xf32>, vector<32x256xf32>, vector<16x256xf32> -> vector<16x256xf32>
    %456 = vector.extract_strided_slice %455 {offsets = [0, 0], sizes = [16, 128], strides = [1, 1]} : vector<16x256xf32> to vector<16x128xf32>
    %457 = vector.extract_strided_slice %455 {offsets = [0, 128], sizes = [16, 128], strides = [1, 1]} : vector<16x256xf32> to vector<16x128xf32>
    %458 = arith.select %2, %456, %457 : vector<16x128xi1>, vector<16x128xf32>
    %459 = arith.addf %453, %458 : vector<16x128xf32>
    %460 = arith.negf %459 : vector<16x128xf32>
    %461 = math.exp %460 : vector<16x128xf32>
    %cst_284 = arith.constant 1.000000e+00 : f32
    %462 = vector.broadcast %cst_284 : f32 to vector<16x128xf32>
    %463 = arith.addf %462, %461 : vector<16x128xf32>
    %464 = arith.divf %462, %463 : vector<16x128xf32>
    %465 = math.tanh %459 : vector<16x128xf32>
    %466 = vector.extract_strided_slice %464 {offsets = [0, 0], sizes = [16, 32], strides = [1, 1]} : vector<16x128xf32> to vector<16x32xf32>
    %467 = vector.extract_strided_slice %464 {offsets = [0, 32], sizes = [16, 32], strides = [1, 1]} : vector<16x128xf32> to vector<16x32xf32>
    %468 = vector.extract_strided_slice %465 {offsets = [0, 64], sizes = [16, 32], strides = [1, 1]} : vector<16x128xf32> to vector<16x32xf32>
    %469 = vector.extract_strided_slice %464 {offsets = [0, 96], sizes = [16, 32], strides = [1, 1]} : vector<16x128xf32> to vector<16x32xf32>
    %c0_285 = arith.constant 0 : index
    %c0_286 = arith.constant 0 : index
    %470 = vector.load %arg25[%c0_285, %c0_286] : memref<16x32xf32, #tpu.memory_space<vmem>>, vector<16x32xf32>
    %471 = arith.mulf %467, %470 : vector<16x32xf32>
    %472 = arith.mulf %466, %468 : vector<16x32xf32>
    %473 = arith.addf %471, %472 : vector<16x32xf32>
    %474 = math.tanh %473 : vector<16x32xf32>
    %475 = arith.mulf %469, %474 : vector<16x32xf32>
    %c0_287 = arith.constant 0 : index
    %c0_288 = arith.constant 0 : index
    %476 = vector.load %arg25[%c0_287, %c0_288] : memref<16x32xf32, #tpu.memory_space<vmem>>, vector<16x32xf32>
    tpu.vector_store %arg25[%c0_287, %c0_288], %473 {strides = array<i32>} : memref<16x32xf32, #tpu.memory_space<vmem>>, vector<16x32xf32>,
    %c0_289 = arith.constant 0 : index
    %c0_290 = arith.constant 0 : index
    %477 = vector.load %arg24[%c0_289, %c0_290] : memref<16x32xf32, #tpu.memory_space<vmem>>, vector<16x32xf32>
    tpu.vector_store %arg24[%c0_289, %c0_290], %475 {strides = array<i32>} : memref<16x32xf32, #tpu.memory_space<vmem>>, vector<16x32xf32>,
    %478 = vector.extract_strided_slice %475 {offsets = [0, 0], sizes = [8, 32], strides = [1, 1]} : vector<16x32xf32> to vector<8x32xf32>
    %c40_291 = arith.constant 40 : index
    %c0_292 = arith.constant 0 : index
    %479 = vector.load %arg22[%c40_291, %c0_292] : memref<64x32xf32, #tpu.memory_space<vmem>>, vector<8x32xf32>
    tpu.vector_store %arg22[%c40_291, %c0_292], %478 {strides = array<i32>} : memref<64x32xf32, #tpu.memory_space<vmem>>, vector<8x32xf32>,
    %480 = vector.extract_strided_slice %475 {offsets = [8, 0], sizes = [8, 32], strides = [1, 1]} : vector<16x32xf32> to vector<8x32xf32>
    %c16_293 = arith.constant 16 : index
    %c0_294 = arith.constant 0 : index
    %481 = vector.load %arg23[%c16_293, %c0_294] : memref<64x32xf32, #tpu.memory_space<vmem>>, vector<8x32xf32>
    tpu.vector_store %arg23[%c16_293, %c0_294], %480 {strides = array<i32>} : memref<64x32xf32, #tpu.memory_space<vmem>>, vector<8x32xf32>,
    %c48_295 = arith.constant 48 : index
    %c0_296 = arith.constant 0 : index
    %482 = vector.load %arg18[%c48_295, %c0_296] : memref<64x128xf32, #tpu.memory_space<vmem>>, vector<8x128xf32>
    %c8_297 = arith.constant 8 : index
    %c0_298 = arith.constant 0 : index
    %483 = vector.load %arg19[%c8_297, %c0_298] : memref<64x128xf32, #tpu.memory_space<vmem>>, vector<8x128xf32>
    %484 = tpu.concatenate %482, %483 in 0 : vector<8x128xf32>, vector<8x128xf32> -> vector<16x128xf32>
    %c0_299 = arith.constant 0 : index
    %c0_300 = arith.constant 0 : index
    %485 = vector.load %arg24[%c0_299, %c0_300] : memref<16x32xf32, #tpu.memory_space<vmem>>, vector<16x32xf32>
    %cst_301 = arith.constant dense<0.000000e+00> : vector<16x256xf32>
    %486 = tpu.matmul %485, %295, %cst_301 {dimension_numbers = #tpu.dot_dimension_numbers<[1], [0], [0], [1], [0, 0, 1, 1], [], []>} : vector<16x32xf32>, vector<32x256xf32>, vector<16x256xf32> -> vector<16x256xf32>
    %487 = vector.extract_strided_slice %486 {offsets = [0, 0], sizes = [16, 128], strides = [1, 1]} : vector<16x256xf32> to vector<16x128xf32>
    %488 = vector.extract_strided_slice %486 {offsets = [0, 128], sizes = [16, 128], strides = [1, 1]} : vector<16x256xf32> to vector<16x128xf32>
    %489 = arith.select %2, %487, %488 : vector<16x128xi1>, vector<16x128xf32>
    %490 = arith.addf %484, %489 : vector<16x128xf32>
    %491 = arith.negf %490 : vector<16x128xf32>
    %492 = math.exp %491 : vector<16x128xf32>
    %cst_302 = arith.constant 1.000000e+00 : f32
    %493 = vector.broadcast %cst_302 : f32 to vector<16x128xf32>
    %494 = arith.addf %493, %492 : vector<16x128xf32>
    %495 = arith.divf %493, %494 : vector<16x128xf32>
    %496 = math.tanh %490 : vector<16x128xf32>
    %497 = vector.extract_strided_slice %495 {offsets = [0, 0], sizes = [16, 32], strides = [1, 1]} : vector<16x128xf32> to vector<16x32xf32>
    %498 = vector.extract_strided_slice %495 {offsets = [0, 32], sizes = [16, 32], strides = [1, 1]} : vector<16x128xf32> to vector<16x32xf32>
    %499 = vector.extract_strided_slice %496 {offsets = [0, 64], sizes = [16, 32], strides = [1, 1]} : vector<16x128xf32> to vector<16x32xf32>
    %500 = vector.extract_strided_slice %495 {offsets = [0, 96], sizes = [16, 32], strides = [1, 1]} : vector<16x128xf32> to vector<16x32xf32>
    %c0_303 = arith.constant 0 : index
    %c0_304 = arith.constant 0 : index
    %501 = vector.load %arg25[%c0_303, %c0_304] : memref<16x32xf32, #tpu.memory_space<vmem>>, vector<16x32xf32>
    %502 = arith.mulf %498, %501 : vector<16x32xf32>
    %503 = arith.mulf %497, %499 : vector<16x32xf32>
    %504 = arith.addf %502, %503 : vector<16x32xf32>
    %505 = math.tanh %504 : vector<16x32xf32>
    %506 = arith.mulf %500, %505 : vector<16x32xf32>
    %c0_305 = arith.constant 0 : index
    %c0_306 = arith.constant 0 : index
    %507 = vector.load %arg25[%c0_305, %c0_306] : memref<16x32xf32, #tpu.memory_space<vmem>>, vector<16x32xf32>
    tpu.vector_store %arg25[%c0_305, %c0_306], %504 {strides = array<i32>} : memref<16x32xf32, #tpu.memory_space<vmem>>, vector<16x32xf32>,
    %c0_307 = arith.constant 0 : index
    %c0_308 = arith.constant 0 : index
    %508 = vector.load %arg24[%c0_307, %c0_308] : memref<16x32xf32, #tpu.memory_space<vmem>>, vector<16x32xf32>
    tpu.vector_store %arg24[%c0_307, %c0_308], %506 {strides = array<i32>} : memref<16x32xf32, #tpu.memory_space<vmem>>, vector<16x32xf32>,
    %509 = vector.extract_strided_slice %506 {offsets = [0, 0], sizes = [8, 32], strides = [1, 1]} : vector<16x32xf32> to vector<8x32xf32>
    %c48_309 = arith.constant 48 : index
    %c0_310 = arith.constant 0 : index
    %510 = vector.load %arg22[%c48_309, %c0_310] : memref<64x32xf32, #tpu.memory_space<vmem>>, vector<8x32xf32>
    tpu.vector_store %arg22[%c48_309, %c0_310], %509 {strides = array<i32>} : memref<64x32xf32, #tpu.memory_space<vmem>>, vector<8x32xf32>,
    %511 = vector.extract_strided_slice %506 {offsets = [8, 0], sizes = [8, 32], strides = [1, 1]} : vector<16x32xf32> to vector<8x32xf32>
    %c8_311 = arith.constant 8 : index
    %c0_312 = arith.constant 0 : index
    %512 = vector.load %arg23[%c8_311, %c0_312] : memref<64x32xf32, #tpu.memory_space<vmem>>, vector<8x32xf32>
    tpu.vector_store %arg23[%c8_311, %c0_312], %511 {strides = array<i32>} : memref<64x32xf32, #tpu.memory_space<vmem>>, vector<8x32xf32>,
    %c56_313 = arith.constant 56 : index
    %c0_314 = arith.constant 0 : index
    %513 = vector.load %arg18[%c56_313, %c0_314] : memref<64x128xf32, #tpu.memory_space<vmem>>, vector<8x128xf32>
    %c0_315 = arith.constant 0 : index
    %c0_316 = arith.constant 0 : index
    %514 = vector.load %arg19[%c0_315, %c0_316] : memref<64x128xf32, #tpu.memory_space<vmem>>, vector<8x128xf32>
    %515 = tpu.concatenate %513, %514 in 0 : vector<8x128xf32>, vector<8x128xf32> -> vector<16x128xf32>
    %c0_317 = arith.constant 0 : index
    %c0_318 = arith.constant 0 : index
    %516 = vector.load %arg24[%c0_317, %c0_318] : memref<16x32xf32, #tpu.memory_space<vmem>>, vector<16x32xf32>
    %cst_319 = arith.constant dense<0.000000e+00> : vector<16x256xf32>
    %517 = tpu.matmul %516, %295, %cst_319 {dimension_numbers = #tpu.dot_dimension_numbers<[1], [0], [0], [1], [0, 0, 1, 1], [], []>} : vector<16x32xf32>, vector<32x256xf32>, vector<16x256xf32> -> vector<16x256xf32>
    %518 = vector.extract_strided_slice %517 {offsets = [0, 0], sizes = [16, 128], strides = [1, 1]} : vector<16x256xf32> to vector<16x128xf32>
    %519 = vector.extract_strided_slice %517 {offsets = [0, 128], sizes = [16, 128], strides = [1, 1]} : vector<16x256xf32> to vector<16x128xf32>
    %520 = arith.select %2, %518, %519 : vector<16x128xi1>, vector<16x128xf32>
    %521 = arith.addf %515, %520 : vector<16x128xf32>
    %522 = arith.negf %521 : vector<16x128xf32>
    %523 = math.exp %522 : vector<16x128xf32>
    %cst_320 = arith.constant 1.000000e+00 : f32
    %524 = vector.broadcast %cst_320 : f32 to vector<16x128xf32>
    %525 = arith.addf %524, %523 : vector<16x128xf32>
    %526 = arith.divf %524, %525 : vector<16x128xf32>
    %527 = math.tanh %521 : vector<16x128xf32>
    %528 = vector.extract_strided_slice %526 {offsets = [0, 0], sizes = [16, 32], strides = [1, 1]} : vector<16x128xf32> to vector<16x32xf32>
    %529 = vector.extract_strided_slice %526 {offsets = [0, 32], sizes = [16, 32], strides = [1, 1]} : vector<16x128xf32> to vector<16x32xf32>
    %530 = vector.extract_strided_slice %527 {offsets = [0, 64], sizes = [16, 32], strides = [1, 1]} : vector<16x128xf32> to vector<16x32xf32>
    %531 = vector.extract_strided_slice %526 {offsets = [0, 96], sizes = [16, 32], strides = [1, 1]} : vector<16x128xf32> to vector<16x32xf32>
    %c0_321 = arith.constant 0 : index
    %c0_322 = arith.constant 0 : index
    %532 = vector.load %arg25[%c0_321, %c0_322] : memref<16x32xf32, #tpu.memory_space<vmem>>, vector<16x32xf32>
    %533 = arith.mulf %529, %532 : vector<16x32xf32>
    %534 = arith.mulf %528, %530 : vector<16x32xf32>
    %535 = arith.addf %533, %534 : vector<16x32xf32>
    %536 = math.tanh %535 : vector<16x32xf32>
    %537 = arith.mulf %531, %536 : vector<16x32xf32>
    %c0_323 = arith.constant 0 : index
    %c0_324 = arith.constant 0 : index
    %538 = vector.load %arg25[%c0_323, %c0_324] : memref<16x32xf32, #tpu.memory_space<vmem>>, vector<16x32xf32>
    tpu.vector_store %arg25[%c0_323, %c0_324], %535 {strides = array<i32>} : memref<16x32xf32, #tpu.memory_space<vmem>>, vector<16x32xf32>,
    %c0_325 = arith.constant 0 : index
    %c0_326 = arith.constant 0 : index
    %539 = vector.load %arg24[%c0_325, %c0_326] : memref<16x32xf32, #tpu.memory_space<vmem>>, vector<16x32xf32>
    tpu.vector_store %arg24[%c0_325, %c0_326], %537 {strides = array<i32>} : memref<16x32xf32, #tpu.memory_space<vmem>>, vector<16x32xf32>,
    %540 = vector.extract_strided_slice %537 {offsets = [0, 0], sizes = [8, 32], strides = [1, 1]} : vector<16x32xf32> to vector<8x32xf32>
    %c56_327 = arith.constant 56 : index
    %c0_328 = arith.constant 0 : index
    %541 = vector.load %arg22[%c56_327, %c0_328] : memref<64x32xf32, #tpu.memory_space<vmem>>, vector<8x32xf32>
    tpu.vector_store %arg22[%c56_327, %c0_328], %540 {strides = array<i32>} : memref<64x32xf32, #tpu.memory_space<vmem>>, vector<8x32xf32>,
    %542 = vector.extract_strided_slice %537 {offsets = [8, 0], sizes = [8, 32], strides = [1, 1]} : vector<16x32xf32> to vector<8x32xf32>
    %c0_329 = arith.constant 0 : index
    %c0_330 = arith.constant 0 : index
    %543 = vector.load %arg23[%c0_329, %c0_330] : memref<64x32xf32, #tpu.memory_space<vmem>>, vector<8x32xf32>
    tpu.vector_store %arg23[%c0_329, %c0_330], %542 {strides = array<i32>} : memref<64x32xf32, #tpu.memory_space<vmem>>, vector<8x32xf32>,
    %c0_331 = arith.constant 0 : index
    %c0_332 = arith.constant 0 : index
    %544 = vector.load %arg22[%c0_331, %c0_332] : memref<64x32xf32, #tpu.memory_space<vmem>>, vector<64x32xf32>
    %c0_333 = arith.constant 0 : index
    %c0_334 = arith.constant 0 : index
    %545 = vector.load %arg23[%c0_333, %c0_334] : memref<64x32xf32, #tpu.memory_space<vmem>>, vector<64x32xf32>
    %c0_335 = arith.constant 0 : index
    %c0_336 = arith.constant 0 : index
    %546 = vector.load %arg11[%c0_335, %c0_336] : memref<64x64xf32, #tpu.memory_space<vmem>>, vector<64x64xf32>
    %547 = vector.extract_strided_slice %546 {offsets = [0, 0], sizes = [32, 64], strides = [1, 1]} : vector<64x64xf32> to vector<32x64xf32>
    %cst_337 = arith.constant dense<0.000000e+00> : vector<64x64xf32>
    %548 = tpu.matmul %544, %547, %cst_337 {dimension_numbers = #tpu.dot_dimension_numbers<[1], [0], [0], [1], [0, 0, 1, 1], [], []>} : vector<64x32xf32>, vector<32x64xf32>, vector<64x64xf32> -> vector<64x64xf32>
    %549 = vector.extract_strided_slice %546 {offsets = [32, 0], sizes = [32, 64], strides = [1, 1]} : vector<64x64xf32> to vector<32x64xf32>
    %cst_338 = arith.constant dense<0.000000e+00> : vector<64x64xf32>
    %550 = tpu.matmul %545, %549, %cst_338 {dimension_numbers = #tpu.dot_dimension_numbers<[1], [0], [0], [1], [0, 0, 1, 1], [], []>} : vector<64x32xf32>, vector<32x64xf32>, vector<64x64xf32> -> vector<64x64xf32>
    %551 = arith.addf %548, %550 : vector<64x64xf32>
    %c0_339 = arith.constant 0 : index
    %c0_340 = arith.constant 0 : index
    %552 = vector.load %arg12[%c0_339, %c0_340] : memref<1x64xf32, #tpu.memory_space<vmem>>, vector<1x64xf32>
    %553 = vector.broadcast %552 : vector<1x64xf32> to vector<64x64xf32>
    %554 = arith.addf %551, %553 : vector<64x64xf32>
    %cst_341 = arith.constant 0.000000e+00 : f32
    %555 = vector.broadcast %cst_341 : f32 to vector<64x64xf32>
    %556 = arith.maximumf %554, %555 : vector<64x64xf32>
    %c0_342 = arith.constant 0 : index
    %c0_343 = arith.constant 0 : index
    %557 = vector.load %arg13[%c0_342, %c0_343] : memref<64x32xf32, #tpu.memory_space<vmem>>, vector<64x32xf32>
    %cst_344 = arith.constant dense<0.000000e+00> : vector<64x32xf32>
    %558 = tpu.matmul %556, %557, %cst_344 {dimension_numbers = #tpu.dot_dimension_numbers<[1], [0], [0], [1], [0, 0, 1, 1], [], []>} : vector<64x64xf32>, vector<64x32xf32>, vector<64x32xf32> -> vector<64x32xf32>
    %c0_345 = arith.constant 0 : index
    %c0_346 = arith.constant 0 : index
    %559 = vector.load %arg14[%c0_345, %c0_346] : memref<1x32xf32, #tpu.memory_space<vmem>>, vector<1x32xf32>
    %560 = vector.broadcast %559 : vector<1x32xf32> to vector<64x32xf32>
    %561 = arith.addf %558, %560 : vector<64x32xf32>
    %c0_347 = arith.constant 0 : index
    %c0_348 = arith.constant 0 : index
    %562 = vector.load %arg15[%c0_347, %c0_348] : memref<32x128xf32, #tpu.memory_space<vmem>>, vector<32x128xf32>
    %cst_349 = arith.constant dense<0.000000e+00> : vector<64x128xf32>
    %563 = tpu.matmul %561, %562, %cst_349 {dimension_numbers = #tpu.dot_dimension_numbers<[1], [0], [0], [1], [0, 0, 1, 1], [], []>} : vector<64x32xf32>, vector<32x128xf32>, vector<64x128xf32> -> vector<64x128xf32>
    %c0_350 = arith.constant 0 : index
    %c0_351 = arith.constant 0 : index
    %564 = vector.load %arg16[%c0_350, %c0_351] : memref<1x128xf32, #tpu.memory_space<vmem>>, vector<1x128xf32>
    %565 = vector.broadcast %564 : vector<1x128xf32> to vector<64x128xf32>
    %566 = arith.addf %563, %565 : vector<64x128xf32>
    %c0_352 = arith.constant 0 : index
    %c0_353 = arith.constant 0 : index
    %567 = vector.load %arg17[%c0_352, %c0_353] : memref<64x128xf32, #tpu.memory_space<vmem>>, vector<64x128xf32>
    tpu.vector_store %arg17[%c0_352, %c0_353], %566 {strides = array<i32>} : memref<64x128xf32, #tpu.memory_space<vmem>>, vector<64x128xf32>,
    return
  }
}

</mosaic_0001>

<bundles_post_ra>
// kernel: bilstm_forward.1
= control target key start
LH: loop header
LB: loop body
LE: loop exit
PB: predicated region body
PF: predicated region fallthrough
CT: control target
= control target key end

     0   :  { %s6653_s0 = inlined_call_operand.vmem [shape: f32[64,4], index: 0, kind: input, shape index: {}]   ;;  %s6654_s1 = inlined_call_operand.hbm [shape: f32[4,128], index: 1, kind: input, shape index: {}]   ;;  %s6655_s2 = inlined_call_operand.hbm [shape: f32[1,128], index: 2, kind: input, shape index: {}]   ;;  %s6656_s3 = inlined_call_operand.hbm [shape: f32[4,128], index: 3, kind: input, shape index: {}]   ;;  %s6657_s4 = inlined_call_operand.hbm [shape: f32[1,128], index: 4, kind: input, shape index: {}]   ;;  %s6658_s5 = inlined_call_operand.hbm [shape: f32[32,256], index: 5, kind: input, shape index: {}]   ;;  %s6659_s6 = inlined_call_operand.hbm [shape: f32[64,128], index: 6, kind: input, shape index: {}]   ;;  %s6660_s7 = inlined_call_operand.hbm [shape: f32[1,128], index: 7, kind: input, shape index: {}]   ;;  %s6661_s8 = inlined_call_operand.hbm [shape: f32[64,128], index: 8, kind: input, shape index: {}]   ;;  %s6662_s9 = inlined_call_operand.hbm [shape: f32[1,128], index: 9, kind: input, shape index: {}]   ;;  %s6663_s10 = inlined_call_operand.hbm [shape: f32[32,256], index: 10, kind: input, shape index: {}]   ;;  %s6664_s11 = inlined_call_operand.vmem [shape: f32[64,64], index: 11, kind: input, shape index: {}]   ;;  %s6665_s12 = inlined_call_operand.hbm [shape: f32[1,64], index: 12, kind: input, shape index: {}]   ;;  %s6666_s13 = inlined_call_operand.vmem [shape: f32[64,32], index: 13, kind: input, shape index: {}]   ;;  %s6667_s14 = inlined_call_operand.hbm [shape: f32[1,32], index: 14, kind: input, shape index: {}]   ;;  %s6668_s15 = inlined_call_operand.vmem [shape: f32[32,128], index: 15, kind: input, shape index: {}]   ;;  %s6669_s16 = inlined_call_operand.vmem [shape: f32[1,128], index: 16, kind: input, shape index: {}]   ;;  %s6670_s17 = inlined_call_operand.vmem [shape: f32[64,128], index: 17, kind: output, shape index: {}]  }
   0x1   :  { %6673 = sst [smem:[#allocation36_spill]] %s6653_s0 }
   0x2   :  { %6674 = sst [smem:[#allocation37_spill]] %s6654_s1 }
   0x3   :  { %22 = vsyncpa [#allocation11], 0 }
   0x4   :  { %23 = vsyncpa [#allocation13], 0 }
   0x5   :  { %24 = vsyncpa [#allocation16], 0 }
   0x6   :  { %25 = vsyncpa [#allocation19], 0 }
   0x7   :  { %26 = vsyncpa [#allocation22], 0 }
   0x8   :  { %27 = vsyncpa [#allocation25], 0 }
   0x9   :  { %28 = vsyncpa [#allocation28], 0  ;;  %s5659_s24 = smov [#allocation12]   ;;  %s5660_s26 = smov [#allocation15]  }
   0xa   :  { %s47_s25 = sshll.u32 %s5659_s24, 4  ;;  %s67_s27 = sshll.u32 %s5660_s26, 4  ;;  %s48_s25 = int_to_ptr.vmem [resolvable:$true] %s47_s25  ;;  %s68_s27 = int_to_ptr.vmem [resolvable:$true] %s67_s27 }
   0xb   :  { %s5381_s0 = scalar_lea.hbm %s6655_s2, 16 }
   0xc   :  { %p5382_p0 = scmp.ne.s32.totalorder %s6655_s2, %s5381_s0  ;;  %p5385_p1 = scmp.lt.u32.totalorder %s5381_s0, %s6655_s2 }
   0xe   :  { %p5387_p2 = pnand %p5385_p1, %p5382_p0 }
  0x10   :  { %5390 = shalt.err (!%p5387_p2)
}
  0x11   :  { %s5391_s20 = scalar_lea.vmem %s48_s25, 16  ;;  %s5395_s21 = scalar_lea.vmem %s48_s25, 32 }
  0x12   :  { %p5392_p3 = scmp.ne.s32.totalorder %s48_s25, %s5391_s20  ;;  %p5396_p4 = scmp.lt.s32.totalorder %s48_s25, %s48_s25 }
  0x13   :  { %p5397_p5 = scmp.lt.s32.totalorder %s5395_s21, %s5391_s20 }
  0x15   :  { %p5398_p6 = por %p5397_p5, %p5396_p4 }
  0x17   :  { %p5399_p7 = pnand %p5398_p6, %p5392_p3 }
  0x19   :  { %5402 = shalt.err (!%p5399_p7)
}
  0x1a   :  { %50 = dma.hbm_to_vmem [thread:$0]  %s6655_s2, 16, %s48_s25, [#allocation13]  }
  0x1b   :  { %s5403_s28 = scalar_lea.hbm %s6657_s4, 16 }
  0x1c   :  { %p5404_p8 = scmp.ne.s32.totalorder %s6657_s4, %s5403_s28  ;;  %p5407_p9 = scmp.lt.u32.totalorder %s5403_s28, %s6657_s4 }
  0x1e   :  { %p5409_p10 = pnand %p5407_p9, %p5404_p8 }
  0x20   :  { %5412 = shalt.err (!%p5409_p10)
}
  0x21   :  { %s5413_s19 = scalar_lea.vmem %s68_s27, 16  ;;  %s5417_s1 = scalar_lea.vmem %s68_s27, 32 }
  0x22   :  { %p5414_p11 = scmp.ne.s32.totalorder %s68_s27, %s5413_s19  ;;  %p5418_p12 = scmp.lt.s32.totalorder %s68_s27, %s68_s27 }
  0x23   :  { %p5419_p13 = scmp.lt.s32.totalorder %s5417_s1, %s5413_s19 }
  0x25   :  { %p5420_p0 = por %p5419_p13, %p5418_p12 }
  0x27   :  { %p5421_p1 = pnand %p5420_p0, %p5414_p11 }
  0x29   :  { %5424 = shalt.err (!%p5421_p1)
}
  0x2a   :  { %70 = dma.hbm_to_vmem [thread:$0]  %s6657_s4, 16, %s68_s27, [#allocation16]  }
  0x2b   :  { %s5661_s20 = smov [#allocation18]   ;;  %s5425_s24 = scalar_lea.hbm %s6659_s6, 1024 }
  0x2c   :  { %s88_s21 = sshll.u32 %s5661_s20, 4  ;;  %p5426_p2 = scmp.ne.s32.totalorder %s6659_s6, %s5425_s24  ;;  %s89_s21 = int_to_ptr.vmem [resolvable:$true] %s88_s21 }
  0x2d   :  { %p5429_p3 = scmp.lt.u32.totalorder %s5425_s24, %s6659_s6 }
  0x2f   :  { %p5431_p4 = pnand %p5429_p3, %p5426_p2 }
  0x31   :  { %5434 = shalt.err (!%p5431_p4)
}
  0x32   :  { %s5435_s30 = scalar_lea.vmem %s89_s21, 1024  ;;  %p5440_p6 = scmp.lt.s32.totalorder %s89_s21, %s89_s21 }
  0x33   :  { %p5436_p5 = scmp.ne.s32.totalorder %s89_s21, %s5435_s30  ;;  %p5441_p7 = scmp.lt.s32.totalorder %s5435_s30, %s5435_s30 }
  0x35   :  { %p5442_p8 = por %p5441_p7, %p5440_p6 }
  0x37   :  { %p5443_p9 = pnand %p5442_p8, %p5436_p5 }
  0x39   :  { %5446 = shalt.err (!%p5443_p9)
}
  0x3a   :  { %s5662_s4 = smov 128   ;;  %s5663_s27 = smov 8  }
  0x3b   :  { %94 = dma.hbm_to_vmem [thread:$0]  %s6659_s6, 1024, %s89_s21, [#allocation19], %s5662_s4, %s5662_s4, %s5663_s27  }
  0x3c   :  { %s5664_s1 = smov [#allocation21]   ;;  %s5447_s22 = scalar_lea.hbm %s6661_s8, 1024 }
  0x3d   :  { %s110_s2 = sshll.u32 %s5664_s1, 4  ;;  %p5448_p10 = scmp.ne.s32.totalorder %s6661_s8, %s5447_s22  ;;  %s111_s2 = int_to_ptr.vmem [resolvable:$true] %s110_s2 }
  0x3e   :  { %p5451_p11 = scmp.lt.u32.totalorder %s5447_s22, %s6661_s8 }
  0x40   :  { %p5453_p12 = pnand %p5451_p11, %p5448_p10 }
  0x42   :  { %5456 = shalt.err (!%p5453_p12)
}
  0x43   :  { %s5457_s29 = scalar_lea.vmem %s111_s2, 1024  ;;  %p5462_p0 = scmp.lt.s32.totalorder %s111_s2, %s111_s2 }
  0x44   :  { %p5458_p13 = scmp.ne.s32.totalorder %s111_s2, %s5457_s29  ;;  %p5463_p1 = scmp.lt.s32.totalorder %s5457_s29, %s5457_s29 }
  0x46   :  { %p5464_p2 = por %p5463_p1, %p5462_p0 }
  0x48   :  { %p5465_p3 = pnand %p5464_p2, %p5458_p13 }
  0x4a   :  { %5468 = shalt.err (!%p5465_p3)
}
  0x4b   :  { %116 = dma.hbm_to_vmem [thread:$0]  %s6661_s8, 1024, %s111_s2, [#allocation22], %s5662_s4, %s5662_s4, %s5663_s27  }
  0x4c   :  { %s5665_s0 = smov [#allocation24]   ;;  %s5666_s18 = smov [#allocation10]  }
  0x4d   :  { %s132_s30 = sshll.u32 %s5665_s0, 4  ;;  %s37_s19 = sshll.u32 %s5666_s18, 4  ;;  %s133_s30 = int_to_ptr.vmem [resolvable:$true] %s132_s30  ;;  %s38_s19 = int_to_ptr.vmem [resolvable:$true] %s37_s19 }
  0x4e   :  { %s5469_s20 = scalar_lea.hbm %s6663_s10, 1024 }
  0x4f   :  { %p5470_p4 = scmp.ne.s32.totalorder %s6663_s10, %s5469_s20  ;;  %p5473_p5 = scmp.lt.u32.totalorder %s5469_s20, %s6663_s10 }
  0x51   :  { %p5475_p6 = pnand %p5473_p5, %p5470_p4 }
  0x53   :  { %5478 = shalt.err (!%p5475_p6)
}
  0x54   :  { %s5479_s8 = scalar_lea.vmem %s133_s30, 1024  ;;  %p5484_p8 = scmp.lt.s32.totalorder %s133_s30, %s133_s30 }
  0x55   :  { %p5480_p7 = scmp.ne.s32.totalorder %s133_s30, %s5479_s8  ;;  %p5485_p9 = scmp.lt.s32.totalorder %s5479_s8, %s5479_s8 }
  0x57   :  { %p5486_p10 = por %p5485_p9, %p5484_p8 }
  0x59   :  { %p5487_p11 = pnand %p5486_p10, %p5480_p7 }
  0x5b   :  { %5490 = shalt.err (!%p5487_p11)
}
  0x5c   :  { %s5667_s4 = smov 256   ;;  %s5668_s27 = smov 16  }
  0x5d   :  { %138 = dma.hbm_to_vmem [thread:$0]  %s6663_s10, 1024, %s133_s30, [#allocation25], %s5667_s4, %s5667_s4, %s5668_s27  }
  0x5e   :  { %s6675_s21 = sld [smem:[#allocation37_spill]] }
  0x64   :  { %s5491_s0 = scalar_lea.hbm %s6675_s21, 64 }
  0x65   :  { %p5492_p12 = scmp.ne.s32.totalorder %s6675_s21, %s5491_s0  ;;  %p5495_p13 = scmp.lt.u32.totalorder %s5491_s0, %s6675_s21 }
  0x67   :  { %p5497_p0 = pnand %p5495_p13, %p5492_p12 }
  0x69   :  { %5500 = shalt.err (!%p5497_p0)
}
  0x6a   :  { %s5501_s22 = scalar_lea.vmem %s38_s19, 64  ;;  %p5506_p2 = scmp.lt.s32.totalorder %s38_s19, %s38_s19 }
  0x6b   :  { %p5502_p1 = scmp.ne.s32.totalorder %s38_s19, %s5501_s22  ;;  %p5507_p3 = scmp.lt.s32.totalorder %s5501_s22, %s5501_s22 }
  0x6d   :  { %p5508_p4 = por %p5507_p3, %p5506_p2 }
  0x6f   :  { %p5509_p5 = pnand %p5508_p4, %p5502_p1 }
  0x71   :  { %5512 = shalt.err (!%p5509_p5)
}
  0x72   :  { %40 = dma.hbm_to_vmem [thread:$0]  %s6675_s21, 64, %s38_s19, [#allocation11]  }
  0x73   :  { %s5669_s23 = smov [#allocation14]   ;;  %s5670_s26 = smov [#allocation17]  }
  0x74   :  { %s57_s24 = sshll.u32 %s5669_s23, 4  ;;  %s76_s8 = sshll.u32 %s5670_s26, 4  ;;  %s58_s24 = int_to_ptr.vmem [resolvable:$true] %s57_s24  ;;  %s5844_s8 = int_to_ptr.vmem [resolvable:$true] %s76_s8 }
  0x75   :  { %s5513_s29 = scalar_lea.hbm %s6656_s3, 64 }
  0x76   :  { %p5514_p6 = scmp.ne.s32.totalorder %s6656_s3, %s5513_s29  ;;  %p5517_p7 = scmp.lt.u32.totalorder %s5513_s29, %s6656_s3 }
  0x78   :  { %p5519_p8 = pnand %p5517_p7, %p5514_p6 }
  0x7a   :  { %5522 = shalt.err (!%p5519_p8)
}
  0x7b   :  { %s5523_s19 = scalar_lea.vmem %s58_s24, 64  ;;  %p5528_p10 = scmp.lt.s32.totalorder %s58_s24, %s58_s24 }
  0x7c   :  { %p5524_p9 = scmp.ne.s32.totalorder %s58_s24, %s5523_s19  ;;  %p5529_p11 = scmp.lt.s32.totalorder %s5523_s19, %s5523_s19 }
  0x7e   :  { %p5530_p12 = por %p5529_p11, %p5528_p10 }
  0x80   :  { %p5531_p13 = pnand %p5530_p12, %p5524_p9 }
  0x82   :  { %5534 = shalt.err (!%p5531_p13)
}
  0x83   :  { %60 = dma.hbm_to_vmem [thread:$0]  %s6656_s3, 64, %s58_s24, [#allocation13]  }
  0x84   :  { %s5535_s10 = scalar_lea.hbm %s6658_s5, 1024 }
  0x85   :  { %p5536_p0 = scmp.ne.s32.totalorder %s6658_s5, %s5535_s10  ;;  %p5539_p1 = scmp.lt.u32.totalorder %s5535_s10, %s6658_s5 }
  0x87   :  { %p5541_p2 = pnand %p5539_p1, %p5536_p0 }
  0x89   :  { %5544 = shalt.err (!%p5541_p2)
}
  0x8a   :  { %s5545_s28 = scalar_lea.vmem %s5844_s8, 1024  ;;  %p5550_p4 = scmp.lt.s32.totalorder %s5844_s8, %s5844_s8 }
  0x8b   :  { %p5546_p3 = scmp.ne.s32.totalorder %s5844_s8, %s5545_s28  ;;  %p5551_p5 = scmp.lt.s32.totalorder %s5545_s28, %s5545_s28 }
  0x8d   :  { %p5552_p6 = por %p5551_p5, %p5550_p4 }
  0x8f   :  { %p5553_p7 = pnand %p5552_p6, %p5546_p3 }
  0x91   :  { %5556 = shalt.err (!%p5553_p7)
}
  0x92   :  { %82 = dma.hbm_to_vmem [thread:$0]  %s6658_s5, 1024, %s5844_s8, [#allocation16], %s5667_s4, %s5667_s4, %s5668_s27  }
  0x93   :  { %s5671_s29 = smov [#allocation20]   ;;  %s5672_s0 = smov [#allocation23]  }
  0x94   :  { %s101_s6 = sshll.u32 %s5671_s29, 4  ;;  %s123_s18 = sshll.u32 %s5672_s0, 4  ;;  %s102_s6 = int_to_ptr.vmem [resolvable:$true] %s101_s6  ;;  %s124_s18 = int_to_ptr.vmem [resolvable:$true] %s123_s18 }
  0x95   :  { %s5557_s21 = scalar_lea.hbm %s6660_s7, 16 }
  0x96   :  { %p5558_p8 = scmp.ne.s32.totalorder %s6660_s7, %s5557_s21  ;;  %p5561_p9 = scmp.lt.u32.totalorder %s5557_s21, %s6660_s7 }
  0x98   :  { %p5563_p10 = pnand %p5561_p9, %p5558_p8 }
  0x9a   :  { %5566 = shalt.err (!%p5563_p10)
}
  0x9b   :  { %s5567_s5 = scalar_lea.vmem %s102_s6, 16  ;;  %s5571_s4 = scalar_lea.vmem %s102_s6, 32 }
  0x9c   :  { %p5568_p11 = scmp.ne.s32.totalorder %s102_s6, %s5567_s5  ;;  %p5572_p12 = scmp.lt.s32.totalorder %s102_s6, %s102_s6 }
  0x9d   :  { %p5573_p13 = scmp.lt.s32.totalorder %s5571_s4, %s5567_s5 }
  0x9f   :  { %p5574_p0 = por %p5573_p13, %p5572_p12 }
  0xa1   :  { %p5575_p1 = pnand %p5574_p0, %p5568_p11 }
  0xa3   :  { %5578 = shalt.err (!%p5575_p1)
}
  0xa4   :  { %104 = dma.hbm_to_vmem [thread:$0]  %s6660_s7, 16, %s102_s6, [#allocation19]  }
  0xa5   :  { %s5579_s26 = scalar_lea.hbm %s6662_s9, 16 }
  0xa6   :  { %p5580_p2 = scmp.ne.s32.totalorder %s6662_s9, %s5579_s26  ;;  %p5583_p3 = scmp.lt.u32.totalorder %s5579_s26, %s6662_s9 }
  0xa8   :  { %p5585_p4 = pnand %p5583_p3, %p5580_p2 }
  0xaa   :  { %5588 = shalt.err (!%p5585_p4)
}
  0xab   :  { %s5589_s29 = scalar_lea.vmem %s124_s18, 16  ;;  %s5593_s0 = scalar_lea.vmem %s124_s18, 32 }
  0xac   :  { %p5590_p5 = scmp.ne.s32.totalorder %s124_s18, %s5589_s29  ;;  %p5594_p6 = scmp.lt.s32.totalorder %s124_s18, %s124_s18 }
  0xad   :  { %p5595_p7 = scmp.lt.s32.totalorder %s5593_s0, %s5589_s29 }
  0xaf   :  { %p5596_p8 = por %p5595_p7, %p5594_p6 }
  0xb1   :  { %p5597_p9 = pnand %p5596_p8, %p5590_p5 }
  0xb3   :  { %5600 = shalt.err (!%p5597_p9)
}
  0xb4   :  { %126 = dma.hbm_to_vmem [thread:$0]  %s6662_s9, 16, %s124_s18, [#allocation22]  }
  0xb5   :  { %s5673_s1 = smov [#allocation26]   ;;  %s5674_s21 = smov [#allocation27]  }
  0xb6   :  { %s147_s19 = sshll.u32 %s5673_s1, 4  ;;  %s159_s25 = sshll.u32 %s5674_s21, 4  ;;  %s148_s19 = int_to_ptr.vmem [resolvable:$true] %s147_s19  ;;  %s160_s25 = int_to_ptr.vmem [resolvable:$true] %s159_s25 }
  0xb7   :  { %s5601_s10 = scalar_lea.hbm %s6665_s12, 16 }
  0xb8   :  { %p5602_p10 = scmp.ne.s32.totalorder %s6665_s12, %s5601_s10  ;;  %p5605_p11 = scmp.lt.u32.totalorder %s5601_s10, %s6665_s12 }
  0xba   :  { %p5607_p12 = pnand %p5605_p11, %p5602_p10 }
  0xbc   :  { %5610 = shalt.err (!%p5607_p12)
}
  0xbd   :  { %s5611_s9 = scalar_lea.vmem %s148_s19, 16  ;;  %s5615_s18 = scalar_lea.vmem %s148_s19, 32 }
  0xbe   :  { %p5612_p13 = scmp.ne.s32.totalorder %s148_s19, %s5611_s9  ;;  %p5616_p0 = scmp.lt.s32.totalorder %s148_s19, %s148_s19 }
  0xbf   :  { %p5617_p1 = scmp.lt.s32.totalorder %s5615_s18, %s5611_s9 }
  0xc1   :  { %p5618_p2 = por %p5617_p1, %p5616_p0 }
  0xc3   :  { %p5619_p3 = pnand %p5618_p2, %p5612_p13 }
  0xc5   :  { %5622 = shalt.err (!%p5619_p3)
}
  0xc6   :  { %150 = dma.hbm_to_vmem [thread:$0]  %s6665_s12, 16, %s148_s19, [#allocation25]  }
  0xc7   :  { %s5623_s28 = scalar_lea.hbm %s6667_s14, 16 }
  0xc8   :  { %p5624_p4 = scmp.ne.s32.totalorder %s6667_s14, %s5623_s28  ;;  %p5627_p5 = scmp.lt.u32.totalorder %s5623_s28, %s6667_s14 }
  0xca   :  { %p5629_p6 = pnand %p5627_p5, %p5624_p4 }
  0xcc   :  { %5632 = shalt.err (!%p5629_p6)
}
  0xcd   :  { %s5633_s7 = scalar_lea.vmem %s160_s25, 16  ;;  %s5637_s6 = scalar_lea.vmem %s160_s25, 32 }
  0xce   :  { %p5634_p7 = scmp.ne.s32.totalorder %s160_s25, %s5633_s7  ;;  %p5638_p8 = scmp.lt.s32.totalorder %s160_s25, %s160_s25 }
  0xcf   :  { %p5639_p9 = scmp.lt.s32.totalorder %s5637_s6, %s5633_s7 }
  0xd1   :  { %p5640_p10 = por %p5639_p9, %p5638_p8 }
  0xd3   :  { %p5641_p11 = pnand %p5640_p10, %p5634_p7 }
  0xd5   :  { %5644 = shalt.err (!%p5641_p11)
}
  0xd6   :  { %162 = dma.hbm_to_vmem [thread:$0]  %s6667_s14, 16, %s160_s25, [#allocation28]  }
  0xd7   :  { %5645 = dma.done.wait [#allocation11], 64  }
  0xd8   :  { %5646 = vsyncadd [#allocation11], 4294967232 }
  0xd9   :  { %5647 = dma.done.wait [#allocation13], 80  }
  0xda   :  { %5648 = vsyncadd [#allocation13], 4294967216 }
  0xdb   :  { %5649 = dma.done.wait [#allocation16], 1040  }
  0xdc   :  { %5650 = vsyncadd [#allocation16], 4294966256 }
  0xdd   :  { %5651 = dma.done.wait [#allocation19], 1040  }
  0xde   :  { %5652 = vsyncadd [#allocation19], 4294966256 }
  0xdf   :  { %5653 = dma.done.wait [#allocation22], 1040  }
  0xe0   :  { %5654 = vsyncadd [#allocation22], 4294966256 }
  0xe1   :  { %5655 = dma.done.wait [#allocation25], 1040  }
  0xe2   :  { %5656 = vsyncadd [#allocation25], 4294966256 }
  0xe3   :  { %5657 = dma.done.wait [#allocation28], 16  }
  0xe4   :  { %5658 = vsyncadd [#allocation28], 4294967280  ;;  %vm490_vm0 = vcmask 261120   ;;  %v5675_v0 = vmov 0.0   ;;  %vm249_vm1 = vcmask 1043456   ;;  %vm224_vm2 = vcmask 31744  }
  0xe5   :  { %491 = vst.msk [vmem:[#allocation8] sm:$0xff] %vm490_vm0, %v5675_v0  ;;  %492 = vst.msk [vmem:[#allocation8 + $0x8] sm:$0xff] %vm490_vm0, %v5675_v0  ;;  %v216_v1 = vld [vmem:[#allocation10] sm:$0xf]  ;;  %s6676_s21 = sld [smem:[#allocation36_spill]]  ;;  %v496_v4 = vld [vmem:[#allocation17 + $0x8] sm:$0xff] }
  0xe6   :  { %493 = vst.msk [vmem:[#allocation9] sm:$0xff] %vm490_vm0, %v5675_v0  ;;  %494 = vst.msk [vmem:[#allocation9 + $0x8] sm:$0xff] %vm490_vm0, %v5675_v0  ;;  %4677 = vmatprep.subr.msk.mxu0 %vm249_vm1, %v216_v1  ;;  %v498_v5 = vld [vmem:[#allocation17 + $0x18] sm:$0xff]  ;;  %v495_v6 = vld [vmem:[#allocation17] sm:$0xff]  ;;  %s5676_s26 = smov 32   ;;  %s5677_s3 = smov 64  }
  0xe7   :  { %4678 = vmatpush3.msk.msra.mxu0 %vm249_vm1, %v216_v1  ;;  %v5943_v7 = vpack.c.bf16 %v498_v5, %v496_v4  ;;  %v497_v8 = vld [vmem:[#allocation17 + $0x10] sm:$0xff]  ;;  %v358_v12 = vld [vmem:[#allocation14] sm:$0xf]  ;;  %v500_v13 = vld [vmem:[#allocation17 + $0x28] sm:$0xff]  ;;  %s5678_s24 = smov 96   ;;  %vm4117_vm3 = vcmask 523264  }
  0xe8   :  { %v5950_v10 = vpack.c.bf16 %v497_v8, %v495_v6  ;;  %v502_v14 = vld [vmem:[#allocation17 + $0x38] sm:$0xff]  ;;  %v499_v15 = vld [vmem:[#allocation17 + $0x20] sm:$0xff]  ;;  %4691 = vmatprep.subr.msk.mxu1 %vm249_vm1, %v358_v12  ;;  %v501_v18 = vld [vmem:[#allocation17 + $0x30] sm:$0xff] }
  0xe9   :  { %4874 = vmatprep.subr.bf16.mxu0 %v5943_v7  ;;  %v5962_v17 = vpack.c.bf16 %v502_v14, %v500_v13  ;;  %4692 = vmatpush3.msk.msra.mxu1 %vm249_vm1, %v358_v12  ;;  %v5965_v19 = vpack.c.bf16 %v501_v18, %v499_v15  ;;  %v4406_v26 = vld [vmem:[#allocation12] ss:$0 sm:$0xff]  ;;  %v4416_v30 = vld [vmem:[#allocation15] ss:$0 sm:$0xff] }
  0xea   :  { %4882 = vmatprep.subr.bf16.mxu1 %v5943_v7 }
  0xeb   :  { %v208_v2 = vld [vmem:[%s6676_s21] sm:$0xff]  ;;  %v209_v3 = vld [vmem:[%s6676_s21 + $0x8] sm:$0xff]  ;;  %v210_v9 = vld [vmem:[%s6676_s21 + $0x10] sm:$0xff] }
  0xec   :  { %4679 = vmatprep.mubr.msk.f32.mxu0 %vm224_vm2, %v208_v2  ;;  %4693 = vmatprep.mubr.msk.f32.mxu1 %vm224_vm2, %v208_v2  ;;  %v211_v11 = vld [vmem:[%s6676_s21 + $0x18] sm:$0xff]  ;;  %v212_v16 = vld [vmem:[%s6676_s21 + $0x20] sm:$0xff]  ;;  %v213_v21 = vld [vmem:[%s6676_s21 + $0x28] sm:$0xff] }
  0xed   :  { %4680 = vmatmul.mubr.msk.f32.vlgmr.msra.gmra.mrb[0].mxu0 %vm224_vm2, %v209_v3  ;;  %4694 = vmatmul.mubr.msk.f32.vlgmr.msra.gmra.mrb[0].mxu1 %vm224_vm2, %v209_v3  ;;  %v608_v20 = vld [vmem:[#allocation9] sm:$0xff]  ;;  %v215_v23 = vld [vmem:[%s6676_s21 + $0x38] sm:$0xff]  ;;  %v505_v24 = vld [vmem:[#allocation8] sm:$0xff] }
  0xee   :  { %4682 = vmatprep.mubr.msk.f32.mxu0 %vm224_vm2, %v210_v9  ;;  %4876 = vmatpush1.bf16.msra.mxu0 %v5950_v10  ;;  %v214_v22 = vld [vmem:[%s6676_s21 + $0x30] sm:$0xff]  ;;  %v506_v25 = vld [vmem:[#allocation8 + $0x8] sm:$0xff]  ;;  %v609_v5 = vld [vmem:[#allocation9 + $0x8] sm:$0xff] }
  0xef   :  { %4878 = vmatprep.subr.bf16.mxu0 %v5962_v17  ;;  %4696 = vmatprep.mubr.msk.f32.mxu1 %vm224_vm2, %v210_v9 }
  0xf0   :  { %612 = vrot.lane.b32.xlu1 %v608_v20, %s5676_s26  ;;  %4884 = vmatpush1.bf16.msra.mxu1 %v5950_v10 }
  0xf1   :  { %4683 = vmatmul.mubr.msk.f32.gmra.mrb[2].mxu0 %vm224_vm2, %v211_v11  ;;  %4697 = vmatmul.mubr.msk.f32.gmra.mrb[2].mxu1 %vm224_vm2, %v211_v11 }
  0xf2   :  { %4685 = vmatprep.mubr.msk.f32.mxu0 %vm224_vm2, %v212_v16  ;;  %4880 = vmatpush1.bf16.msra.mxu0 %v5965_v19 }
  0xf3   :  { %4699 = vmatprep.mubr.msk.f32.mxu1 %vm224_vm2, %v212_v16  ;;  %4890 = vmatprep.subr.bf16.mxu0 %v5943_v7 }
  0xf4   :  { %4886 = vmatprep.subr.bf16.mxu1 %v5962_v17 }
  0xf5   :  { %4686 = vmatmul.mubr.msk.f32.gmra.mrb[4].mxu0 %vm224_vm2, %v213_v21  ;;  %4700 = vmatmul.mubr.msk.f32.gmra.mrb[4].mxu1 %vm224_vm2, %v213_v21 }
  0xf6   :  { %4688 = vmatprep.mubr.msk.f32.mxu0 %vm224_vm2, %v214_v22  ;;  %4702 = vmatprep.mubr.msk.f32.mxu1 %vm224_vm2, %v214_v22 }
  0xf7   :  { %4888 = vmatpush1.bf16.msra.mxu1 %v5965_v19 }
  0xf8   :  { %4898 = vmatprep.subr.bf16.mxu1 %v5943_v7 }
  0xf9   :  { %4689 = vmatmul.mubr.msk.f32.gmra.mrb[6].mxu0 %vm224_vm2, %v215_v23  ;;  %4703 = vmatmul.mubr.msk.f32.gmra.mrb[6].mxu1 %vm224_vm2, %v215_v23 }
  0xfa   :  { %577 = vmatprep.mubr.f32.mxu0 %v5675_v0  ;;  %748 = vmatprep.mubr.f32.mxu1 %v5675_v0 }
  0xfd   :  { %4426 = vmatmul.mubr.msk.f32.vlgmr.msra.gmra.mrb[8].mxu0 %vm490_vm0, %v505_v24 }
  0xfe   :  { %583 = vmatprep.mubr.f32.mxu0 %v5675_v0  ;;  %4892 = vmatpush1.bf16.msra.mxu0 %v5950_v10 }
  0xff   :  { %4894 = vmatprep.subr.bf16.mxu0 %v5962_v17 }
 0x101   :  { %4427 = vmatmul.mubr.msk.f32.gmra.mrb[10].mxu0 %vm490_vm0, %v506_v25 }
 0x102   :  { %919 = vmatprep.mubr.f32.mxu0 %v5675_v0  ;;  %4896 = vmatpush1.bf16.msra.mxu0 %v5965_v19 }
 0x103   :  { %4906 = vmatprep.subr.bf16.mxu0 %v5943_v7 }
 0x162   :  { %v613_v22 = vpop.permute.xlu1 %612 }
 0x1c0   :  { %v4681_v27 = vpop.f32.mrb[0].mxu0  ;;  %v4695_v32 = vpop.f32.mrb[0].mxu1 }
 0x1c1   :  { %v6007_v28 = vadd.f32 %v4681_v27, %v4406_v26  ;;  %v319_v29 = vpop.f32.mrb[1].mxu0  ;;  %v6011_v35 = vadd.f32 %v4695_v32, %v4416_v30  ;;  %v435_v36 = vpop.f32.mrb[1].mxu1 }
 0x1c2   :  { %v6015_v38 = vadd.f32 %v4416_v30, %v435_v36  ;;  %v320_v55 = vadd.f32 %v4406_v26, %v319_v29 }
 0x1c4   :  { %v4684_v31 = vpop.f32.mrb[2].mxu0  ;;  %v4698_v40 = vpop.f32.mrb[2].mxu1 }
 0x1c5   :  { %v6009_v33 = vadd.f32 %v4684_v31, %v4406_v26  ;;  %v329_v34 = vpop.f32.mrb[3].mxu0  ;;  %v6019_v43 = vadd.f32 %v4698_v40, %v4416_v30  ;;  %v445_v44 = vpop.f32.mrb[3].mxu1 }
 0x1c6   :  { %v6013_v37 = vadd.f32 %v4406_v26, %v329_v34  ;;  %v6023_v46 = vadd.f32 %v4416_v30, %v445_v44 }
 0x1c8   :  { %v4687_v39 = vpop.f32.mrb[4].mxu0  ;;  %v4701_v48 = vpop.f32.mrb[4].mxu1 }
 0x1c9   :  { %v6017_v41 = vadd.f32 %v4687_v39, %v4406_v26  ;;  %v339_v42 = vpop.f32.mrb[5].mxu0  ;;  %v6027_v51 = vadd.f32 %v4701_v48, %v4416_v30  ;;  %v455_v52 = vpop.f32.mrb[5].mxu1 }
 0x1ca   :  { %v6021_v45 = vadd.f32 %v4406_v26, %v339_v42  ;;  %v6031_v54 = vadd.f32 %v4416_v30, %v455_v52 }
 0x1cc   :  { %v4690_v47 = vpop.f32.mrb[6].mxu0  ;;  %v4704_v57 = vpop.f32.mrb[6].mxu1 }
 0x1cd   :  { %v6025_v49 = vadd.f32 %v4690_v47, %v4406_v26  ;;  %v349_v50 = vpop.f32.mrb[7].mxu0  ;;  %v465_v60 = vpop.f32.mrb[7].mxu1  ;;  %v471_v61 = vadd.f32 %v4704_v57, %v4416_v30 }
 0x1ce   :  { %v6029_v53 = vadd.f32 %v4406_v26, %v349_v50  ;;  %v6033_v62 = vadd.f32 %v4416_v30, %v465_v60 }
 0x1d0   :  { %v579_v56 = vpop.f32.mrb[8].mxu0 }
 0x1d1   :  { %v592_v58 = vadd.f32 %v579_v56, %v320_v55  ;;  %v581_v59 = vpop.f32.mrb[9].mxu0 }
 0x1d3   :  { %5125 = vtanh.f32 %v592_v58  ;;  %v4428_v6 = vmul.f32 -1.442695, %v592_v58 }
 0x1d4   :  { %v585_v63 = vpop.f32.mrb[10].mxu0 }
 0x1d5   :  { %v587_v1 = vpop.f32.mrb[11].mxu0 }
 0x1d6   :  { %v593_v2 = vadd.f32 %v587_v1, %v471_v61 }
 0x1d8   :  { %5127 = vtanh.f32 %v593_v2  ;;  %v4429_v8 = vmul.f32 -1.442695, %v593_v2 }
 0x1d9   :  { %5129 = vpow2.f32 %v4428_v6 }
 0x1da   :  { %5131 = vpow2.f32 %v4429_v8 }
 0x1dd   :  { %v5126_v3 = vpop.eup %5125 }
 0x1de   :  { %622 = vrot.lane.b32.xlu0 %v5126_v3, %s5677_s3 }
 0x1e2   :  { %v5128_v4 = vpop.eup %5127 }
 0x1e3   :  { %624 = vrot.lane.b32.xlu0 %v5128_v4, %s5677_s3  ;;  %v5130_v9 = vpop.eup %5129 }
 0x1e4   :  { %v600_v11 = vadd.f32 1.0, %v5130_v9  ;;  %v5132_v12 = vpop.eup %5131 }
 0x1e5   :  { %v601_v13 = vadd.f32 1.0, %v5132_v12 }
 0x1e6   :  { %5133 = vrcp.f32 %v600_v11 }
 0x1e7   :  { %614 = vrot.lane.b32.xlu0 %v609_v5, %s5676_s26  ;;  %5135 = vrcp.f32 %v601_v13 }
 0x1f0   :  { %v5134_v14 = vpop.eup %5133 }
 0x1f1   :  { %v5136_v18 = vpop.eup %5135  ;;  %v618_v23 = vmul.f32 %v5134_v14, %v613_v22 }
 0x250   :  { %v623_v15 = vpop.permute.xlu0 %622 }
 0x251   :  { %v628_v16 = vmul.f32 %v5134_v14, %v623_v15 }
 0x253   :  { %632 = vrot.lane.b32.xlu1 %v628_v16, %s5676_s26 }
 0x255   :  { %v625_v20 = vpop.permute.xlu0 %624 }
 0x256   :  { %v629_v21 = vmul.f32 %v5136_v18, %v625_v20 }
 0x258   :  { %634 = vrot.lane.b32.xlu1 %v629_v21, %s5676_s26 }
 0x259   :  { %v615_v25 = vpop.permute.xlu0 %614 }
 0x25a   :  { %v619_v27 = vmul.f32 %v5136_v18, %v615_v25 }
 0x2c5   :  { %v633_v24 = vpop.permute.xlu1 %632 }
 0x2c6   :  { %v638_v26 = vadd.f32 %v633_v24, %v618_v23 }
 0x2c8   :  { %5137 = vtanh.f32 %v638_v26 }
 0x2ca   :  { %v635_v29 = vpop.permute.xlu1 %634 }
 0x2cb   :  { %v639_v30 = vadd.f32 %v635_v29, %v619_v27 }
 0x2cd   :  { %5139 = vtanh.f32 %v639_v30 }
 0x2d2   :  { %v5138_v31 = vpop.eup %5137 }
 0x2d3   :  { %644 = vrot.lane.b32.xlu0 %v5138_v31, %s5677_s3 }
 0x2d7   :  { %v5140_v32 = vpop.eup %5139 }
 0x2d8   :  { %646 = vrot.lane.b32.xlu1 %v5140_v32, %s5677_s3 }
 0x345   :  { %v645_v34 = vpop.permute.xlu0 %644 }
 0x346   :  { %v650_v36 = vmul.f32 %v5134_v14, %v645_v34 }
 0x348   :  { %664 = vrot.lane.b32.xlu0 %v650_v36, %s5676_s26 }
 0x34a   :  { %v647_v39 = vpop.permute.xlu1 %646 }
 0x34b   :  { %v651_v40 = vmul.f32 %v5136_v18, %v647_v39 }
 0x34c   :  { %654 = vrot.lane.b32.xlu0 %v638_v26, %s5678_s24 }
 0x34d   :  { %666 = vrot.lane.b32.xlu1 %v651_v40, %s5676_s26 }
 0x351   :  { %656 = vrot.lane.b32.xlu1 %v639_v30, %s5678_s24 }
 0x3ba   :  { %v665_v42 = vpop.permute.xlu0 %664 }
 0x3bb   :  { %670 = vst.msk [vmem:[#allocation8] sm:$0xff] %vm490_vm0, %v665_v42  ;;  %672 = vst.msk [vmem:[#allocation4] sm:$0xff] %vm490_vm0, %v665_v42 }
 0x3be   :  { %v655_v44 = vpop.permute.xlu0 %654 }
 0x3bf   :  { %660 = vst.msk [vmem:[#allocation9] sm:$0xff] %vm490_vm0, %v655_v44  ;;  %v667_v47 = vpop.permute.xlu1 %666 }
 0x3c0   :  { %671 = vst.msk [vmem:[#allocation8 + $0x8] sm:$0xff] %vm490_vm0, %v667_v47  ;;  %673 = vst.msk [vmem:[#allocation5 + $0x38] sm:$0xff] %vm490_vm0, %v667_v47 }
 0x3c2   :  { %v676_v48 = vld [vmem:[#allocation8] sm:$0xff] }
 0x3c3   :  { %v657_v50 = vpop.permute.xlu1 %656  ;;  %4430 = vmatmul.mubr.msk.f32.vlgmr.msra.gmra.mrb[8].mxu1 %vm490_vm0, %v676_v48 }
 0x3c4   :  { %661 = vst.msk [vmem:[#allocation9 + $0x8] sm:$0xff] %vm490_vm0, %v657_v50  ;;  %754 = vmatprep.mubr.f32.mxu1 %v5675_v0  ;;  %4900 = vmatpush1.bf16.msra.mxu1 %v5950_v10 }
 0x3c5   :  { %4902 = vmatprep.subr.bf16.mxu1 %v5962_v17 }
 0x3c6   :  { %v779_v63 = vld [vmem:[#allocation9] sm:$0xff] }
 0x3c7   :  { %v677_v52 = vld [vmem:[#allocation8 + $0x8] sm:$0xff] }
 0x3c8   :  { %4431 = vmatmul.mubr.msk.f32.gmra.mrb[10].mxu1 %vm490_vm0, %v677_v52 }
 0x3c9   :  { %4904 = vmatpush1.bf16.msra.mxu1 %v5965_v19  ;;  %1090 = vmatprep.mubr.f32.mxu1 %v5675_v0 }
 0x3ca   :  { %4914 = vmatprep.subr.bf16.mxu1 %v5943_v7 }
 0x3cb   :  { %v780_v2 = vld [vmem:[#allocation9 + $0x8] sm:$0xff] }
 0x496   :  { %v750_v55 = vpop.f32.mrb[8].mxu1 }
 0x497   :  { %v763_v56 = vadd.f32 %v750_v55, %v6007_v28  ;;  %v752_v57 = vpop.f32.mrb[9].mxu1 }
 0x499   :  { %5141 = vtanh.f32 %v763_v56  ;;  %v4432_v28 = vmul.f32 -1.442695, %v763_v56 }
 0x49b   :  { %v756_v58 = vpop.f32.mrb[10].mxu1 }
 0x49c   :  { %v758_v59 = vpop.f32.mrb[11].mxu1 }
 0x49d   :  { %v764_v60 = vadd.f32 %v758_v59, %v6033_v62 }
 0x49f   :  { %5143 = vtanh.f32 %v764_v60  ;;  %v4433_v3 = vmul.f32 -1.442695, %v764_v60 }
 0x4a0   :  { %5145 = vpow2.f32 %v4432_v28 }
 0x4a1   :  { %5147 = vpow2.f32 %v4433_v3 }
 0x4a3   :  { %v5142_v61 = vpop.eup %5141 }
 0x4a4   :  { %793 = vrot.lane.b32.xlu0 %v5142_v61, %s5677_s3 }
 0x4a8   :  { %783 = vrot.lane.b32.xlu0 %v779_v63, %s5676_s26 }
 0x4a9   :  { %v5144_v1 = vpop.eup %5143 }
 0x4aa   :  { %795 = vrot.lane.b32.xlu1 %v5144_v1, %s5677_s3  ;;  %v5146_v4 = vpop.eup %5145 }
 0x4ab   :  { %v771_v5 = vadd.f32 1.0, %v5146_v4  ;;  %v5148_v62 = vpop.eup %5147 }
 0x4ac   :  { %785 = vrot.lane.b32.xlu0 %v780_v2, %s5676_s26  ;;  %v772_v6 = vadd.f32 1.0, %v5148_v62 }
 0x4ad   :  { %5149 = vrcp.f32 %v771_v5 }
 0x4ae   :  { %5151 = vrcp.f32 %v772_v6 }
 0x4b7   :  { %v5150_v8 = vpop.eup %5149 }
 0x4b8   :  { %v5152_v12 = vpop.eup %5151 }
 0x516   :  { %v794_v9 = vpop.permute.xlu0 %793 }
 0x517   :  { %v799_v11 = vmul.f32 %v5150_v8, %v794_v9 }
 0x519   :  { %803 = vrot.lane.b32.xlu1 %v799_v11, %s5676_s26 }
 0x51a   :  { %v784_v15 = vpop.permute.xlu0 %783 }
 0x51b   :  { %v789_v16 = vmul.f32 %v5150_v8, %v784_v15 }
 0x51c   :  { %v796_v13 = vpop.permute.xlu1 %795 }
 0x51d   :  { %v800_v14 = vmul.f32 %v5152_v12, %v796_v13 }
 0x51e   :  { %v786_v21 = vpop.permute.xlu0 %785 }
 0x51f   :  { %805 = vrot.lane.b32.xlu1 %v800_v14, %s5676_s26  ;;  %v790_v22 = vmul.f32 %v5152_v12, %v786_v21 }
 0x58b   :  { %v804_v18 = vpop.permute.xlu1 %803 }
 0x58c   :  { %v809_v20 = vadd.f32 %v804_v18, %v789_v16 }
 0x58e   :  { %5153 = vtanh.f32 %v809_v20 }
 0x591   :  { %v806_v23 = vpop.permute.xlu1 %805 }
 0x592   :  { %v810_v24 = vadd.f32 %v806_v23, %v790_v22 }
 0x594   :  { %5155 = vtanh.f32 %v810_v24 }
 0x598   :  { %v5154_v25 = vpop.eup %5153 }
 0x599   :  { %815 = vrot.lane.b32.xlu0 %v5154_v25, %s5677_s3 }
 0x59e   :  { %v5156_v26 = vpop.eup %5155 }
 0x59f   :  { %817 = vrot.lane.b32.xlu1 %v5156_v26, %s5677_s3 }
 0x60b   :  { %v816_v27 = vpop.permute.xlu0 %815 }
 0x60c   :  { %v821_v29 = vmul.f32 %v5150_v8, %v816_v27 }
 0x60e   :  { %835 = vrot.lane.b32.xlu0 %v821_v29, %s5676_s26 }
 0x611   :  { %v818_v30 = vpop.permute.xlu1 %817 }
 0x612   :  { %v822_v31 = vmul.f32 %v5152_v12, %v818_v30  ;;  %825 = vrot.lane.b32.xlu0 %v809_v20, %s5678_s24 }
 0x614   :  { %837 = vrot.lane.b32.xlu1 %v822_v31, %s5676_s26 }
 0x618   :  { %827 = vrot.lane.b32.xlu1 %v810_v24, %s5678_s24 }
 0x680   :  { %v836_v32 = vpop.permute.xlu0 %835 }
 0x681   :  { %841 = vst.msk [vmem:[#allocation8] sm:$0xff] %vm490_vm0, %v836_v32  ;;  %843 = vst.msk [vmem:[#allocation4 + $0x8] sm:$0xff] %vm490_vm0, %v836_v32 }
 0x684   :  { %v826_v34 = vpop.permute.xlu0 %825 }
 0x685   :  { %831 = vst.msk [vmem:[#allocation9] sm:$0xff] %vm490_vm0, %v826_v34 }
 0x686   :  { %v838_v36 = vpop.permute.xlu1 %837 }
 0x687   :  { %842 = vst.msk [vmem:[#allocation8 + $0x8] sm:$0xff] %vm490_vm0, %v838_v36  ;;  %844 = vst.msk [vmem:[#allocation5 + $0x30] sm:$0xff] %vm490_vm0, %v838_v36 }
 0x688   :  { %v847_v39 = vld [vmem:[#allocation8] sm:$0xff] }
 0x689   :  { %4434 = vmatmul.mubr.msk.f32.vlgmr.msra.gmra.mrb[12].mxu0 %vm490_vm0, %v847_v39 }
 0x68a   :  { %v828_v40 = vpop.permute.xlu1 %827  ;;  %925 = vmatprep.mubr.f32.mxu0 %v5675_v0  ;;  %4908 = vmatpush1.bf16.msra.mxu0 %v5950_v10 }
 0x68b   :  { %832 = vst.msk [vmem:[#allocation9 + $0x8] sm:$0xff] %vm490_vm0, %v828_v40  ;;  %4910 = vmatprep.subr.bf16.mxu0 %v5962_v17 }
 0x68c   :  { %v950_v57 = vld [vmem:[#allocation9] sm:$0xff] }
 0x68e   :  { %v848_v42 = vld [vmem:[#allocation8 + $0x8] sm:$0xff]  ;;  %4912 = vmatpush1.bf16.msra.mxu0 %v5965_v19 }
 0x68f   :  { %4435 = vmatmul.mubr.msk.f32.gmra.mrb[14].mxu0 %vm490_vm0, %v848_v42  ;;  %4922 = vmatprep.subr.bf16.mxu0 %v5943_v7 }
 0x690   :  { %1261 = vmatprep.mubr.f32.mxu0 %v5675_v0 }
 0x692   :  { %v951_v59 = vld [vmem:[#allocation9 + $0x8] sm:$0xff] }
 0x75c   :  { %v921_v44 = vpop.f32.mrb[12].mxu0 }
 0x75d   :  { %v934_v47 = vadd.f32 %v921_v44, %v6013_v37  ;;  %v923_v48 = vpop.f32.mrb[13].mxu0 }
 0x75f   :  { %5157 = vtanh.f32 %v934_v47  ;;  %v4436_v37 = vmul.f32 -1.442695, %v934_v47 }
 0x762   :  { %v927_v50 = vpop.f32.mrb[14].mxu0 }
 0x763   :  { %v929_v52 = vpop.f32.mrb[15].mxu0 }
 0x764   :  { %v935_v55 = vadd.f32 %v929_v52, %v6027_v51 }
 0x766   :  { %5159 = vtanh.f32 %v935_v55  ;;  %v4437_v60 = vmul.f32 -1.442695, %v935_v55 }
 0x767   :  { %5161 = vpow2.f32 %v4436_v37 }
 0x768   :  { %5163 = vpow2.f32 %v4437_v60 }
 0x769   :  { %v5158_v56 = vpop.eup %5157 }
 0x76a   :  { %964 = vrot.lane.b32.xlu0 %v5158_v56, %s5677_s3 }
 0x76e   :  { %954 = vrot.lane.b32.xlu0 %v950_v57, %s5676_s26 }
 0x770   :  { %v5160_v58 = vpop.eup %5159 }
 0x771   :  { %966 = vrot.lane.b32.xlu1 %v5160_v58, %s5677_s3  ;;  %v5162_v61 = vpop.eup %5161 }
 0x772   :  { %956 = vrot.lane.b32.xlu0 %v951_v59, %s5676_s26  ;;  %v942_v63 = vadd.f32 1.0, %v5162_v61  ;;  %v5164_v51 = vpop.eup %5163 }
 0x773   :  { %v943_v1 = vadd.f32 1.0, %v5164_v51 }
 0x774   :  { %5165 = vrcp.f32 %v942_v63 }
 0x775   :  { %5167 = vrcp.f32 %v943_v1 }
 0x77e   :  { %v5166_v2 = vpop.eup %5165 }
 0x77f   :  { %v5168_v4 = vpop.eup %5167 }
 0x7dc   :  { %v965_v28 = vpop.permute.xlu0 %964 }
 0x7dd   :  { %v970_v3 = vmul.f32 %v5166_v2, %v965_v28 }
 0x7df   :  { %974 = vrot.lane.b32.xlu1 %v970_v3, %s5676_s26 }
 0x7e0   :  { %v955_v6 = vpop.permute.xlu0 %954 }
 0x7e1   :  { %v960_v8 = vmul.f32 %v5166_v2, %v955_v6 }
 0x7e3   :  { %v967_v5 = vpop.permute.xlu1 %966 }
 0x7e4   :  { %v971_v62 = vmul.f32 %v5168_v4, %v967_v5  ;;  %v957_v12 = vpop.permute.xlu0 %956 }
 0x7e5   :  { %v961_v13 = vmul.f32 %v5168_v4, %v957_v12 }
 0x7e6   :  { %976 = vrot.lane.b32.xlu1 %v971_v62, %s5676_s26 }
 0x851   :  { %v975_v9 = vpop.permute.xlu1 %974 }
 0x852   :  { %v980_v11 = vadd.f32 %v975_v9, %v960_v8 }
 0x854   :  { %5169 = vtanh.f32 %v980_v11 }
 0x858   :  { %v977_v14 = vpop.permute.xlu1 %976 }
 0x859   :  { %v981_v15 = vadd.f32 %v977_v14, %v961_v13 }
 0x85b   :  { %5171 = vtanh.f32 %v981_v15 }
 0x85e   :  { %v5170_v16 = vpop.eup %5169 }
 0x85f   :  { %986 = vrot.lane.b32.xlu0 %v5170_v16, %s5677_s3 }
 0x865   :  { %v5172_v18 = vpop.eup %5171 }
 0x866   :  { %988 = vrot.lane.b32.xlu1 %v5172_v18, %s5677_s3 }
 0x8d1   :  { %v987_v20 = vpop.permute.xlu0 %986 }
 0x8d2   :  { %v992_v21 = vmul.f32 %v5166_v2, %v987_v20 }
 0x8d4   :  { %1006 = vrot.lane.b32.xlu0 %v992_v21, %s5676_s26 }
 0x8d8   :  { %v989_v22 = vpop.permute.xlu1 %988  ;;  %996 = vrot.lane.b32.xlu0 %v980_v11, %s5678_s24 }
 0x8d9   :  { %v993_v23 = vmul.f32 %v5168_v4, %v989_v22 }
 0x8db   :  { %1008 = vrot.lane.b32.xlu1 %v993_v23, %s5676_s26 }
 0x8df   :  { %998 = vrot.lane.b32.xlu1 %v981_v15, %s5678_s24 }
 0x946   :  { %v1007_v24 = vpop.permute.xlu0 %1006 }
 0x947   :  { %1012 = vst.msk [vmem:[#allocation8] sm:$0xff] %vm490_vm0, %v1007_v24  ;;  %1014 = vst.msk [vmem:[#allocation4 + $0x10] sm:$0xff] %vm490_vm0, %v1007_v24 }
 0x94a   :  { %v997_v25 = vpop.permute.xlu0 %996 }
 0x94b   :  { %1002 = vst.msk [vmem:[#allocation9] sm:$0xff] %vm490_vm0, %v997_v25 }
 0x94d   :  { %v1009_v26 = vpop.permute.xlu1 %1008 }
 0x94e   :  { %1013 = vst.msk [vmem:[#allocation8 + $0x8] sm:$0xff] %vm490_vm0, %v1009_v26  ;;  %1015 = vst.msk [vmem:[#allocation5 + $0x28] sm:$0xff] %vm490_vm0, %v1009_v26  ;;  %v1018_v27 = vld [vmem:[#allocation8] sm:$0xff] }
 0x94f   :  { %4438 = vmatmul.mubr.msk.f32.vlgmr.msra.gmra.mrb[12].mxu1 %vm490_vm0, %v1018_v27 }
 0x950   :  { %1096 = vmatprep.mubr.f32.mxu1 %v5675_v0  ;;  %4916 = vmatpush1.bf16.msra.mxu1 %v5950_v10 }
 0x951   :  { %v999_v29 = vpop.permute.xlu1 %998  ;;  %4918 = vmatprep.subr.bf16.mxu1 %v5962_v17 }
 0x952   :  { %1003 = vst.msk [vmem:[#allocation9 + $0x8] sm:$0xff] %vm490_vm0, %v999_v29  ;;  %v1121_v44 = vld [vmem:[#allocation9] sm:$0xff] }
 0x954   :  { %4920 = vmatpush1.bf16.msra.mxu1 %v5965_v19 }
 0x955   :  { %v1019_v30 = vld [vmem:[#allocation8 + $0x8] sm:$0xff]  ;;  %4930 = vmatprep.subr.bf16.mxu1 %v5943_v7 }
 0x956   :  { %4439 = vmatmul.mubr.msk.f32.gmra.mrb[14].mxu1 %vm490_vm0, %v1019_v30 }
 0x957   :  { %1432 = vmatprep.mubr.f32.mxu1 %v5675_v0 }
 0x959   :  { %v1122_v47 = vld [vmem:[#allocation9 + $0x8] sm:$0xff] }
 0xa22   :  { %v1092_v31 = vpop.f32.mrb[12].mxu1 }
 0xa23   :  { %v1105_v32 = vadd.f32 %v1092_v31, %v6009_v33  ;;  %v1094_v34 = vpop.f32.mrb[13].mxu1 }
 0xa25   :  { %5173 = vtanh.f32 %v1105_v32  ;;  %v4440_v33 = vmul.f32 -1.442695, %v1105_v32 }
 0xa29   :  { %v1098_v36 = vpop.f32.mrb[14].mxu1 }
 0xa2a   :  { %v1100_v39 = vpop.f32.mrb[15].mxu1 }
 0xa2b   :  { %v1106_v40 = vadd.f32 %v1100_v39, %v6031_v54 }
 0xa2d   :  { %5175 = vtanh.f32 %v1106_v40  ;;  %v4441_v48 = vmul.f32 -1.442695, %v1106_v40 }
 0xa2e   :  { %5177 = vpow2.f32 %v4440_v33 }
 0xa2f   :  { %v5174_v42 = vpop.eup %5173  ;;  %5179 = vpow2.f32 %v4441_v48 }
 0xa30   :  { %1135 = vrot.lane.b32.xlu0 %v5174_v42, %s5677_s3 }
 0xa34   :  { %1125 = vrot.lane.b32.xlu0 %v1121_v44, %s5676_s26 }
 0xa37   :  { %v5176_v7 = vpop.eup %5175 }
 0xa38   :  { %1137 = vrot.lane.b32.xlu1 %v5176_v7, %s5677_s3  ;;  %1127 = vrot.lane.b32.xlu0 %v1122_v47, %s5676_s26  ;;  %v5178_v50 = vpop.eup %5177 }
 0xa39   :  { %v1113_v52 = vadd.f32 1.0, %v5178_v50  ;;  %v5180_v54 = vpop.eup %5179 }
 0xa3a   :  { %v1114_v55 = vadd.f32 1.0, %v5180_v54 }
 0xa3b   :  { %5181 = vrcp.f32 %v1113_v52 }
 0xa3c   :  { %5183 = vrcp.f32 %v1114_v55 }
 0xa45   :  { %v5182_v56 = vpop.eup %5181 }
 0xa46   :  { %v5184_v59 = vpop.eup %5183 }
 0xaa2   :  { %v1136_v57 = vpop.permute.xlu0 %1135 }
 0xaa3   :  { %v1141_v58 = vmul.f32 %v5182_v56, %v1136_v57 }
 0xaa5   :  { %1145 = vrot.lane.b32.xlu1 %v1141_v58, %s5676_s26 }
 0xaa6   :  { %v1126_v61 = vpop.permute.xlu0 %1125 }
 0xaa7   :  { %v1131_v63 = vmul.f32 %v5182_v56, %v1126_v61 }
 0xaaa   :  { %v1138_v37 = vpop.permute.xlu1 %1137  ;;  %v1128_v2 = vpop.permute.xlu0 %1127 }
 0xaab   :  { %v1142_v60 = vmul.f32 %v5184_v59, %v1138_v37  ;;  %v1132_v28 = vmul.f32 %v5184_v59, %v1128_v2 }
 0xaad   :  { %1147 = vrot.lane.b32.xlu1 %v1142_v60, %s5676_s26 }
 0xb17   :  { %v1146_v51 = vpop.permute.xlu1 %1145 }
 0xb18   :  { %v1151_v1 = vadd.f32 %v1146_v51, %v1131_v63 }
 0xb1a   :  { %5185 = vtanh.f32 %v1151_v1 }
 0xb1f   :  { %v1148_v3 = vpop.permute.xlu1 %1147 }
 0xb20   :  { %v1152_v4 = vadd.f32 %v1148_v3, %v1132_v28 }
 0xb22   :  { %5187 = vtanh.f32 %v1152_v4 }
 0xb24   :  { %v5186_v5 = vpop.eup %5185 }
 0xb25   :  { %1157 = vrot.lane.b32.xlu0 %v5186_v5, %s5677_s3 }
 0xb2c   :  { %v5188_v62 = vpop.eup %5187 }
 0xb2d   :  { %1159 = vrot.lane.b32.xlu1 %v5188_v62, %s5677_s3 }
 0xb97   :  { %v1158_v6 = vpop.permute.xlu0 %1157 }
 0xb98   :  { %v1163_v8 = vmul.f32 %v5182_v56, %v1158_v6 }
 0xb9a   :  { %1177 = vrot.lane.b32.xlu0 %v1163_v8, %s5676_s26 }
 0xb9e   :  { %1167 = vrot.lane.b32.xlu0 %v1151_v1, %s5678_s24 }
 0xb9f   :  { %v1160_v9 = vpop.permute.xlu1 %1159 }
 0xba0   :  { %v1164_v11 = vmul.f32 %v5184_v59, %v1160_v9 }
 0xba2   :  { %1179 = vrot.lane.b32.xlu1 %v1164_v11, %s5676_s26 }
 0xba6   :  { %1169 = vrot.lane.b32.xlu1 %v1152_v4, %s5678_s24 }
 0xc0c   :  { %v1178_v12 = vpop.permute.xlu0 %1177 }
 0xc0d   :  { %1183 = vst.msk [vmem:[#allocation8] sm:$0xff] %vm490_vm0, %v1178_v12  ;;  %1185 = vst.msk [vmem:[#allocation4 + $0x18] sm:$0xff] %vm490_vm0, %v1178_v12 }
 0xc10   :  { %v1168_v13 = vpop.permute.xlu0 %1167 }
 0xc11   :  { %1173 = vst.msk [vmem:[#allocation9] sm:$0xff] %vm490_vm0, %v1168_v13 }
 0xc14   :  { %v1180_v14 = vpop.permute.xlu1 %1179  ;;  %v1189_v15 = vld [vmem:[#allocation8] sm:$0xff] }
 0xc15   :  { %1184 = vst.msk [vmem:[#allocation8 + $0x8] sm:$0xff] %vm490_vm0, %v1180_v14  ;;  %1186 = vst.msk [vmem:[#allocation5 + $0x20] sm:$0xff] %vm490_vm0, %v1180_v14  ;;  %4442 = vmatmul.mubr.msk.f32.vlgmr.msra.gmra.mrb[16].mxu0 %vm490_vm0, %v1189_v15 }
 0xc16   :  { %1267 = vmatprep.mubr.f32.mxu0 %v5675_v0  ;;  %4924 = vmatpush1.bf16.msra.mxu0 %v5950_v10 }
 0xc17   :  { %4926 = vmatprep.subr.bf16.mxu0 %v5962_v17 }
 0xc18   :  { %v1170_v16 = vpop.permute.xlu1 %1169  ;;  %v1292_v27 = vld [vmem:[#allocation9] sm:$0xff] }
 0xc19   :  { %1174 = vst.msk [vmem:[#allocation9 + $0x8] sm:$0xff] %vm490_vm0, %v1170_v16 }
 0xc1a   :  { %4928 = vmatpush1.bf16.msra.mxu0 %v5965_v19 }
 0xc1c   :  { %v1190_v18 = vld [vmem:[#allocation8 + $0x8] sm:$0xff] }
 0xc1d   :  { %4443 = vmatmul.mubr.msk.f32.gmra.mrb[18].mxu0 %vm490_vm0, %v1190_v18 }
 0xc1e   :  { %1603 = vmatprep.mubr.f32.mxu0 %v5675_v0 }
 0xc20   :  { %v1293_v29 = vld [vmem:[#allocation9 + $0x8] sm:$0xff] }
 0xce8   :  { %v1263_v20 = vpop.f32.mrb[16].mxu0 }
 0xce9   :  { %v1276_v21 = vadd.f32 %v1263_v20, %v6021_v45  ;;  %v1265_v22 = vpop.f32.mrb[17].mxu0 }
 0xceb   :  { %5189 = vtanh.f32 %v1276_v21  ;;  %v4444_v45 = vmul.f32 -1.442695, %v1276_v21 }
 0xcf0   :  { %v1269_v23 = vpop.f32.mrb[18].mxu0 }
 0xcf1   :  { %v1271_v24 = vpop.f32.mrb[19].mxu0 }
 0xcf2   :  { %v1277_v25 = vadd.f32 %v1271_v24, %v6019_v43 }
 0xcf4   :  { %5191 = vtanh.f32 %v1277_v25  ;;  %v4445_v31 = vmul.f32 -1.442695, %v1277_v25 }
 0xcf5   :  { %v5190_v26 = vpop.eup %5189  ;;  %5193 = vpow2.f32 %v4444_v45 }
 0xcf6   :  { %1306 = vrot.lane.b32.xlu0 %v5190_v26, %s5677_s3  ;;  %5195 = vpow2.f32 %v4445_v31 }
 0xcfa   :  { %1296 = vrot.lane.b32.xlu0 %v1292_v27, %s5676_s26 }
 0xcfe   :  { %v5192_v30 = vpop.eup %5191  ;;  %1298 = vrot.lane.b32.xlu0 %v1293_v29, %s5676_s26 }
 0xcff   :  { %1308 = vrot.lane.b32.xlu1 %v5192_v30, %s5677_s3  ;;  %v5194_v32 = vpop.eup %5193 }
 0xd00   :  { %v1284_v34 = vadd.f32 1.0, %v5194_v32  ;;  %v5196_v43 = vpop.eup %5195 }
 0xd01   :  { %v1285_v36 = vadd.f32 1.0, %v5196_v43 }
 0xd02   :  { %5197 = vrcp.f32 %v1284_v34 }
 0xd03   :  { %5199 = vrcp.f32 %v1285_v36 }
 0xd0c   :  { %v5198_v39 = vpop.eup %5197 }
 0xd0d   :  { %v5200_v44 = vpop.eup %5199 }
 0xd68   :  { %v1307_v40 = vpop.permute.xlu0 %1306 }
 0xd69   :  { %v1312_v42 = vmul.f32 %v5198_v39, %v1307_v40 }
 0xd6b   :  { %1316 = vrot.lane.b32.xlu1 %v1312_v42, %s5676_s26 }
 0xd6c   :  { %v1297_v33 = vpop.permute.xlu0 %1296 }
 0xd6d   :  { %v1302_v48 = vmul.f32 %v5198_v39, %v1297_v33 }
 0xd70   :  { %v1299_v54 = vpop.permute.xlu0 %1298 }
 0xd71   :  { %v1309_v7 = vpop.permute.xlu1 %1308  ;;  %v1303_v55 = vmul.f32 %v5200_v44, %v1299_v54 }
 0xd72   :  { %v1313_v47 = vmul.f32 %v5200_v44, %v1309_v7 }
 0xd74   :  { %1318 = vrot.lane.b32.xlu1 %v1313_v47, %s5676_s26 }
 0xddd   :  { %v1317_v50 = vpop.permute.xlu1 %1316 }
 0xdde   :  { %v1322_v52 = vadd.f32 %v1317_v50, %v1302_v48 }
 0xde0   :  { %5201 = vtanh.f32 %v1322_v52 }
 0xde6   :  { %v1319_v56 = vpop.permute.xlu1 %1318 }
 0xde7   :  { %v1323_v57 = vadd.f32 %v1319_v56, %v1303_v55 }
 0xde9   :  { %5203 = vtanh.f32 %v1323_v57 }
 0xdea   :  { %v5202_v58 = vpop.eup %5201 }
 0xdeb   :  { %1328 = vrot.lane.b32.xlu0 %v5202_v58, %s5677_s3 }
 0xdf3   :  { %v5204_v59 = vpop.eup %5203 }
 0xdf4   :  { %1330 = vrot.lane.b32.xlu1 %v5204_v59, %s5677_s3 }
 0xe5d   :  { %v1329_v37 = vpop.permute.xlu0 %1328 }
 0xe5e   :  { %v1334_v60 = vmul.f32 %v5198_v39, %v1329_v37 }
 0xe60   :  { %1348 = vrot.lane.b32.xlu0 %v1334_v60, %s5676_s26 }
 0xe64   :  { %1338 = vrot.lane.b32.xlu0 %v1322_v52, %s5678_s24 }
 0xe66   :  { %v1331_v61 = vpop.permute.xlu1 %1330 }
 0xe67   :  { %v1335_v63 = vmul.f32 %v5200_v44, %v1331_v61 }
 0xe69   :  { %1350 = vrot.lane.b32.xlu1 %v1335_v63, %s5676_s26 }
 0xe6d   :  { %1340 = vrot.lane.b32.xlu1 %v1323_v57, %s5678_s24 }
 0xed2   :  { %v1349_v51 = vpop.permute.xlu0 %1348 }
 0xed3   :  { %1354 = vst.msk [vmem:[#allocation8] sm:$0xff] %vm490_vm0, %v1349_v51  ;;  %1356 = vst.msk [vmem:[#allocation4 + $0x20] sm:$0xff] %vm490_vm0, %v1349_v51 }
 0xed6   :  { %v1339_v1 = vpop.permute.xlu0 %1338 }
 0xed7   :  { %1344 = vst.msk [vmem:[#allocation9] sm:$0xff] %vm490_vm0, %v1339_v1 }
 0xeda   :  { %v1360_v2 = vld [vmem:[#allocation8] sm:$0xff] }
 0xedb   :  { %v1351_v28 = vpop.permute.xlu1 %1350  ;;  %4446 = vmatmul.mubr.msk.f32.vlgmr.msra.gmra.mrb[16].mxu1 %vm490_vm0, %v1360_v2 }
 0xedc   :  { %1355 = vst.msk [vmem:[#allocation8 + $0x8] sm:$0xff] %vm490_vm0, %v1351_v28  ;;  %1357 = vst.msk [vmem:[#allocation5 + $0x18] sm:$0xff] %vm490_vm0, %v1351_v28  ;;  %1438 = vmatprep.mubr.f32.mxu1 %v5675_v0  ;;  %4932 = vmatpush1.bf16.msra.mxu1 %v5950_v10 }
 0xedd   :  { %4934 = vmatprep.subr.bf16.mxu1 %v5962_v17 }
 0xede   :  { %v1463_v11 = vld [vmem:[#allocation9] sm:$0xff] }
 0xedf   :  { %v1341_v3 = vpop.permute.xlu1 %1340 }
 0xee0   :  { %1345 = vst.msk [vmem:[#allocation9 + $0x8] sm:$0xff] %vm490_vm0, %v1341_v3  ;;  %4936 = vmatpush1.bf16.msra.mxu1 %v5965_v19 }
 0xee3   :  { %v1361_v4 = vld [vmem:[#allocation8 + $0x8] sm:$0xff] }
 0xee4   :  { %4447 = vmatmul.mubr.msk.f32.gmra.mrb[18].mxu1 %vm490_vm0, %v1361_v4 }
 0xee5   :  { %1774 = vmatprep.mubr.f32.mxu1 %v5675_v0 }
 0xee7   :  { %v1464_v19 = vld [vmem:[#allocation9 + $0x8] sm:$0xff] }
 0xfae   :  { %v1434_v5 = vpop.f32.mrb[16].mxu1 }
 0xfaf   :  { %v1447_v62 = vadd.f32 %v1434_v5, %v6017_v41  ;;  %v1436_v6 = vpop.f32.mrb[17].mxu1 }
 0xfb1   :  { %5205 = vtanh.f32 %v1447_v62  ;;  %v4448_v41 = vmul.f32 -1.442695, %v1447_v62 }
 0xfb7   :  { %v1440_v8 = vpop.f32.mrb[18].mxu1 }
 0xfb8   :  { %v1442_v9 = vpop.f32.mrb[19].mxu1 }
 0xfb9   :  { %v1448_v10 = vadd.f32 %v1442_v9, %v6023_v46 }
 0xfbb   :  { %v5206_v17 = vpop.eup %5205  ;;  %5207 = vtanh.f32 %v1448_v10  ;;  %v4449_v13 = vmul.f32 -1.442695, %v1448_v10 }
 0xfbc   :  { %1477 = vrot.lane.b32.xlu0 %v5206_v17, %s5677_s3  ;;  %5209 = vpow2.f32 %v4448_v41 }
 0xfbd   :  { %5211 = vpow2.f32 %v4449_v13 }
 0xfc0   :  { %1467 = vrot.lane.b32.xlu0 %v1463_v11, %s5676_s26 }
 0xfc4   :  { %1469 = vrot.lane.b32.xlu0 %v1464_v19, %s5676_s26 }
 0xfc5   :  { %v5208_v12 = vpop.eup %5207 }
 0xfc6   :  { %1479 = vrot.lane.b32.xlu1 %v5208_v12, %s5677_s3  ;;  %v5210_v14 = vpop.eup %5209 }
 0xfc7   :  { %v1455_v15 = vadd.f32 1.0, %v5210_v14  ;;  %v5212_v46 = vpop.eup %5211 }
 0xfc8   :  { %v1456_v16 = vadd.f32 1.0, %v5212_v46 }
 0xfc9   :  { %5213 = vrcp.f32 %v1455_v15 }
 0xfca   :  { %5215 = vrcp.f32 %v1456_v16 }
 0xfd3   :  { %v5214_v18 = vpop.eup %5213 }
 0xfd4   :  { %v5216_v22 = vpop.eup %5215 }
0x102e   :  { %v1478_v20 = vpop.permute.xlu0 %1477 }
0x102f   :  { %v1483_v21 = vmul.f32 %v5214_v18, %v1478_v20 }
0x1031   :  { %1487 = vrot.lane.b32.xlu1 %v1483_v21, %s5676_s26 }
0x1032   :  { %v1468_v25 = vpop.permute.xlu0 %1467 }
0x1033   :  { %v1473_v26 = vmul.f32 %v5214_v18, %v1468_v25 }
0x1036   :  { %v1470_v30 = vpop.permute.xlu0 %1469 }
0x1037   :  { %v1474_v45 = vmul.f32 %v5216_v22, %v1470_v30 }
0x1038   :  { %v1480_v23 = vpop.permute.xlu1 %1479 }
0x1039   :  { %v1484_v24 = vmul.f32 %v5216_v22, %v1480_v23 }
0x103b   :  { %1489 = vrot.lane.b32.xlu1 %v1484_v24, %s5676_s26 }
0x10a3   :  { %v1488_v27 = vpop.permute.xlu1 %1487 }
0x10a4   :  { %v1493_v29 = vadd.f32 %v1488_v27, %v1473_v26 }
0x10a6   :  { %5217 = vtanh.f32 %v1493_v29 }
0x10ad   :  { %v1490_v31 = vpop.permute.xlu1 %1489 }
0x10ae   :  { %v1494_v32 = vadd.f32 %v1490_v31, %v1474_v45 }
0x10b0   :  { %v5218_v34 = vpop.eup %5217  ;;  %5219 = vtanh.f32 %v1494_v32 }
0x10b1   :  { %1499 = vrot.lane.b32.xlu0 %v5218_v34, %s5677_s3 }
0x10ba   :  { %v5220_v43 = vpop.eup %5219 }
0x10bb   :  { %1501 = vrot.lane.b32.xlu1 %v5220_v43, %s5677_s3 }
0x1123   :  { %v1500_v36 = vpop.permute.xlu0 %1499 }
0x1124   :  { %v1505_v39 = vmul.f32 %v5214_v18, %v1500_v36 }
0x1126   :  { %1519 = vrot.lane.b32.xlu0 %v1505_v39, %s5676_s26 }
0x112a   :  { %1509 = vrot.lane.b32.xlu0 %v1493_v29, %s5678_s24 }
0x112d   :  { %v1502_v40 = vpop.permute.xlu1 %1501 }
0x112e   :  { %v1506_v42 = vmul.f32 %v5216_v22, %v1502_v40 }
0x1130   :  { %1521 = vrot.lane.b32.xlu1 %v1506_v42, %s5676_s26 }
0x1134   :  { %1511 = vrot.lane.b32.xlu1 %v1494_v32, %s5678_s24 }
0x1198   :  { %v1520_v44 = vpop.permute.xlu0 %1519 }
0x1199   :  { %1525 = vst.msk [vmem:[#allocation8] sm:$0xff] %vm490_vm0, %v1520_v44  ;;  %1527 = vst.msk [vmem:[#allocation4 + $0x28] sm:$0xff] %vm490_vm0, %v1520_v44 }
0x119c   :  { %v1510_v7 = vpop.permute.xlu0 %1509 }
0x119d   :  { %1515 = vst.msk [vmem:[#allocation9] sm:$0xff] %vm490_vm0, %v1510_v7 }
0x11a0   :  { %v1531_v47 = vld [vmem:[#allocation8] sm:$0xff] }
0x11a1   :  { %4450 = vmatmul.mubr.msk.f32.vlgmr.msra.gmra.mrb[20].mxu0 %vm490_vm0, %v1531_v47 }
0x11a2   :  { %v1522_v33 = vpop.permute.xlu1 %1521  ;;  %1609 = vmatprep.mubr.f32.mxu0 %v5675_v0 }
0x11a3   :  { %1526 = vst.msk [vmem:[#allocation8 + $0x8] sm:$0xff] %vm490_vm0, %v1522_v33  ;;  %1528 = vst.msk [vmem:[#allocation5 + $0x10] sm:$0xff] %vm490_vm0, %v1522_v33 }
0x11a4   :  { %v1634_v37 = vld [vmem:[#allocation9] sm:$0xff] }
0x11a6   :  { %v1512_v48 = vpop.permute.xlu1 %1511 }
0x11a7   :  { %1516 = vst.msk [vmem:[#allocation9 + $0x8] sm:$0xff] %vm490_vm0, %v1512_v48 }
0x11aa   :  { %v1532_v50 = vld [vmem:[#allocation8 + $0x8] sm:$0xff] }
0x11ab   :  { %4451 = vmatmul.mubr.msk.f32.gmra.mrb[22].mxu0 %vm490_vm0, %v1532_v50 }
0x11ae   :  { %v1635_v60 = vld [vmem:[#allocation9 + $0x8] sm:$0xff] }
0x1274   :  { %v1605_v52 = vpop.f32.mrb[20].mxu0 }
0x1275   :  { %v1618_v54 = vadd.f32 %v1605_v52, %v6029_v53  ;;  %v1607_v55 = vpop.f32.mrb[21].mxu0 }
0x1277   :  { %5221 = vtanh.f32 %v1618_v54  ;;  %v4452_v53 = vmul.f32 -1.442695, %v1618_v54 }
0x127e   :  { %v1611_v56 = vpop.f32.mrb[22].mxu0 }
0x127f   :  { %v1613_v57 = vpop.f32.mrb[23].mxu0 }
0x1280   :  { %v1619_v58 = vadd.f32 %v1613_v57, %v6011_v35 }
0x1281   :  { %v5222_v59 = vpop.eup %5221 }
0x1282   :  { %5223 = vtanh.f32 %v1619_v58  ;;  %1648 = vrot.lane.b32.xlu0 %v5222_v59, %s5677_s3  ;;  %v4453_v63 = vmul.f32 -1.442695, %v1619_v58 }
0x1283   :  { %5225 = vpow2.f32 %v4452_v53 }
0x1284   :  { %5227 = vpow2.f32 %v4453_v63  ;;  %v1891_v63 = vld [vmem:[#allocation18 + $0x20] sm:$0xff] }
0x1286   :  { %1638 = vrot.lane.b32.xlu0 %v1634_v37, %s5676_s26 }
0x128a   :  { %1640 = vrot.lane.b32.xlu0 %v1635_v60, %s5676_s26 }
0x128c   :  { %v5224_v61 = vpop.eup %5223 }
0x128d   :  { %1650 = vrot.lane.b32.xlu1 %v5224_v61, %s5677_s3  ;;  %v5226_v51 = vpop.eup %5225 }
0x128e   :  { %v1626_v1 = vadd.f32 1.0, %v5226_v51  ;;  %v5228_v35 = vpop.eup %5227  ;;  %v1892_v51 = vld [vmem:[#allocation18 + $0x28] sm:$0xff] }
0x128f   :  { %v1627_v2 = vadd.f32 1.0, %v5228_v35  ;;  %v4937_v35 = vpack.c.bf16 %v1892_v51, %v1891_v63  ;;  %v4491_v63 = vld [vmem:[#allocation23] ss:$0 sm:$0xff] }
0x1290   :  { %5229 = vrcp.f32 %v1626_v1  ;;  %v1899_v1 = vld [vmem:[#allocation21 + $0x20] sm:$0xff] }
0x1291   :  { %5231 = vrcp.f32 %v1627_v2  ;;  %v1900_v2 = vld [vmem:[#allocation21 + $0x28] sm:$0xff]  ;;  %4938 = vmatprep.subr.bf16.mxu0 %v4937_v35 }
0x1292   :  { %4940 = vmatpush3.bf16.msra.mxu0 %v4937_v35 }
0x129a   :  { %v5230_v28 = vpop.eup %5229 }
0x129b   :  { %v5232_v5 = vpop.eup %5231 }
0x12f4   :  { %v1649_v3 = vpop.permute.xlu0 %1648 }
0x12f5   :  { %v1654_v4 = vmul.f32 %v5230_v28, %v1649_v3  ;;  %v1893_v3 = vld [vmem:[#allocation18 + $0x30] sm:$0xff] }
0x12f7   :  { %1658 = vrot.lane.b32.xlu1 %v1654_v4, %s5676_s26  ;;  %v1894_v4 = vld [vmem:[#allocation18 + $0x38] sm:$0xff] }
0x12f8   :  { %v1639_v8 = vpop.permute.xlu0 %1638 }
0x12f9   :  { %v1644_v9 = vmul.f32 %v5230_v28, %v1639_v8 }
0x12fc   :  { %v1641_v11 = vpop.permute.xlu0 %1640 }
0x12fd   :  { %v1645_v19 = vmul.f32 %v5232_v5, %v1641_v11 }
0x12ff   :  { %v1651_v62 = vpop.permute.xlu1 %1650 }
0x1300   :  { %v1655_v6 = vmul.f32 %v5232_v5, %v1651_v62  ;;  %v4941_v62 = vpack.c.bf16 %v1894_v4, %v1893_v3 }
0x1302   :  { %1660 = vrot.lane.b32.xlu1 %v1655_v6, %s5676_s26  ;;  %v1902_v6 = vld [vmem:[#allocation21 + $0x38] sm:$0xff]  ;;  %4942 = vmatprep.subr.bf16.mxu0 %v4941_v62 }
0x1303   :  { %4944 = vmatpush3.bf16.msra.mxu0 %v4941_v62 }
0x1369   :  { %v1659_v10 = vpop.permute.xlu1 %1658 }
0x136a   :  { %v1664_v17 = vadd.f32 %v1659_v10, %v1644_v9  ;;  %v1887_v9 = vld [vmem:[#allocation18] sm:$0xff]  ;;  %v1888_v10 = vld [vmem:[#allocation18 + $0x8] sm:$0xff] }
0x136b   :  { %v4945_v11 = vpack.c.bf16 %v1888_v10, %v1887_v9 }
0x136c   :  { %5233 = vtanh.f32 %v1664_v17 }
0x136d   :  { %4946 = vmatprep.subr.bf16.mxu0 %v4945_v11 }
0x1374   :  { %v1661_v12 = vpop.permute.xlu1 %1660 }
0x1375   :  { %v1665_v41 = vadd.f32 %v1661_v12, %v1645_v19 }
0x1376   :  { %v5234_v13 = vpop.eup %5233 }
0x1377   :  { %5235 = vtanh.f32 %v1665_v41  ;;  %1670 = vrot.lane.b32.xlu0 %v5234_v13, %s5677_s3  ;;  %v1896_v13 = vld [vmem:[#allocation21 + $0x8] sm:$0xff] }
0x1381   :  { %v5236_v14 = vpop.eup %5235 }
0x1382   :  { %1672 = vrot.lane.b32.xlu1 %v5236_v14, %s5677_s3 }
0x13e9   :  { %v1671_v15 = vpop.permute.xlu0 %1670 }
0x13ea   :  { %v1676_v46 = vmul.f32 %v5230_v28, %v1671_v15  ;;  %v4953_v28 = vpack.c.bf16 %v1900_v2, %v1899_v1 }
0x13ec   :  { %1690 = vrot.lane.b32.xlu0 %v1676_v46, %s5676_s26  ;;  %4954 = vmatprep.subr.bf16.mxu1 %v4953_v28 }
0x13f0   :  { %1682 = vrot.lane.b32.xlu0 %v1665_v41, %s5678_s24  ;;  %v1895_v41 = vld [vmem:[#allocation21] sm:$0xff] }
0x13f1   :  { %v4961_v15 = vpack.c.bf16 %v1896_v13, %v1895_v41 }
0x13f4   :  { %v1673_v16 = vpop.permute.xlu1 %1672  ;;  %1680 = vrot.lane.b32.xlu0 %v1664_v17, %s5678_s24 }
0x13f5   :  { %v1677_v18 = vmul.f32 %v5232_v5, %v1673_v16  ;;  %v1901_v5 = vld [vmem:[#allocation21 + $0x30] sm:$0xff] }
0x13f6   :  { %v4957_v8 = vpack.c.bf16 %v1902_v6, %v1901_v5 }
0x13f7   :  { %1692 = vrot.lane.b32.xlu1 %v1677_v18, %s5676_s26 }
0x145e   :  { %v1691_v20 = vpop.permute.xlu0 %1690 }
0x145f   :  { %1696 = vst.msk [vmem:[#allocation8] sm:$0xff] %vm490_vm0, %v1691_v20  ;;  %1698 = vst.msk [vmem:[#allocation4 + $0x30] sm:$0xff] %vm490_vm0, %v1691_v20  ;;  %v1889_v20 = vld [vmem:[#allocation18 + $0x10] sm:$0xff] }
0x1462   :  { %v1683_v21 = vpop.permute.xlu0 %1682 }
0x1463   :  { %1687 = vst.msk [vmem:[#allocation9 + $0x8] sm:$0xff] %vm490_vm0, %v1683_v21  ;;  %v1890_v21 = vld [vmem:[#allocation18 + $0x18] sm:$0xff] }
0x1466   :  { %v1681_v22 = vpop.permute.xlu0 %1680  ;;  %v1702_v23 = vld [vmem:[#allocation8] sm:$0xff] }
0x1467   :  { %1686 = vst.msk [vmem:[#allocation9] sm:$0xff] %vm490_vm0, %v1681_v22  ;;  %4454 = vmatmul.mubr.msk.f32.vlgmr.msra.gmra.mrb[20].mxu1 %vm490_vm0, %v1702_v23 }
0x1468   :  { %1780 = vmatprep.mubr.f32.mxu1 %v5675_v0  ;;  %4956 = vmatpush3.bf16.msra.mxu1 %v4953_v28 }
0x1469   :  { %v1693_v24 = vpop.permute.xlu1 %1692  ;;  %4958 = vmatprep.subr.bf16.mxu1 %v4957_v8 }
0x146a   :  { %1697 = vst.msk [vmem:[#allocation8 + $0x8] sm:$0xff] %vm490_vm0, %v1693_v24  ;;  %1699 = vst.msk [vmem:[#allocation5 + $0x8] sm:$0xff] %vm490_vm0, %v1693_v24  ;;  %v1806_v25 = vld [vmem:[#allocation9 + $0x8] sm:$0xff]  ;;  %v4949_v24 = vpack.c.bf16 %v1890_v21, %v1889_v20 }
0x146b   :  { %1811 = vrot.lane.b32.xlu0 %v1806_v25, %s5676_s26 }
0x146c   :  { %4960 = vmatpush3.bf16.msra.mxu1 %v4957_v8 }
0x146d   :  { %4962 = vmatprep.subr.bf16.mxu1 %v4961_v15 }
0x146e   :  { %v1805_v26 = vld [vmem:[#allocation9] sm:$0xff] }
0x146f   :  { %1809 = vrot.lane.b32.xlu0 %v1805_v26, %s5676_s26  ;;  %v1897_v26 = vld [vmem:[#allocation21 + $0x10] sm:$0xff] }
0x1471   :  { %v1703_v27 = vld [vmem:[#allocation8 + $0x8] sm:$0xff] }
0x1472   :  { %4455 = vmatmul.mubr.msk.f32.gmra.mrb[22].mxu1 %vm490_vm0, %v1703_v27  ;;  %v1880_v25 = vld [vmem:[#allocation5 + $0x8] sm:$0xff] }
0x1473   :  { %v1898_v27 = vld [vmem:[#allocation21 + $0x18] sm:$0xff] }
0x14dd   :  { %v1812_v54 = vpop.permute.xlu0 %1811 }
0x14e1   :  { %v1810_v58 = vpop.permute.xlu0 %1809 }
0x153a   :  { %v1776_v29 = vpop.f32.mrb[20].mxu1 }
0x153b   :  { %v1789_v30 = vadd.f32 %v1776_v29, %v6025_v49  ;;  %v1778_v45 = vpop.f32.mrb[21].mxu1  ;;  %v1881_v29 = vld [vmem:[#allocation5 + $0x10] sm:$0xff] }
0x153c   :  { %v2424_v45 = vld [vmem:[#allocation24 + $0x18] sm:$0xff] }
0x153d   :  { %v4456_v40 = vmul.f32 -1.442695, %v1789_v30 }
0x1545   :  { %v1782_v31 = vpop.f32.mrb[22].mxu1 }
0x1546   :  { %v1784_v32 = vpop.f32.mrb[23].mxu1  ;;  %v4965_v31 = vpack.c.bf16 %v1898_v27, %v1897_v26 }
0x1547   :  { %v1790_v34 = vadd.f32 %v1784_v32, %v6015_v38  ;;  %v1882_v32 = vld [vmem:[#allocation5 + $0x18] sm:$0xff] }
0x1549   :  { %5237 = vtanh.f32 %v1790_v34  ;;  %v4457_v39 = vmul.f32 -1.442695, %v1790_v34 }
0x154a   :  { %5239 = vtanh.f32 %v1789_v30  ;;  %v2422_v30 = vld [vmem:[#allocation24 + $0x8] sm:$0xff] }
0x154b   :  { %5241 = vpow2.f32 %v4457_v39  ;;  %v6250_v34 = vpack.c.bf16 %v2424_v45, %v2422_v30  ;;  %v1885_v39 = vld [vmem:[#allocation5 + $0x30] sm:$0xff] }
0x154c   :  { %5243 = vpow2.f32 %v4456_v40  ;;  %v1886_v40 = vld [vmem:[#allocation5 + $0x38] sm:$0xff] }
0x1553   :  { %v5238_v43 = vpop.eup %5237 }
0x1554   :  { %1821 = vrot.lane.b32.xlu1 %v5238_v43, %s5677_s3  ;;  %v5240_v36 = vpop.eup %5239  ;;  %v1883_v43 = vld [vmem:[#allocation5 + $0x20] sm:$0xff] }
0x1555   :  { %v5242_v42 = vpop.eup %5241 }
0x1556   :  { %v1798_v44 = vadd.f32 1.0, %v5242_v42  ;;  %v5244_v49 = vpop.eup %5243  ;;  %v2421_v42 = vld [vmem:[#allocation24] sm:$0xff] }
0x1557   :  { %v1797_v7 = vadd.f32 1.0, %v5244_v49  ;;  %v1871_v49 = vld [vmem:[#allocation4] sm:$0xff] }
0x1558   :  { %1819 = vrot.lane.b32.xlu1 %v5240_v36, %s5677_s3  ;;  %5245 = vrcp.f32 %v1798_v44  ;;  %v1884_v36 = vld [vmem:[#allocation5 + $0x28] sm:$0xff]  ;;  %v2423_v44 = vld [vmem:[#allocation24 + $0x10] sm:$0xff] }
0x1559   :  { %5247 = vrcp.f32 %v1797_v7  ;;  %v2426_v7 = vld [vmem:[#allocation24 + $0x28] sm:$0xff] }
0x1562   :  { %v5246_v47 = vpop.eup %5245 }
0x1563   :  { %v5248_v48 = vpop.eup %5247  ;;  %v1816_v55 = vmul.f32 %v5246_v47, %v1812_v54  ;;  %v1873_v54 = vld [vmem:[#allocation4 + $0x10] sm:$0xff] }
0x1564   :  { %v1815_v59 = vmul.f32 %v5248_v48, %v1810_v58  ;;  %v1876_v58 = vld [vmem:[#allocation4 + $0x28] sm:$0xff] }
0x15c6   :  { %v1822_v38 = vpop.permute.xlu1 %1821 }
0x15c7   :  { %v1826_v33 = vmul.f32 %v5246_v47, %v1822_v38  ;;  %v6266_v38 = vpack.c.bf16 %v2423_v44, %v2421_v42 }
0x15c9   :  { %1831 = vrot.lane.b32.xlu1 %v1826_v33, %s5676_s26  ;;  %v1872_v33 = vld [vmem:[#allocation4 + $0x8] sm:$0xff] }
0x15ca   :  { %v1820_v50 = vpop.permute.xlu1 %1819 }
0x15cb   :  { %v1825_v52 = vmul.f32 %v5248_v48, %v1820_v50  ;;  %v2425_v50 = vld [vmem:[#allocation24 + $0x20] sm:$0xff] }
0x15cd   :  { %1829 = vrot.lane.b32.xlu1 %v1825_v52, %s5676_s26  ;;  %v2427_v52 = vld [vmem:[#allocation24 + $0x30] sm:$0xff] }
0x163b   :  { %v1832_v56 = vpop.permute.xlu1 %1831 }
0x163c   :  { %v1836_v57 = vadd.f32 %v1832_v56, %v1816_v55  ;;  %v6275_v55 = vpack.c.bf16 %v2427_v52, %v2425_v50  ;;  %v1874_v56 = vld [vmem:[#allocation4 + $0x18] sm:$0xff] }
0x163e   :  { %5249 = vtanh.f32 %v1836_v57 }
0x163f   :  { %v1830_v37 = vpop.permute.xlu1 %1829 }
0x1640   :  { %v1835_v60 = vadd.f32 %v1830_v37, %v1815_v59  ;;  %v1877_v59 = vld [vmem:[#allocation4 + $0x30] sm:$0xff] }
0x1642   :  { %5251 = vtanh.f32 %v1835_v60 }
0x1648   :  { %v5250_v61 = vpop.eup %5249 }
0x1649   :  { %1843 = vrot.lane.b32.xlu0 %v5250_v61, %s5677_s3 }
0x164c   :  { %v5252_v53 = vpop.eup %5251 }
0x164d   :  { %1841 = vrot.lane.b32.xlu1 %v5252_v53, %s5677_s3  ;;  %v4474_v53 = vld [vmem:[#allocation20] ss:$0 sm:$0xff] }
0x16bb   :  { %v1844_v17 = vpop.permute.xlu0 %1843 }
0x16bc   :  { %v1848_v19 = vmul.f32 %v5246_v47, %v1844_v17  ;;  %v2428_v47 = vld [vmem:[#allocation24 + $0x38] sm:$0xff] }
0x16be   :  { %1863 = vrot.lane.b32.xlu0 %v1848_v19, %s5676_s26 }
0x16bf   :  { %v1842_v12 = vpop.permute.xlu1 %1841 }
0x16c0   :  { %v1847_v14 = vmul.f32 %v5248_v48, %v1842_v12  ;;  %v6268_v48 = vpack.c.bf16 %v2428_v47, %v2426_v7 }
0x16c2   :  { %1861 = vrot.lane.b32.xlu1 %v1847_v14, %s5676_s26  ;;  %1851 = vrot.lane.b32.xlu0 %v1835_v60, %s5678_s24 }
0x16c6   :  { %1853 = vrot.lane.b32.xlu1 %v1836_v57, %s5678_s24  ;;  %v1875_v57 = vld [vmem:[#allocation4 + $0x20] sm:$0xff] }
0x1730   :  { %v1864_v46 = vpop.permute.xlu0 %1863 }
0x1731   :  { %1868 = vst.msk [vmem:[#allocation8 + $0x8] sm:$0xff] %vm490_vm0, %v1864_v46  ;;  %1870 = vst.msk [vmem:[#allocation5] sm:$0xff] %vm490_vm0, %v1864_v46 }
0x1732   :  { %2418 = vst.msk [vmem:[#allocation8 + $0x8] sm:$0xff] %vm490_vm0, %v5675_v0 }
0x1734   :  { %v1862_v16 = vpop.permute.xlu1 %1861  ;;  %v1852_v18 = vpop.permute.xlu0 %1851 }
0x1735   :  { %1867 = vst.msk [vmem:[#allocation8] sm:$0xff] %vm490_vm0, %v1862_v16  ;;  %1869 = vst.msk [vmem:[#allocation4 + $0x38] sm:$0xff] %vm490_vm0, %v1862_v16 }
0x1736   :  { %1857 = vst.msk [vmem:[#allocation9] sm:$0xff] %vm490_vm0, %v1852_v18  ;;  %2417 = vst.msk [vmem:[#allocation8] sm:$0xff] %vm490_vm0, %v5675_v0 }
0x1737   :  { %2419 = vst.msk [vmem:[#allocation9] sm:$0xff] %vm490_vm0, %v5675_v0 }
0x1738   :  { %v1854_v22 = vpop.permute.xlu1 %1853  ;;  %v1879_v23 = vld [vmem:[#allocation5] sm:$0xff] }
0x1739   :  { %1858 = vst.msk [vmem:[#allocation9 + $0x8] sm:$0xff] %vm490_vm0, %v1854_v22  ;;  %4713 = vmatprep.mubr.msk.f32.mxu0 %vm490_vm0, %v1879_v23  ;;  %4753 = vmatprep.mubr.msk.f32.mxu1 %vm490_vm0, %v1879_v23  ;;  %v2432_v61 = vld [vmem:[#allocation8 + $0x8] sm:$0xff] }
0x173a   :  { %2420 = vst.msk [vmem:[#allocation9 + $0x8] sm:$0xff] %vm490_vm0, %v5675_v0  ;;  %4714 = vmatmul.mubr.msk.f32.vlgmr.msra.gmra.mrb[24].mxu0 %vm490_vm0, %v1880_v25  ;;  %4754 = vmatmul.mubr.msk.f32.vlgmr.msra.gmra.mrb[24].mxu1 %vm490_vm0, %v1880_v25 }
0x173b   :  { %4716 = vmatprep.mubr.msk.f32.mxu0 %vm490_vm0, %v1881_v29  ;;  %4948 = vmatpush3.bf16.msra.mxu0 %v4945_v11 }
0x173c   :  { %4756 = vmatprep.mubr.msk.f32.mxu1 %vm490_vm0, %v1881_v29  ;;  %4950 = vmatprep.subr.bf16.mxu0 %v4949_v24  ;;  %v1878_v37 = vld [vmem:[#allocation4 + $0x38] sm:$0xff] }
0x173d   :  { %4964 = vmatpush3.bf16.msra.mxu1 %v4961_v15  ;;  %v2431_v60 = vld [vmem:[#allocation8] sm:$0xff] }
0x173e   :  { %4717 = vmatmul.mubr.msk.f32.gmra.mrb[26].mxu0 %vm490_vm0, %v1882_v32  ;;  %4757 = vmatmul.mubr.msk.f32.gmra.mrb[26].mxu1 %vm490_vm0, %v1882_v32 }
0x173f   :  { %4719 = vmatprep.mubr.msk.f32.mxu0 %vm490_vm0, %v1883_v43  ;;  %4759 = vmatprep.mubr.msk.f32.mxu1 %vm490_vm0, %v1883_v43 }
0x1740   :  { %4952 = vmatpush3.bf16.msra.mxu0 %v4949_v24  ;;  %4966 = vmatprep.subr.bf16.mxu1 %v4965_v31 }
0x1741   :  { %4968 = vmatpush3.bf16.msra.mxu1 %v4965_v31  ;;  %4970 = vmatprep.subr.bf16.mxu0 %v6250_v34  ;;  %v2535_v42 = vld [vmem:[#allocation9 + $0x8] sm:$0xff] }
0x1742   :  { %4720 = vmatmul.mubr.msk.f32.gmra.mrb[28].mxu0 %vm490_vm0, %v1884_v36  ;;  %4760 = vmatmul.mubr.msk.f32.gmra.mrb[28].mxu1 %vm490_vm0, %v1884_v36 }
0x1743   :  { %4722 = vmatprep.mubr.msk.f32.mxu0 %vm490_vm0, %v1885_v39  ;;  %4762 = vmatprep.mubr.msk.f32.mxu1 %vm490_vm0, %v1885_v39  ;;  %v2534_v39 = vld [vmem:[#allocation9] sm:$0xff] }
0x1744   :  { %4978 = vmatprep.subr.bf16.mxu1 %v6250_v34 }
0x1746   :  { %4723 = vmatmul.mubr.msk.f32.gmra.mrb[30].mxu0 %vm490_vm0, %v1886_v40  ;;  %4763 = vmatmul.mubr.msk.f32.gmra.mrb[30].mxu1 %vm490_vm0, %v1886_v40 }
0x1747   :  { %4733 = vmatprep.mubr.msk.f32.mxu0 %vm490_vm0, %v1871_v49  ;;  %4773 = vmatprep.mubr.msk.f32.mxu1 %vm490_vm0, %v1871_v49 }
0x174a   :  { %4734 = vmatmul.mubr.msk.f32.vlgmr.msra.gmra.mrb[24].mxu0 %vm490_vm0, %v1872_v33  ;;  %4774 = vmatmul.mubr.msk.f32.vlgmr.msra.gmra.mrb[24].mxu1 %vm490_vm0, %v1872_v33 }
0x174b   :  { %4736 = vmatprep.mubr.msk.f32.mxu0 %vm490_vm0, %v1873_v54  ;;  %4776 = vmatprep.mubr.msk.f32.mxu1 %vm490_vm0, %v1873_v54 }
0x174c   :  { %4972 = vmatpush1.bf16.msra.mxu0 %v6266_v38  ;;  %4980 = vmatpush1.bf16.msra.mxu1 %v6266_v38 }
0x174d   :  { %4974 = vmatprep.subr.bf16.mxu0 %v6268_v48  ;;  %4982 = vmatprep.subr.bf16.mxu1 %v6268_v48 }
0x174e   :  { %4737 = vmatmul.mubr.msk.f32.gmra.mrb[26].mxu0 %vm490_vm0, %v1874_v56  ;;  %4777 = vmatmul.mubr.msk.f32.gmra.mrb[26].mxu1 %vm490_vm0, %v1874_v56 }
0x174f   :  { %4739 = vmatprep.mubr.msk.f32.mxu0 %vm490_vm0, %v1875_v57  ;;  %4779 = vmatprep.mubr.msk.f32.mxu1 %vm490_vm0, %v1875_v57 }
0x1750   :  { %4976 = vmatpush1.bf16.msra.mxu0 %v6275_v55  ;;  %4984 = vmatpush1.bf16.msra.mxu1 %v6275_v55 }
0x1751   :  { %4986 = vmatprep.subr.bf16.mxu0 %v6250_v34  ;;  %4994 = vmatprep.subr.bf16.mxu1 %v6250_v34 }
0x1752   :  { %4740 = vmatmul.mubr.msk.f32.gmra.mrb[28].mxu0 %vm490_vm0, %v1876_v58  ;;  %4780 = vmatmul.mubr.msk.f32.gmra.mrb[28].mxu1 %vm490_vm0, %v1876_v58 }
0x1753   :  { %4742 = vmatprep.mubr.msk.f32.mxu0 %vm490_vm0, %v1877_v59  ;;  %4782 = vmatprep.mubr.msk.f32.mxu1 %vm490_vm0, %v1877_v59 }
0x1756   :  { %4743 = vmatmul.mubr.msk.f32.gmra.mrb[30].mxu0 %vm490_vm0, %v1878_v37  ;;  %4783 = vmatmul.mubr.msk.f32.gmra.mrb[30].mxu1 %vm490_vm0, %v1878_v37 }
0x1757   :  { %2503 = vmatprep.mubr.f32.mxu0 %v5675_v0  ;;  %2674 = vmatprep.mubr.f32.mxu1 %v5675_v0 }
0x175a   :  { %4492 = vmatmul.mubr.msk.f32.vlgmr.msra.gmra.mrb[32].mxu0 %vm490_vm0, %v2431_v60 }
0x175b   :  { %2509 = vmatprep.mubr.f32.mxu0 %v5675_v0  ;;  %4988 = vmatpush1.bf16.msra.mxu0 %v6266_v38 }
0x175c   :  { %4990 = vmatprep.subr.bf16.mxu0 %v6268_v48 }
0x175e   :  { %4493 = vmatmul.mubr.msk.f32.gmra.mrb[34].mxu0 %vm490_vm0, %v2432_v61 }
0x175f   :  { %4992 = vmatpush1.bf16.msra.mxu0 %v6275_v55  ;;  %2845 = vmatprep.mubr.f32.mxu0 %v5675_v0 }
0x1760   :  { %5002 = vmatprep.subr.bf16.mxu0 %v6250_v34 }
0x181d   :  { %v4735_v51 = vpop.f32.mrb[24].mxu0  ;;  %v4775_v1 = vpop.f32.mrb[24].mxu1 }
0x181e   :  { %v6304_v35 = vadd.f32 %v4735_v51, %v4474_v53  ;;  %v6306_v2 = vadd.f32 %v4775_v1, %v4491_v63  ;;  %v2122_v28 = vpop.f32.mrb[25].mxu0  ;;  %v2347_v3 = vpop.f32.mrb[25].mxu1 }
0x181f   :  { %v6308_v4 = vadd.f32 %v4491_v63, %v2347_v3  ;;  %v2168_v26 = vadd.f32 %v4474_v53, %v2122_v28 }
0x1821   :  { %v4738_v5 = vpop.f32.mrb[26].mxu0  ;;  %v4778_v62 = vpop.f32.mrb[26].mxu1 }
0x1822   :  { %v6310_v6 = vadd.f32 %v4738_v5, %v4474_v53  ;;  %v6312_v8 = vadd.f32 %v4778_v62, %v4491_v63  ;;  %v2132_v9 = vpop.f32.mrb[27].mxu0  ;;  %v2357_v10 = vpop.f32.mrb[27].mxu1 }
0x1823   :  { %v6314_v17 = vadd.f32 %v4474_v53, %v2132_v9  ;;  %v6316_v11 = vadd.f32 %v4491_v63, %v2357_v10 }
0x1825   :  { %v4741_v19 = vpop.f32.mrb[28].mxu0  ;;  %v4781_v12 = vpop.f32.mrb[28].mxu1 }
0x1826   :  { %v6318_v41 = vadd.f32 %v4741_v19, %v4474_v53  ;;  %v6320_v13 = vadd.f32 %v4781_v12, %v4491_v63  ;;  %v2142_v14 = vpop.f32.mrb[29].mxu0  ;;  %v2367_v15 = vpop.f32.mrb[29].mxu1 }
0x1827   :  { %v6322_v46 = vadd.f32 %v4474_v53, %v2142_v14  ;;  %v6324_v16 = vadd.f32 %v4491_v63, %v2367_v15 }
0x1829   :  { %v4744_v18 = vpop.f32.mrb[30].mxu0  ;;  %v4784_v20 = vpop.f32.mrb[30].mxu1 }
0x182a   :  { %v6326_v21 = vadd.f32 %v4744_v18, %v4474_v53  ;;  %v2152_v22 = vpop.f32.mrb[31].mxu0  ;;  %v2377_v23 = vpop.f32.mrb[31].mxu1  ;;  %v2400_v45 = vadd.f32 %v4784_v20, %v4491_v63 }
0x182b   :  { %v6328_v24 = vadd.f32 %v4474_v53, %v2152_v22  ;;  %v6330_v25 = vadd.f32 %v4491_v63, %v2377_v23 }
0x182d   :  { %v2505_v27 = vpop.f32.mrb[32].mxu0 }
0x182e   :  { %v2518_v29 = vadd.f32 %v2505_v27, %v2168_v26  ;;  %v2507_v30 = vpop.f32.mrb[33].mxu0 }
0x1830   :  { %5253 = vtanh.f32 %v2518_v29  ;;  %v4494_v44 = vmul.f32 -1.442695, %v2518_v29 }
0x1831   :  { %v2511_v31 = vpop.f32.mrb[34].mxu0 }
0x1832   :  { %v2513_v32 = vpop.f32.mrb[35].mxu0 }
0x1833   :  { %v2519_v43 = vadd.f32 %v2513_v32, %v2400_v45 }
0x1835   :  { %5255 = vtanh.f32 %v2519_v43  ;;  %v4495_v49 = vmul.f32 -1.442695, %v2519_v43 }
0x1836   :  { %5257 = vpow2.f32 %v4494_v44 }
0x1837   :  { %5259 = vpow2.f32 %v4495_v49 }
0x183a   :  { %v5254_v36 = vpop.eup %5253 }
0x183b   :  { %2548 = vrot.lane.b32.xlu0 %v5254_v36, %s5677_s3 }
0x183f   :  { %v5256_v40 = vpop.eup %5255  ;;  %2538 = vrot.lane.b32.xlu0 %v2534_v39, %s5676_s26 }
0x1840   :  { %2550 = vrot.lane.b32.xlu1 %v5256_v40, %s5677_s3  ;;  %v5258_v7 = vpop.eup %5257 }
0x1841   :  { %v2526_v47 = vadd.f32 1.0, %v5258_v7  ;;  %v5260_v33 = vpop.eup %5259 }
0x1842   :  { %v2527_v50 = vadd.f32 1.0, %v5260_v33 }
0x1843   :  { %2540 = vrot.lane.b32.xlu0 %v2535_v42, %s5676_s26  ;;  %5261 = vrcp.f32 %v2526_v47 }
0x1844   :  { %5263 = vrcp.f32 %v2527_v50 }
0x184d   :  { %v5262_v52 = vpop.eup %5261 }
0x184e   :  { %v5264_v57 = vpop.eup %5263 }
0x18ad   :  { %v2549_v54 = vpop.permute.xlu0 %2548 }
0x18ae   :  { %v2554_v56 = vmul.f32 %v5262_v52, %v2549_v54 }
0x18b0   :  { %2558 = vrot.lane.b32.xlu1 %v2554_v56, %s5676_s26 }
0x18b1   :  { %v2539_v37 = vpop.permute.xlu0 %2538 }
0x18b2   :  { %v2551_v58 = vpop.permute.xlu1 %2550  ;;  %v2544_v60 = vmul.f32 %v5262_v52, %v2539_v37 }
0x18b3   :  { %v2555_v59 = vmul.f32 %v5264_v57, %v2551_v58 }
0x18b5   :  { %2560 = vrot.lane.b32.xlu1 %v2555_v59, %s5676_s26  ;;  %v2541_v53 = vpop.permute.xlu0 %2540 }
0x18b6   :  { %v2545_v51 = vmul.f32 %v5264_v57, %v2541_v53 }
0x1922   :  { %v2559_v61 = vpop.permute.xlu1 %2558 }
0x1923   :  { %v2564_v63 = vadd.f32 %v2559_v61, %v2544_v60 }
0x1925   :  { %5265 = vtanh.f32 %v2564_v63 }
0x1927   :  { %v2561_v1 = vpop.permute.xlu1 %2560 }
0x1928   :  { %v2565_v28 = vadd.f32 %v2561_v1, %v2545_v51 }
0x192a   :  { %5267 = vtanh.f32 %v2565_v28 }
0x192f   :  { %v5266_v3 = vpop.eup %5265 }
0x1930   :  { %2570 = vrot.lane.b32.xlu0 %v5266_v3, %s5677_s3 }
0x1934   :  { %v5268_v5 = vpop.eup %5267 }
0x1935   :  { %2572 = vrot.lane.b32.xlu1 %v5268_v5, %s5677_s3 }
0x19a2   :  { %v2571_v62 = vpop.permute.xlu0 %2570 }
0x19a3   :  { %v2576_v9 = vmul.f32 %v5262_v52, %v2571_v62 }
0x19a5   :  { %2590 = vrot.lane.b32.xlu0 %v2576_v9, %s5676_s26 }
0x19a7   :  { %v2573_v10 = vpop.permute.xlu1 %2572 }
0x19a8   :  { %v2577_v19 = vmul.f32 %v5264_v57, %v2573_v10 }
0x19a9   :  { %2580 = vrot.lane.b32.xlu0 %v2564_v63, %s5678_s24 }
0x19aa   :  { %2592 = vrot.lane.b32.xlu1 %v2577_v19, %s5676_s26 }
0x19ae   :  { %2582 = vrot.lane.b32.xlu1 %v2565_v28, %s5678_s24 }
0x1a17   :  { %v2591_v12 = vpop.permute.xlu0 %2590 }
0x1a18   :  { %2596 = vst.msk [vmem:[#allocation8] sm:$0xff] %vm490_vm0, %v2591_v12  ;;  %2598 = vst.msk [vmem:[#allocation6] sm:$0xff] %vm490_vm0, %v2591_v12 }
0x1a1b   :  { %v2581_v14 = vpop.permute.xlu0 %2580 }
0x1a1c   :  { %2586 = vst.msk [vmem:[#allocation9] sm:$0xff] %vm490_vm0, %v2581_v14  ;;  %v2593_v15 = vpop.permute.xlu1 %2592 }
0x1a1d   :  { %2597 = vst.msk [vmem:[#allocation8 + $0x8] sm:$0xff] %vm490_vm0, %v2593_v15  ;;  %2599 = vst.msk [vmem:[#allocation7 + $0x38] sm:$0xff] %vm490_vm0, %v2593_v15 }
0x1a1f   :  { %v2602_v18 = vld [vmem:[#allocation8] sm:$0xff] }
0x1a20   :  { %v2583_v20 = vpop.permute.xlu1 %2582  ;;  %4496 = vmatmul.mubr.msk.f32.vlgmr.msra.gmra.mrb[32].mxu1 %vm490_vm0, %v2602_v18 }
0x1a21   :  { %2587 = vst.msk [vmem:[#allocation9 + $0x8] sm:$0xff] %vm490_vm0, %v2583_v20  ;;  %2680 = vmatprep.mubr.f32.mxu1 %v5675_v0  ;;  %4996 = vmatpush1.bf16.msra.mxu1 %v6266_v38 }
0x1a22   :  { %4998 = vmatprep.subr.bf16.mxu1 %v6268_v48 }
0x1a23   :  { %v2705_v32 = vld [vmem:[#allocation9] sm:$0xff] }
0x1a24   :  { %v2603_v22 = vld [vmem:[#allocation8 + $0x8] sm:$0xff] }
0x1a25   :  { %4497 = vmatmul.mubr.msk.f32.gmra.mrb[34].mxu1 %vm490_vm0, %v2603_v22 }
0x1a26   :  { %5000 = vmatpush1.bf16.msra.mxu1 %v6275_v55  ;;  %3016 = vmatprep.mubr.f32.mxu1 %v5675_v0 }
0x1a27   :  { %5010 = vmatprep.subr.bf16.mxu1 %v6250_v34 }
0x1a28   :  { %v2706_v36 = vld [vmem:[#allocation9 + $0x8] sm:$0xff] }
0x1af3   :  { %v2676_v23 = vpop.f32.mrb[32].mxu1 }
0x1af4   :  { %v2689_v26 = vadd.f32 %v2676_v23, %v6304_v35  ;;  %v2678_v27 = vpop.f32.mrb[33].mxu1 }
0x1af6   :  { %5269 = vtanh.f32 %v2689_v26  ;;  %v4498_v35 = vmul.f32 -1.442695, %v2689_v26 }
0x1af8   :  { %v2682_v29 = vpop.f32.mrb[34].mxu1 }
0x1af9   :  { %v2684_v30 = vpop.f32.mrb[35].mxu1 }
0x1afa   :  { %v2690_v45 = vadd.f32 %v2684_v30, %v6330_v25 }
0x1afc   :  { %5271 = vtanh.f32 %v2690_v45  ;;  %v4499_v39 = vmul.f32 -1.442695, %v2690_v45 }
0x1afd   :  { %5273 = vpow2.f32 %v4498_v35 }
0x1afe   :  { %5275 = vpow2.f32 %v4499_v39 }
0x1b00   :  { %v5270_v31 = vpop.eup %5269 }
0x1b01   :  { %2719 = vrot.lane.b32.xlu0 %v5270_v31, %s5677_s3 }
0x1b05   :  { %2709 = vrot.lane.b32.xlu0 %v2705_v32, %s5676_s26 }
0x1b06   :  { %v5272_v43 = vpop.eup %5271 }
0x1b07   :  { %2721 = vrot.lane.b32.xlu1 %v5272_v43, %s5677_s3  ;;  %v5274_v40 = vpop.eup %5273 }
0x1b08   :  { %v2697_v42 = vadd.f32 1.0, %v5274_v40  ;;  %v5276_v25 = vpop.eup %5275 }
0x1b09   :  { %2711 = vrot.lane.b32.xlu0 %v2706_v36, %s5676_s26  ;;  %v2698_v44 = vadd.f32 1.0, %v5276_v25 }
0x1b0a   :  { %5277 = vrcp.f32 %v2697_v42 }
0x1b0b   :  { %5279 = vrcp.f32 %v2698_v44 }
0x1b14   :  { %v5278_v49 = vpop.eup %5277 }
0x1b15   :  { %v5280_v33 = vpop.eup %5279 }
0x1b73   :  { %v2720_v7 = vpop.permute.xlu0 %2719 }
0x1b74   :  { %v2725_v47 = vmul.f32 %v5278_v49, %v2720_v7 }
0x1b76   :  { %2729 = vrot.lane.b32.xlu1 %v2725_v47, %s5676_s26 }
0x1b77   :  { %v2710_v54 = vpop.permute.xlu0 %2709 }
0x1b78   :  { %v2715_v56 = vmul.f32 %v5278_v49, %v2710_v54 }
0x1b79   :  { %v2722_v50 = vpop.permute.xlu1 %2721 }
0x1b7a   :  { %v2726_v52 = vmul.f32 %v5280_v33, %v2722_v50 }
0x1b7b   :  { %v2712_v59 = vpop.permute.xlu0 %2711 }
0x1b7c   :  { %2731 = vrot.lane.b32.xlu1 %v2726_v52, %s5676_s26  ;;  %v2716_v37 = vmul.f32 %v5280_v33, %v2712_v59 }
0x1be8   :  { %v2730_v57 = vpop.permute.xlu1 %2729 }
0x1be9   :  { %v2735_v58 = vadd.f32 %v2730_v57, %v2715_v56 }
0x1beb   :  { %5281 = vtanh.f32 %v2735_v58 }
0x1bee   :  { %v2732_v60 = vpop.permute.xlu1 %2731 }
0x1bef   :  { %v2736_v61 = vadd.f32 %v2732_v60, %v2716_v37 }
0x1bf1   :  { %5283 = vtanh.f32 %v2736_v61 }
0x1bf5   :  { %v5282_v53 = vpop.eup %5281 }
0x1bf6   :  { %2741 = vrot.lane.b32.xlu0 %v5282_v53, %s5677_s3 }
0x1bfb   :  { %v5284_v63 = vpop.eup %5283 }
0x1bfc   :  { %2743 = vrot.lane.b32.xlu1 %v5284_v63, %s5677_s3 }
0x1c68   :  { %v2742_v51 = vpop.permute.xlu0 %2741 }
0x1c69   :  { %v2747_v1 = vmul.f32 %v5278_v49, %v2742_v51 }
0x1c6b   :  { %2761 = vrot.lane.b32.xlu0 %v2747_v1, %s5676_s26 }
0x1c6e   :  { %v2744_v28 = vpop.permute.xlu1 %2743 }
0x1c6f   :  { %v2748_v3 = vmul.f32 %v5280_v33, %v2744_v28  ;;  %2751 = vrot.lane.b32.xlu0 %v2735_v58, %s5678_s24 }
0x1c71   :  { %2763 = vrot.lane.b32.xlu1 %v2748_v3, %s5676_s26 }
0x1c75   :  { %2753 = vrot.lane.b32.xlu1 %v2736_v61, %s5678_s24 }
0x1cdd   :  { %v2762_v5 = vpop.permute.xlu0 %2761 }
0x1cde   :  { %2767 = vst.msk [vmem:[#allocation8] sm:$0xff] %vm490_vm0, %v2762_v5  ;;  %2769 = vst.msk [vmem:[#allocation6 + $0x8] sm:$0xff] %vm490_vm0, %v2762_v5 }
0x1ce1   :  { %v2752_v62 = vpop.permute.xlu0 %2751 }
0x1ce2   :  { %2757 = vst.msk [vmem:[#allocation9] sm:$0xff] %vm490_vm0, %v2752_v62 }
0x1ce3   :  { %v2764_v9 = vpop.permute.xlu1 %2763 }
0x1ce4   :  { %2768 = vst.msk [vmem:[#allocation8 + $0x8] sm:$0xff] %vm490_vm0, %v2764_v9  ;;  %2770 = vst.msk [vmem:[#allocation7 + $0x30] sm:$0xff] %vm490_vm0, %v2764_v9 }
0x1ce5   :  { %v2773_v10 = vld [vmem:[#allocation8] sm:$0xff] }
0x1ce6   :  { %4500 = vmatmul.mubr.msk.f32.vlgmr.msra.gmra.mrb[36].mxu0 %vm490_vm0, %v2773_v10 }
0x1ce7   :  { %v2754_v19 = vpop.permute.xlu1 %2753  ;;  %2851 = vmatprep.mubr.f32.mxu0 %v5675_v0  ;;  %5004 = vmatpush1.bf16.msra.mxu0 %v6266_v38 }
0x1ce8   :  { %2758 = vst.msk [vmem:[#allocation9 + $0x8] sm:$0xff] %vm490_vm0, %v2754_v19  ;;  %5006 = vmatprep.subr.bf16.mxu0 %v6268_v48 }
0x1ce9   :  { %v2876_v27 = vld [vmem:[#allocation9] sm:$0xff] }
0x1ceb   :  { %v2774_v12 = vld [vmem:[#allocation8 + $0x8] sm:$0xff]  ;;  %5008 = vmatpush1.bf16.msra.mxu0 %v6275_v55 }
0x1cec   :  { %4501 = vmatmul.mubr.msk.f32.gmra.mrb[38].mxu0 %vm490_vm0, %v2774_v12  ;;  %5018 = vmatprep.subr.bf16.mxu0 %v6250_v34 }
0x1ced   :  { %3187 = vmatprep.mubr.f32.mxu0 %v5675_v0 }
0x1cef   :  { %v2877_v30 = vld [vmem:[#allocation9 + $0x8] sm:$0xff] }
0x1db9   :  { %v2847_v14 = vpop.f32.mrb[36].mxu0 }
0x1dba   :  { %v2860_v15 = vadd.f32 %v2847_v14, %v6314_v17  ;;  %v2849_v18 = vpop.f32.mrb[37].mxu0 }
0x1dbc   :  { %5285 = vtanh.f32 %v2860_v15  ;;  %v4502_v17 = vmul.f32 -1.442695, %v2860_v15 }
0x1dbf   :  { %v2853_v20 = vpop.f32.mrb[38].mxu0 }
0x1dc0   :  { %v2855_v22 = vpop.f32.mrb[39].mxu0 }
0x1dc1   :  { %v2861_v23 = vadd.f32 %v2855_v22, %v6320_v13 }
0x1dc3   :  { %5287 = vtanh.f32 %v2861_v23  ;;  %v4503_v45 = vmul.f32 -1.442695, %v2861_v23 }
0x1dc4   :  { %5289 = vpow2.f32 %v4502_v17 }
0x1dc5   :  { %5291 = vpow2.f32 %v4503_v45 }
0x1dc6   :  { %v5286_v26 = vpop.eup %5285 }
0x1dc7   :  { %2890 = vrot.lane.b32.xlu0 %v5286_v26, %s5677_s3 }
0x1dcb   :  { %2880 = vrot.lane.b32.xlu0 %v2876_v27, %s5676_s26 }
0x1dcd   :  { %v5288_v29 = vpop.eup %5287 }
0x1dce   :  { %2892 = vrot.lane.b32.xlu1 %v5288_v29, %s5677_s3  ;;  %v5290_v31 = vpop.eup %5289 }
0x1dcf   :  { %2882 = vrot.lane.b32.xlu0 %v2877_v30, %s5676_s26  ;;  %v2868_v32 = vadd.f32 1.0, %v5290_v31  ;;  %v5292_v13 = vpop.eup %5291 }
0x1dd0   :  { %v2869_v43 = vadd.f32 1.0, %v5292_v13 }
0x1dd1   :  { %5293 = vrcp.f32 %v2868_v32 }
0x1dd2   :  { %5295 = vrcp.f32 %v2869_v43 }
0x1ddb   :  { %v5294_v36 = vpop.eup %5293 }
0x1ddc   :  { %v5296_v40 = vpop.eup %5295 }
0x1e39   :  { %v2891_v35 = vpop.permute.xlu0 %2890 }
0x1e3a   :  { %v2896_v39 = vmul.f32 %v5294_v36, %v2891_v35 }
0x1e3c   :  { %2900 = vrot.lane.b32.xlu1 %v2896_v39, %s5676_s26 }
0x1e3d   :  { %v2881_v44 = vpop.permute.xlu0 %2880 }
0x1e3e   :  { %v2886_v49 = vmul.f32 %v5294_v36, %v2881_v44 }
0x1e40   :  { %v2893_v42 = vpop.permute.xlu1 %2892 }
0x1e41   :  { %v2897_v25 = vmul.f32 %v5296_v40, %v2893_v42  ;;  %v2883_v33 = vpop.permute.xlu0 %2882 }
0x1e42   :  { %v2887_v50 = vmul.f32 %v5296_v40, %v2883_v33 }
0x1e43   :  { %2902 = vrot.lane.b32.xlu1 %v2897_v25, %s5676_s26 }
0x1eae   :  { %v2901_v7 = vpop.permute.xlu1 %2900 }
0x1eaf   :  { %v2906_v47 = vadd.f32 %v2901_v7, %v2886_v49 }
0x1eb1   :  { %5297 = vtanh.f32 %v2906_v47 }
0x1eb5   :  { %v2903_v52 = vpop.permute.xlu1 %2902 }
0x1eb6   :  { %v2907_v54 = vadd.f32 %v2903_v52, %v2887_v50 }
0x1eb8   :  { %5299 = vtanh.f32 %v2907_v54 }
0x1ebb   :  { %v5298_v56 = vpop.eup %5297 }
0x1ebc   :  { %2912 = vrot.lane.b32.xlu0 %v5298_v56, %s5677_s3 }
0x1ec2   :  { %v5300_v57 = vpop.eup %5299 }
0x1ec3   :  { %2914 = vrot.lane.b32.xlu1 %v5300_v57, %s5677_s3 }
0x1f2e   :  { %v2913_v58 = vpop.permute.xlu0 %2912 }
0x1f2f   :  { %v2918_v59 = vmul.f32 %v5294_v36, %v2913_v58 }
0x1f31   :  { %2932 = vrot.lane.b32.xlu0 %v2918_v59, %s5676_s26 }
0x1f35   :  { %v2915_v37 = vpop.permute.xlu1 %2914  ;;  %2922 = vrot.lane.b32.xlu0 %v2906_v47, %s5678_s24 }
0x1f36   :  { %v2919_v60 = vmul.f32 %v5296_v40, %v2915_v37 }
0x1f38   :  { %2934 = vrot.lane.b32.xlu1 %v2919_v60, %s5676_s26 }
0x1f3c   :  { %2924 = vrot.lane.b32.xlu1 %v2907_v54, %s5678_s24 }
0x1fa3   :  { %v2933_v61 = vpop.permute.xlu0 %2932 }
0x1fa4   :  { %2938 = vst.msk [vmem:[#allocation8] sm:$0xff] %vm490_vm0, %v2933_v61  ;;  %2940 = vst.msk [vmem:[#allocation6 + $0x10] sm:$0xff] %vm490_vm0, %v2933_v61 }
0x1fa7   :  { %v2923_v53 = vpop.permute.xlu0 %2922 }
0x1fa8   :  { %2928 = vst.msk [vmem:[#allocation9] sm:$0xff] %vm490_vm0, %v2923_v53 }
0x1faa   :  { %v2935_v63 = vpop.permute.xlu1 %2934 }
0x1fab   :  { %2939 = vst.msk [vmem:[#allocation8 + $0x8] sm:$0xff] %vm490_vm0, %v2935_v63  ;;  %2941 = vst.msk [vmem:[#allocation7 + $0x28] sm:$0xff] %vm490_vm0, %v2935_v63  ;;  %v2944_v51 = vld [vmem:[#allocation8] sm:$0xff] }
0x1fac   :  { %4504 = vmatmul.mubr.msk.f32.vlgmr.msra.gmra.mrb[36].mxu1 %vm490_vm0, %v2944_v51 }
0x1fad   :  { %3022 = vmatprep.mubr.f32.mxu1 %v5675_v0  ;;  %5012 = vmatpush1.bf16.msra.mxu1 %v6266_v38 }
0x1fae   :  { %v2925_v1 = vpop.permute.xlu1 %2924  ;;  %5014 = vmatprep.subr.bf16.mxu1 %v6268_v48 }
0x1faf   :  { %2929 = vst.msk [vmem:[#allocation9 + $0x8] sm:$0xff] %vm490_vm0, %v2925_v1  ;;  %v3047_v14 = vld [vmem:[#allocation9] sm:$0xff] }
0x1fb1   :  { %5016 = vmatpush1.bf16.msra.mxu1 %v6275_v55 }
0x1fb2   :  { %v2945_v28 = vld [vmem:[#allocation8 + $0x8] sm:$0xff]  ;;  %5026 = vmatprep.subr.bf16.mxu1 %v6250_v34 }
0x1fb3   :  { %4505 = vmatmul.mubr.msk.f32.gmra.mrb[38].mxu1 %vm490_vm0, %v2945_v28 }
0x1fb4   :  { %3358 = vmatprep.mubr.f32.mxu1 %v5675_v0 }
0x1fb6   :  { %v3048_v15 = vld [vmem:[#allocation9 + $0x8] sm:$0xff] }
0x207f   :  { %v3018_v3 = vpop.f32.mrb[36].mxu1 }
0x2080   :  { %v3031_v5 = vadd.f32 %v3018_v3, %v6310_v6  ;;  %v3020_v62 = vpop.f32.mrb[37].mxu1 }
0x2082   :  { %5301 = vtanh.f32 %v3031_v5  ;;  %v4506_v6 = vmul.f32 -1.442695, %v3031_v5 }
0x2086   :  { %v3024_v9 = vpop.f32.mrb[38].mxu1 }
0x2087   :  { %v3026_v10 = vpop.f32.mrb[39].mxu1 }
0x2088   :  { %v3032_v19 = vadd.f32 %v3026_v10, %v6324_v16 }
0x208a   :  { %5303 = vtanh.f32 %v3032_v19  ;;  %v4507_v18 = vmul.f32 -1.442695, %v3032_v19 }
0x208b   :  { %5305 = vpow2.f32 %v4506_v6 }
0x208c   :  { %v5302_v12 = vpop.eup %5301  ;;  %5307 = vpow2.f32 %v4507_v18 }
0x208d   :  { %3061 = vrot.lane.b32.xlu0 %v5302_v12, %s5677_s3 }
0x2091   :  { %3051 = vrot.lane.b32.xlu0 %v3047_v14, %s5676_s26 }
0x2094   :  { %v5304_v34 = vpop.eup %5303 }
0x2095   :  { %3063 = vrot.lane.b32.xlu1 %v5304_v34, %s5677_s3  ;;  %3053 = vrot.lane.b32.xlu0 %v3048_v15, %s5676_s26  ;;  %v5306_v20 = vpop.eup %5305 }
0x2096   :  { %v3039_v22 = vadd.f32 1.0, %v5306_v20  ;;  %v5308_v16 = vpop.eup %5307 }
0x2097   :  { %v3040_v23 = vadd.f32 1.0, %v5308_v16 }
0x2098   :  { %5309 = vrcp.f32 %v3039_v22 }
0x2099   :  { %5311 = vrcp.f32 %v3040_v23 }
0x20a2   :  { %v5310_v26 = vpop.eup %5309 }
0x20a3   :  { %v5312_v30 = vpop.eup %5311 }
0x20ff   :  { %v3062_v27 = vpop.permute.xlu0 %3061 }
0x2100   :  { %v3067_v29 = vmul.f32 %v5310_v26, %v3062_v27 }
0x2102   :  { %3071 = vrot.lane.b32.xlu1 %v3067_v29, %s5676_s26 }
0x2103   :  { %v3052_v31 = vpop.permute.xlu0 %3051 }
0x2104   :  { %v3057_v32 = vmul.f32 %v5310_v26, %v3052_v31 }
0x2107   :  { %v3064_v17 = vpop.permute.xlu1 %3063  ;;  %v3054_v36 = vpop.permute.xlu0 %3053 }
0x2108   :  { %v3068_v45 = vmul.f32 %v5312_v30, %v3064_v17  ;;  %v3058_v35 = vmul.f32 %v5312_v30, %v3054_v36 }
0x210a   :  { %3073 = vrot.lane.b32.xlu1 %v3068_v45, %s5676_s26 }
0x2174   :  { %v3072_v13 = vpop.permute.xlu1 %3071 }
0x2175   :  { %v3077_v43 = vadd.f32 %v3072_v13, %v3057_v32 }
0x2177   :  { %5313 = vtanh.f32 %v3077_v43 }
0x217c   :  { %v3074_v39 = vpop.permute.xlu1 %3073 }
0x217d   :  { %v3078_v40 = vadd.f32 %v3074_v39, %v3058_v35 }
0x217f   :  { %5315 = vtanh.f32 %v3078_v40 }
0x2181   :  { %v5314_v42 = vpop.eup %5313 }
0x2182   :  { %3083 = vrot.lane.b32.xlu0 %v5314_v42, %s5677_s3 }
0x2189   :  { %v5316_v25 = vpop.eup %5315 }
0x218a   :  { %3085 = vrot.lane.b32.xlu1 %v5316_v25, %s5677_s3 }
0x21f4   :  { %v3084_v44 = vpop.permute.xlu0 %3083 }
0x21f5   :  { %v3089_v49 = vmul.f32 %v5310_v26, %v3084_v44 }
0x21f7   :  { %3103 = vrot.lane.b32.xlu0 %v3089_v49, %s5676_s26 }
0x21fb   :  { %3093 = vrot.lane.b32.xlu0 %v3077_v43, %s5678_s24 }
0x21fc   :  { %v3086_v7 = vpop.permute.xlu1 %3085 }
0x21fd   :  { %v3090_v47 = vmul.f32 %v5312_v30, %v3086_v7 }
0x21ff   :  { %3105 = vrot.lane.b32.xlu1 %v3090_v47, %s5676_s26 }
0x2203   :  { %3095 = vrot.lane.b32.xlu1 %v3078_v40, %s5678_s24 }
0x2269   :  { %v3104_v33 = vpop.permute.xlu0 %3103 }
0x226a   :  { %3109 = vst.msk [vmem:[#allocation8] sm:$0xff] %vm490_vm0, %v3104_v33  ;;  %3111 = vst.msk [vmem:[#allocation6 + $0x18] sm:$0xff] %vm490_vm0, %v3104_v33 }
0x226d   :  { %v3094_v50 = vpop.permute.xlu0 %3093 }
0x226e   :  { %3099 = vst.msk [vmem:[#allocation9] sm:$0xff] %vm490_vm0, %v3094_v50 }
0x2271   :  { %v3106_v52 = vpop.permute.xlu1 %3105  ;;  %v3115_v54 = vld [vmem:[#allocation8] sm:$0xff] }
0x2272   :  { %3110 = vst.msk [vmem:[#allocation8 + $0x8] sm:$0xff] %vm490_vm0, %v3106_v52  ;;  %3112 = vst.msk [vmem:[#allocation7 + $0x20] sm:$0xff] %vm490_vm0, %v3106_v52  ;;  %4508 = vmatmul.mubr.msk.f32.vlgmr.msra.gmra.mrb[40].mxu0 %vm490_vm0, %v3115_v54 }
0x2273   :  { %3193 = vmatprep.mubr.f32.mxu0 %v5675_v0  ;;  %5020 = vmatpush1.bf16.msra.mxu0 %v6266_v38 }
0x2274   :  { %5022 = vmatprep.subr.bf16.mxu0 %v6268_v48 }
0x2275   :  { %v3096_v56 = vpop.permute.xlu1 %3095  ;;  %v3218_v51 = vld [vmem:[#allocation9] sm:$0xff] }
0x2276   :  { %3100 = vst.msk [vmem:[#allocation9 + $0x8] sm:$0xff] %vm490_vm0, %v3096_v56 }
0x2277   :  { %5024 = vmatpush1.bf16.msra.mxu0 %v6275_v55 }
0x2279   :  { %v3116_v57 = vld [vmem:[#allocation8 + $0x8] sm:$0xff] }
0x227a   :  { %4509 = vmatmul.mubr.msk.f32.gmra.mrb[42].mxu0 %vm490_vm0, %v3116_v57 }
0x227b   :  { %3529 = vmatprep.mubr.f32.mxu0 %v5675_v0 }
0x227d   :  { %v3219_v1 = vld [vmem:[#allocation9 + $0x8] sm:$0xff] }
0x2345   :  { %v3189_v58 = vpop.f32.mrb[40].mxu0 }
0x2346   :  { %v3202_v59 = vadd.f32 %v3189_v58, %v6322_v46  ;;  %v3191_v37 = vpop.f32.mrb[41].mxu0 }
0x2348   :  { %5317 = vtanh.f32 %v3202_v59  ;;  %v4510_v46 = vmul.f32 -1.442695, %v3202_v59 }
0x234d   :  { %v3195_v60 = vpop.f32.mrb[42].mxu0 }
0x234e   :  { %v3197_v61 = vpop.f32.mrb[43].mxu0 }
0x234f   :  { %v3203_v53 = vadd.f32 %v3197_v61, %v6312_v8 }
0x2351   :  { %5319 = vtanh.f32 %v3203_v53  ;;  %v4511_v3 = vmul.f32 -1.442695, %v3203_v53 }
0x2352   :  { %v5318_v63 = vpop.eup %5317  ;;  %5321 = vpow2.f32 %v4510_v46 }
0x2353   :  { %3232 = vrot.lane.b32.xlu0 %v5318_v63, %s5677_s3  ;;  %5323 = vpow2.f32 %v4511_v3 }
0x2357   :  { %3222 = vrot.lane.b32.xlu0 %v3218_v51, %s5676_s26 }
0x235b   :  { %v5320_v28 = vpop.eup %5319  ;;  %3224 = vrot.lane.b32.xlu0 %v3219_v1, %s5676_s26 }
0x235c   :  { %3234 = vrot.lane.b32.xlu1 %v5320_v28, %s5677_s3  ;;  %v5322_v5 = vpop.eup %5321 }
0x235d   :  { %v3210_v62 = vadd.f32 1.0, %v5322_v5  ;;  %v5324_v8 = vpop.eup %5323 }
0x235e   :  { %v3211_v9 = vadd.f32 1.0, %v5324_v8 }
0x235f   :  { %5325 = vrcp.f32 %v3210_v62 }
0x2360   :  { %5327 = vrcp.f32 %v3211_v9 }
0x2369   :  { %v5326_v10 = vpop.eup %5325 }
0x236a   :  { %v5328_v14 = vpop.eup %5327 }
0x23c5   :  { %v3233_v19 = vpop.permute.xlu0 %3232 }
0x23c6   :  { %v3238_v12 = vmul.f32 %v5326_v10, %v3233_v19 }
0x23c8   :  { %3242 = vrot.lane.b32.xlu1 %v3238_v12, %s5676_s26 }
0x23c9   :  { %v3223_v6 = vpop.permute.xlu0 %3222 }
0x23ca   :  { %v3228_v18 = vmul.f32 %v5326_v10, %v3223_v6 }
0x23cd   :  { %v3225_v16 = vpop.permute.xlu0 %3224 }
0x23ce   :  { %v3235_v34 = vpop.permute.xlu1 %3234  ;;  %v3229_v23 = vmul.f32 %v5328_v14, %v3225_v16 }
0x23cf   :  { %v3239_v15 = vmul.f32 %v5328_v14, %v3235_v34 }
0x23d1   :  { %3244 = vrot.lane.b32.xlu1 %v3239_v15, %s5676_s26 }
0x243a   :  { %v3243_v20 = vpop.permute.xlu1 %3242 }
0x243b   :  { %v3248_v22 = vadd.f32 %v3243_v20, %v3228_v18 }
0x243d   :  { %5329 = vtanh.f32 %v3248_v22 }
0x2443   :  { %v3245_v26 = vpop.permute.xlu1 %3244 }
0x2444   :  { %v3249_v27 = vadd.f32 %v3245_v26, %v3229_v23 }
0x2446   :  { %5331 = vtanh.f32 %v3249_v27 }
0x2447   :  { %v5330_v29 = vpop.eup %5329 }
0x2448   :  { %3254 = vrot.lane.b32.xlu0 %v5330_v29, %s5677_s3 }
0x2450   :  { %v5332_v30 = vpop.eup %5331 }
0x2451   :  { %3256 = vrot.lane.b32.xlu1 %v5332_v30, %s5677_s3 }
0x24ba   :  { %v3255_v17 = vpop.permute.xlu0 %3254 }
0x24bb   :  { %v3260_v45 = vmul.f32 %v5326_v10, %v3255_v17 }
0x24bd   :  { %3274 = vrot.lane.b32.xlu0 %v3260_v45, %s5676_s26 }
0x24c1   :  { %3264 = vrot.lane.b32.xlu0 %v3248_v22, %s5678_s24 }
0x24c3   :  { %v3257_v31 = vpop.permute.xlu1 %3256 }
0x24c4   :  { %v3261_v32 = vmul.f32 %v5328_v14, %v3257_v31 }
0x24c6   :  { %3276 = vrot.lane.b32.xlu1 %v3261_v32, %s5676_s26 }
0x24ca   :  { %3266 = vrot.lane.b32.xlu1 %v3249_v27, %s5678_s24 }
0x252f   :  { %v3275_v13 = vpop.permute.xlu0 %3274 }
0x2530   :  { %3280 = vst.msk [vmem:[#allocation8] sm:$0xff] %vm490_vm0, %v3275_v13  ;;  %3282 = vst.msk [vmem:[#allocation6 + $0x20] sm:$0xff] %vm490_vm0, %v3275_v13 }
0x2533   :  { %v3265_v43 = vpop.permute.xlu0 %3264 }
0x2534   :  { %3270 = vst.msk [vmem:[#allocation9] sm:$0xff] %vm490_vm0, %v3265_v43 }
0x2537   :  { %v3286_v36 = vld [vmem:[#allocation8] sm:$0xff] }
0x2538   :  { %v3277_v35 = vpop.permute.xlu1 %3276  ;;  %4512 = vmatmul.mubr.msk.f32.vlgmr.msra.gmra.mrb[40].mxu1 %vm490_vm0, %v3286_v36 }
0x2539   :  { %3281 = vst.msk [vmem:[#allocation8 + $0x8] sm:$0xff] %vm490_vm0, %v3277_v35  ;;  %3283 = vst.msk [vmem:[#allocation7 + $0x18] sm:$0xff] %vm490_vm0, %v3277_v35  ;;  %3364 = vmatprep.mubr.f32.mxu1 %v5675_v0  ;;  %5028 = vmatpush1.bf16.msra.mxu1 %v6266_v38 }
0x253a   :  { %5030 = vmatprep.subr.bf16.mxu1 %v6268_v48 }
0x253b   :  { %v3389_v47 = vld [vmem:[#allocation9] sm:$0xff] }
0x253c   :  { %v3267_v39 = vpop.permute.xlu1 %3266 }
0x253d   :  { %3271 = vst.msk [vmem:[#allocation9 + $0x8] sm:$0xff] %vm490_vm0, %v3267_v39  ;;  %5032 = vmatpush1.bf16.msra.mxu1 %v6275_v55 }
0x2540   :  { %v3287_v40 = vld [vmem:[#allocation8 + $0x8] sm:$0xff] }
0x2541   :  { %4513 = vmatmul.mubr.msk.f32.gmra.mrb[42].mxu1 %vm490_vm0, %v3287_v40 }
0x2542   :  { %3700 = vmatprep.mubr.f32.mxu1 %v5675_v0 }
0x2544   :  { %v3390_v55 = vld [vmem:[#allocation9 + $0x8] sm:$0xff] }
0x260b   :  { %v3360_v42 = vpop.f32.mrb[40].mxu1 }
0x260c   :  { %v3373_v25 = vadd.f32 %v3360_v42, %v6318_v41  ;;  %v3362_v44 = vpop.f32.mrb[41].mxu1 }
0x260e   :  { %5333 = vtanh.f32 %v3373_v25  ;;  %v4514_v41 = vmul.f32 -1.442695, %v3373_v25 }
0x2614   :  { %v3366_v49 = vpop.f32.mrb[42].mxu1 }
0x2615   :  { %v3368_v7 = vpop.f32.mrb[43].mxu1 }
0x2616   :  { %v3374_v38 = vadd.f32 %v3368_v7, %v6316_v11 }
0x2618   :  { %v5334_v48 = vpop.eup %5333  ;;  %5335 = vtanh.f32 %v3374_v38  ;;  %v4515_v50 = vmul.f32 -1.442695, %v3374_v38 }
0x2619   :  { %3403 = vrot.lane.b32.xlu0 %v5334_v48, %s5677_s3  ;;  %5337 = vpow2.f32 %v4514_v41 }
0x261a   :  { %5339 = vpow2.f32 %v4515_v50 }
0x261d   :  { %3393 = vrot.lane.b32.xlu0 %v3389_v47, %s5676_s26 }
0x2621   :  { %3395 = vrot.lane.b32.xlu0 %v3390_v55, %s5676_s26 }
0x2622   :  { %v5336_v33 = vpop.eup %5335 }
0x2623   :  { %3405 = vrot.lane.b32.xlu1 %v5336_v33, %s5677_s3  ;;  %v5338_v52 = vpop.eup %5337 }
0x2624   :  { %v3381_v54 = vadd.f32 1.0, %v5338_v52  ;;  %v5340_v11 = vpop.eup %5339 }
0x2625   :  { %v3382_v56 = vadd.f32 1.0, %v5340_v11 }
0x2626   :  { %5341 = vrcp.f32 %v3381_v54 }
0x2627   :  { %5343 = vrcp.f32 %v3382_v56 }
0x2630   :  { %v5342_v57 = vpop.eup %5341 }
0x2631   :  { %v5344_v37 = vpop.eup %5343 }
0x268b   :  { %v3404_v58 = vpop.permute.xlu0 %3403 }
0x268c   :  { %v3409_v59 = vmul.f32 %v5342_v57, %v3404_v58 }
0x268e   :  { %3413 = vrot.lane.b32.xlu1 %v3409_v59, %s5676_s26 }
0x268f   :  { %v3394_v53 = vpop.permute.xlu0 %3393 }
0x2690   :  { %v3399_v63 = vmul.f32 %v5342_v57, %v3394_v53 }
0x2693   :  { %v3396_v28 = vpop.permute.xlu0 %3395 }
0x2694   :  { %v3400_v46 = vmul.f32 %v5344_v37, %v3396_v28 }
0x2695   :  { %v3406_v60 = vpop.permute.xlu1 %3405 }
0x2696   :  { %v3410_v61 = vmul.f32 %v5344_v37, %v3406_v60 }
0x2698   :  { %3415 = vrot.lane.b32.xlu1 %v3410_v61, %s5676_s26 }
0x2700   :  { %v3414_v51 = vpop.permute.xlu1 %3413 }
0x2701   :  { %v3419_v1 = vadd.f32 %v3414_v51, %v3399_v63 }
0x2703   :  { %5345 = vtanh.f32 %v3419_v1 }
0x270a   :  { %v3416_v3 = vpop.permute.xlu1 %3415 }
0x270b   :  { %v3420_v5 = vadd.f32 %v3416_v3, %v3400_v46 }
0x270d   :  { %v5346_v62 = vpop.eup %5345  ;;  %5347 = vtanh.f32 %v3420_v5 }
0x270e   :  { %3425 = vrot.lane.b32.xlu0 %v5346_v62, %s5677_s3 }
0x2717   :  { %v5348_v8 = vpop.eup %5347 }
0x2718   :  { %3427 = vrot.lane.b32.xlu1 %v5348_v8, %s5677_s3 }
0x2780   :  { %v3426_v9 = vpop.permute.xlu0 %3425 }
0x2781   :  { %v3431_v10 = vmul.f32 %v5342_v57, %v3426_v9 }
0x2783   :  { %3445 = vrot.lane.b32.xlu0 %v3431_v10, %s5676_s26 }
0x2787   :  { %3435 = vrot.lane.b32.xlu0 %v3419_v1, %s5678_s24 }
0x278a   :  { %v3428_v19 = vpop.permute.xlu1 %3427 }
0x278b   :  { %v3432_v12 = vmul.f32 %v5344_v37, %v3428_v19 }
0x278d   :  { %3447 = vrot.lane.b32.xlu1 %v3432_v12, %s5676_s26 }
0x2791   :  { %3437 = vrot.lane.b32.xlu1 %v3420_v5, %s5678_s24 }
0x27f5   :  { %v3446_v14 = vpop.permute.xlu0 %3445 }
0x27f6   :  { %3451 = vst.msk [vmem:[#allocation8] sm:$0xff] %vm490_vm0, %v3446_v14  ;;  %3453 = vst.msk [vmem:[#allocation6 + $0x28] sm:$0xff] %vm490_vm0, %v3446_v14 }
0x27f9   :  { %v3436_v34 = vpop.permute.xlu0 %3435 }
0x27fa   :  { %3441 = vst.msk [vmem:[#allocation9] sm:$0xff] %vm490_vm0, %v3436_v34 }
0x27fd   :  { %v3457_v15 = vld [vmem:[#allocation8] sm:$0xff] }
0x27fe   :  { %4516 = vmatmul.mubr.msk.f32.vlgmr.msra.gmra.mrb[44].mxu0 %vm490_vm0, %v3457_v15 }
0x27ff   :  { %v3448_v6 = vpop.permute.xlu1 %3447  ;;  %3535 = vmatprep.mubr.f32.mxu0 %v5675_v0 }
0x2800   :  { %3452 = vst.msk [vmem:[#allocation8 + $0x8] sm:$0xff] %vm490_vm0, %v3448_v6  ;;  %3454 = vst.msk [vmem:[#allocation7 + $0x10] sm:$0xff] %vm490_vm0, %v3448_v6 }
0x2801   :  { %v3560_v17 = vld [vmem:[#allocation9] sm:$0xff] }
0x2803   :  { %v3438_v18 = vpop.permute.xlu1 %3437 }
0x2804   :  { %3442 = vst.msk [vmem:[#allocation9 + $0x8] sm:$0xff] %vm490_vm0, %v3438_v18 }
0x2807   :  { %v3458_v20 = vld [vmem:[#allocation8 + $0x8] sm:$0xff] }
0x2808   :  { %4517 = vmatmul.mubr.msk.f32.gmra.mrb[46].mxu0 %vm490_vm0, %v3458_v20 }
0x280b   :  { %v3561_v45 = vld [vmem:[#allocation9 + $0x8] sm:$0xff] }
0x28d1   :  { %v3531_v22 = vpop.f32.mrb[44].mxu0 }
0x28d2   :  { %v3544_v16 = vadd.f32 %v3531_v22, %v6328_v24  ;;  %v3533_v23 = vpop.f32.mrb[45].mxu0 }
0x28d4   :  { %5349 = vtanh.f32 %v3544_v16  ;;  %v4518_v24 = vmul.f32 -1.442695, %v3544_v16 }
0x28db   :  { %v3537_v26 = vpop.f32.mrb[46].mxu0 }
0x28dc   :  { %v3539_v27 = vpop.f32.mrb[47].mxu0 }
0x28dd   :  { %v3545_v29 = vadd.f32 %v3539_v27, %v6306_v2 }
0x28de   :  { %v5350_v30 = vpop.eup %5349 }
0x28df   :  { %5351 = vtanh.f32 %v3545_v29  ;;  %3574 = vrot.lane.b32.xlu0 %v5350_v30, %s5677_s3  ;;  %v4519_v32 = vmul.f32 -1.442695, %v3545_v29 }
0x28e0   :  { %5353 = vpow2.f32 %v4518_v24  ;;  %v3817_v24 = vld [vmem:[%s6664_s11 + $0x20] sm:$0xff] }
0x28e1   :  { %5355 = vpow2.f32 %v4519_v32  ;;  %v3818_v32 = vld [vmem:[%s6664_s11 + $0x28] sm:$0xff] }
0x28e3   :  { %3564 = vrot.lane.b32.xlu0 %v3560_v17, %s5676_s26 }
0x28e7   :  { %3566 = vrot.lane.b32.xlu0 %v3561_v45, %s5676_s26 }
0x28e9   :  { %v5352_v31 = vpop.eup %5351 }
0x28ea   :  { %3576 = vrot.lane.b32.xlu1 %v5352_v31, %s5677_s3  ;;  %v5354_v13 = vpop.eup %5353 }
0x28eb   :  { %v3552_v43 = vadd.f32 1.0, %v5354_v13  ;;  %v5356_v2 = vpop.eup %5355  ;;  %v5033_v13 = vpack.c.bf16 %v3818_v32, %v3817_v24 }
0x28ec   :  { %v3553_v36 = vadd.f32 1.0, %v5356_v2  ;;  %v3820_v2 = vld [vmem:[%s6664_s11 + $0x38] sm:$0xff] }
0x28ed   :  { %5357 = vrcp.f32 %v3552_v43  ;;  %5034 = vmatprep.subr.bf16.mxu0 %v5033_v13  ;;  %v3819_v43 = vld [vmem:[%s6664_s11 + $0x30] sm:$0xff] }
0x28ee   :  { %5359 = vrcp.f32 %v3553_v36  ;;  %5036 = vmatpush3.bf16.msra.mxu0 %v5033_v13  ;;  %v5037_v36 = vpack.c.bf16 %v3820_v2, %v3819_v43 }
0x28f0   :  { %5038 = vmatprep.subr.bf16.mxu0 %v5037_v36 }
0x28f2   :  { %5040 = vmatpush3.bf16.msra.mxu0 %v5037_v36 }
0x28f7   :  { %v5358_v35 = vpop.eup %5357 }
0x28f8   :  { %v5360_v42 = vpop.eup %5359 }
0x2951   :  { %v3575_v39 = vpop.permute.xlu0 %3574 }
0x2952   :  { %v3580_v40 = vmul.f32 %v5358_v35, %v3575_v39  ;;  %v3814_v39 = vld [vmem:[%s6664_s11 + $0x8] sm:$0xff] }
0x2954   :  { %3584 = vrot.lane.b32.xlu1 %v3580_v40, %s5676_s26 }
0x2955   :  { %v3565_v49 = vpop.permute.xlu0 %3564 }
0x2956   :  { %v3570_v7 = vmul.f32 %v5358_v35, %v3565_v49 }
0x2959   :  { %v3567_v47 = vpop.permute.xlu0 %3566 }
0x295a   :  { %v3571_v55 = vmul.f32 %v5360_v42, %v3567_v47 }
0x295c   :  { %v3577_v25 = vpop.permute.xlu1 %3576 }
0x295d   :  { %v3581_v44 = vmul.f32 %v5360_v42, %v3577_v25 }
0x295f   :  { %3586 = vrot.lane.b32.xlu1 %v3581_v44, %s5676_s26 }
0x29c6   :  { %v3585_v38 = vpop.permute.xlu1 %3584 }
0x29c7   :  { %v3590_v48 = vadd.f32 %v3585_v38, %v3570_v7  ;;  %v4102_v7 = vld [vmem:[%s6666_s13] sm:$0xff]  ;;  %v4103_v38 = vld [vmem:[%s6666_s13 + $0x8] sm:$0xff] }
0x29c8   :  { %v5049_v47 = vpack.c.bf16 %v4103_v38, %v4102_v7 }
0x29c9   :  { %5361 = vtanh.f32 %v3590_v48 }
0x29ca   :  { %5073 = vmatprep.subr.bf16.mxu1 %v5049_v47 }
0x29d1   :  { %v3587_v33 = vpop.permute.xlu1 %3586 }
0x29d2   :  { %v3591_v41 = vadd.f32 %v3587_v33, %v3571_v55  ;;  %v4105_v55 = vld [vmem:[%s6666_s13 + $0x18] sm:$0xff] }
0x29d3   :  { %v5362_v50 = vpop.eup %5361 }
0x29d4   :  { %5363 = vtanh.f32 %v3591_v41  ;;  %3596 = vrot.lane.b32.xlu0 %v5362_v50, %s5677_s3  ;;  %v4107_v50 = vld [vmem:[%s6666_s13 + $0x28] sm:$0xff] }
0x29de   :  { %v5364_v52 = vpop.eup %5363 }
0x29df   :  { %3598 = vrot.lane.b32.xlu1 %v5364_v52, %s5677_s3 }
0x2a46   :  { %v3597_v54 = vpop.permute.xlu0 %3596 }
0x2a47   :  { %v3602_v11 = vmul.f32 %v5358_v35, %v3597_v54  ;;  %v3813_v35 = vld [vmem:[%s6664_s11] sm:$0xff] }
0x2a49   :  { %3616 = vrot.lane.b32.xlu0 %v3602_v11, %s5676_s26 }
0x2a4d   :  { %3608 = vrot.lane.b32.xlu0 %v3591_v41, %s5678_s24  ;;  %v4106_v41 = vld [vmem:[%s6666_s13 + $0x20] sm:$0xff] }
0x2a4e   :  { %v5057_v52 = vpack.c.bf16 %v4107_v50, %v4106_v41 }
0x2a51   :  { %v3599_v56 = vpop.permute.xlu1 %3598  ;;  %3606 = vrot.lane.b32.xlu0 %v3590_v48, %s5678_s24  ;;  %v4104_v48 = vld [vmem:[%s6666_s13 + $0x10] sm:$0xff] }
0x2a52   :  { %v3603_v57 = vmul.f32 %v5360_v42, %v3599_v56  ;;  %v5041_v42 = vpack.c.bf16 %v3814_v39, %v3813_v35  ;;  %v5053_v33 = vpack.c.bf16 %v4105_v55, %v4104_v48  ;;  %v4541_v48 = vld [vmem:[#allocation27] ss:$0 sm:$0xff] }
0x2a54   :  { %3618 = vrot.lane.b32.xlu1 %v3603_v57, %s5676_s26  ;;  %5042 = vmatprep.subr.bf16.mxu0 %v5041_v42  ;;  %v3815_v57 = vld [vmem:[%s6664_s11 + $0x10] sm:$0xff] }
0x2abb   :  { %v3617_v58 = vpop.permute.xlu0 %3616 }
0x2abc   :  { %3622 = vst.msk [vmem:[#allocation8] sm:$0xff] %vm490_vm0, %v3617_v58  ;;  %3624 = vst.msk [vmem:[#allocation6 + $0x30] sm:$0xff] %vm490_vm0, %v3617_v58  ;;  %v3816_v58 = vld [vmem:[%s6664_s11 + $0x18] sm:$0xff] }
0x2abf   :  { %v3609_v59 = vpop.permute.xlu0 %3608 }
0x2ac0   :  { %3613 = vst.msk [vmem:[#allocation9 + $0x8] sm:$0xff] %vm490_vm0, %v3609_v59 }
0x2ac3   :  { %v3607_v37 = vpop.permute.xlu0 %3606  ;;  %v3628_v60 = vld [vmem:[#allocation8] sm:$0xff] }
0x2ac4   :  { %3612 = vst.msk [vmem:[#allocation9] sm:$0xff] %vm490_vm0, %v3607_v37  ;;  %4520 = vmatmul.mubr.msk.f32.vlgmr.msra.gmra.mrb[44].mxu1 %vm490_vm0, %v3628_v60  ;;  %v5045_v60 = vpack.c.bf16 %v3816_v58, %v3815_v57 }
0x2ac5   :  { %3706 = vmatprep.mubr.f32.mxu1 %v5675_v0  ;;  %5077 = vmatpush3.bf16.msra.mxu1 %v5049_v47 }
0x2ac6   :  { %v3619_v61 = vpop.permute.xlu1 %3618  ;;  %5074 = vmatprep.subr.bf16.mxu1 %v5053_v33 }
0x2ac7   :  { %3623 = vst.msk [vmem:[#allocation8 + $0x8] sm:$0xff] %vm490_vm0, %v3619_v61  ;;  %3625 = vst.msk [vmem:[#allocation7 + $0x8] sm:$0xff] %vm490_vm0, %v3619_v61  ;;  %v3732_v53 = vld [vmem:[#allocation9 + $0x8] sm:$0xff] }
0x2ac8   :  { %3737 = vrot.lane.b32.xlu0 %v3732_v53, %s5676_s26  ;;  %v3807_v53 = vld [vmem:[#allocation7 + $0x10] sm:$0xff] }
0x2ac9   :  { %5078 = vmatpush3.bf16.msra.mxu1 %v5053_v33 }
0x2aca   :  { %5075 = vmatprep.subr.bf16.mxu1 %v5057_v52 }
0x2acb   :  { %v3731_v63 = vld [vmem:[#allocation9] sm:$0xff] }
0x2acc   :  { %3735 = vrot.lane.b32.xlu0 %v3731_v63, %s5676_s26  ;;  %v3808_v63 = vld [vmem:[#allocation7 + $0x18] sm:$0xff] }
0x2acd   :  { %5079 = vmatpush3.bf16.msra.mxu1 %v5057_v52 }
0x2ace   :  { %v3629_v51 = vld [vmem:[#allocation8 + $0x8] sm:$0xff] }
0x2acf   :  { %4521 = vmatmul.mubr.msk.f32.gmra.mrb[46].mxu1 %vm490_vm0, %v3629_v51  ;;  %v3806_v61 = vld [vmem:[#allocation7 + $0x8] sm:$0xff]  ;;  %v3809_v51 = vld [vmem:[#allocation7 + $0x20] sm:$0xff] }
0x2b3a   :  { %v3738_v22 = vpop.permute.xlu0 %3737 }
0x2b3e   :  { %v3736_v27 = vpop.permute.xlu0 %3735 }
0x2b97   :  { %v3702_v1 = vpop.f32.mrb[44].mxu1 }
0x2b98   :  { %v3715_v28 = vadd.f32 %v3702_v1, %v6326_v21  ;;  %v3704_v46 = vpop.f32.mrb[45].mxu1  ;;  %v3810_v1 = vld [vmem:[#allocation7 + $0x28] sm:$0xff] }
0x2b99   :  { %v3812_v46 = vld [vmem:[#allocation7 + $0x38] sm:$0xff] }
0x2b9a   :  { %v4522_v10 = vmul.f32 -1.442695, %v3715_v28 }
0x2ba2   :  { %v3708_v3 = vpop.f32.mrb[46].mxu1 }
0x2ba3   :  { %v3710_v0 = vpop.f32.mrb[47].mxu1  ;;  %v3797_v3 = vld [vmem:[#allocation6] sm:$0xff] }
0x2ba4   :  { %v3716_v5 = vadd.f32 %v3710_v0, %v6308_v4  ;;  %v3798_v0 = vld [vmem:[#allocation6 + $0x8] sm:$0xff] }
0x2ba6   :  { %5365 = vtanh.f32 %v3716_v5  ;;  %v4523_v9 = vmul.f32 -1.442695, %v3716_v5  ;;  %v3799_v5 = vld [vmem:[#allocation6 + $0x10] sm:$0xff] }
0x2ba7   :  { %5367 = vtanh.f32 %v3715_v28  ;;  %v3811_v28 = vld [vmem:[#allocation7 + $0x30] sm:$0xff] }
0x2ba8   :  { %5369 = vpow2.f32 %v4523_v9  ;;  %v3802_v9 = vld [vmem:[#allocation6 + $0x28] sm:$0xff] }
0x2ba9   :  { %5371 = vpow2.f32 %v4522_v10  ;;  %v3803_v10 = vld [vmem:[#allocation6 + $0x30] sm:$0xff] }
0x2bb0   :  { %v5366_v62 = vpop.eup %5365 }
0x2bb1   :  { %3747 = vrot.lane.b32.xlu1 %v5366_v62, %s5677_s3  ;;  %v5368_v8 = vpop.eup %5367  ;;  %v3800_v62 = vld [vmem:[#allocation6 + $0x18] sm:$0xff] }
0x2bb2   :  { %v5370_v19 = vpop.eup %5369 }
0x2bb3   :  { %v3724_v12 = vadd.f32 1.0, %v5370_v19  ;;  %v5372_v21 = vpop.eup %5371 }
0x2bb4   :  { %v3723_v14 = vadd.f32 1.0, %v5372_v21  ;;  %v4109_v21 = vld [vmem:[%s6666_s13 + $0x38] sm:$0xff] }
0x2bb5   :  { %3745 = vrot.lane.b32.xlu1 %v5368_v8, %s5677_s3  ;;  %5373 = vrcp.f32 %v3724_v12  ;;  %v3801_v8 = vld [vmem:[#allocation6 + $0x20] sm:$0xff]  ;;  %v4108_v12 = vld [vmem:[%s6666_s13 + $0x30] sm:$0xff] }
0x2bb6   :  { %5375 = vrcp.f32 %v3723_v14  ;;  %v5061_v14 = vpack.c.bf16 %v4109_v21, %v4108_v12 }
0x2bb8   :  { %5076 = vmatprep.subr.bf16.mxu1 %v5061_v14 }
0x2bb9   :  { %5080 = vmatpush3.bf16.msra.mxu1 %v5061_v14 }
0x2bbf   :  { %v5374_v34 = vpop.eup %5373 }
0x2bc0   :  { %v5376_v6 = vpop.eup %5375  ;;  %v3742_v16 = vmul.f32 %v5374_v34, %v3738_v22 }
0x2bc1   :  { %v3741_v29 = vmul.f32 %v5376_v6, %v3736_v27 }
0x2c23   :  { %v3748_v4 = vpop.permute.xlu1 %3747 }
0x2c24   :  { %v3752_v15 = vmul.f32 %v5374_v34, %v3748_v4  ;;  %v4248_v4 = vld [vmem:[%s6668_s15 + $0x8] sm:$0xff] }
0x2c26   :  { %3757 = vrot.lane.b32.xlu1 %v3752_v15, %s5676_s26 }
0x2c27   :  { %v3746_v18 = vpop.permute.xlu1 %3745 }
0x2c28   :  { %v3751_v20 = vmul.f32 %v5376_v6, %v3746_v18 }
0x2c2a   :  { %3755 = vrot.lane.b32.xlu1 %v3751_v20, %s5676_s26 }
0x2c98   :  { %v3758_v23 = vpop.permute.xlu1 %3757 }
0x2c99   :  { %v3762_v26 = vadd.f32 %v3758_v23, %v3742_v16 }
0x2c9b   :  { %5377 = vtanh.f32 %v3762_v26 }
0x2c9c   :  { %v3756_v30 = vpop.permute.xlu1 %3755 }
0x2c9d   :  { %v3761_v17 = vadd.f32 %v3756_v30, %v3741_v29 }
0x2c9f   :  { %5379 = vtanh.f32 %v3761_v17 }
0x2ca5   :  { %v5378_v45 = vpop.eup %5377 }
0x2ca6   :  { %3769 = vrot.lane.b32.xlu0 %v5378_v45, %s5677_s3  ;;  %v4249_v45 = vld [vmem:[%s6668_s15 + $0x10] sm:$0xff] }
0x2ca9   :  { %v5380_v31 = vpop.eup %5379 }
0x2caa   :  { %3767 = vrot.lane.b32.xlu1 %v5380_v31, %s5677_s3  ;;  %v4250_v31 = vld [vmem:[%s6668_s15 + $0x18] sm:$0xff] }
0x2cab   :  { %v5069_v36 = vpack.c.bf16 %v4250_v31, %v4249_v45 }
0x2d18   :  { %v3770_v40 = vpop.permute.xlu0 %3769 }
0x2d19   :  { %v3774_v25 = vmul.f32 %v5374_v34, %v3770_v40  ;;  %v4247_v34 = vld [vmem:[%s6668_s15] sm:$0xff] }
0x2d1a   :  { %v5065_v15 = vpack.c.bf16 %v4248_v4, %v4247_v34 }
0x2d1b   :  { %3789 = vrot.lane.b32.xlu0 %v3774_v25, %s5676_s26 }
0x2d1c   :  { %v3768_v44 = vpop.permute.xlu1 %3767  ;;  %5066 = vmatprep.subr.bf16.mxu1 %v5065_v15 }
0x2d1d   :  { %v3773_v49 = vmul.f32 %v5376_v6, %v3768_v44  ;;  %v4540_v6 = vld [vmem:[#allocation26] ss:$0 sm:$0xff] }
0x2d1f   :  { %3787 = vrot.lane.b32.xlu1 %v3773_v49, %s5676_s26  ;;  %3777 = vrot.lane.b32.xlu0 %v3761_v17, %s5678_s24 }
0x2d23   :  { %3779 = vrot.lane.b32.xlu1 %v3762_v26, %s5678_s24 }
0x2d8d   :  { %v3790_v54 = vpop.permute.xlu0 %3789 }
0x2d8e   :  { %3794 = vst.msk [vmem:[#allocation8 + $0x8] sm:$0xff] %vm490_vm0, %v3790_v54  ;;  %3796 = vst.msk [vmem:[#allocation7] sm:$0xff] %vm490_vm0, %v3790_v54 }
0x2d91   :  { %v3788_v11 = vpop.permute.xlu1 %3787  ;;  %v3778_v56 = vpop.permute.xlu0 %3777 }
0x2d92   :  { %3793 = vst.msk [vmem:[#allocation8] sm:$0xff] %vm490_vm0, %v3788_v11  ;;  %3795 = vst.msk [vmem:[#allocation6 + $0x38] sm:$0xff] %vm490_vm0, %v3788_v11 }
0x2d93   :  { %3783 = vst.msk [vmem:[#allocation9] sm:$0xff] %vm490_vm0, %v3778_v56 }
0x2d95   :  { %v3780_v59 = vpop.permute.xlu1 %3779  ;;  %v3805_v37 = vld [vmem:[#allocation7] sm:$0xff] }
0x2d96   :  { %3784 = vst.msk [vmem:[#allocation9 + $0x8] sm:$0xff] %vm490_vm0, %v3780_v59  ;;  %4793 = vmatprep.mubr.msk.f32.mxu0 %vm490_vm0, %v3805_v37 }
0x2d97   :  { %4794 = vmatmul.mubr.msk.f32.vlgmr.msra.gmra.mrb[48].mxu0 %vm490_vm0, %v3806_v61 }
0x2d98   :  { %4796 = vmatprep.mubr.msk.f32.mxu0 %vm490_vm0, %v3807_v53  ;;  %5044 = vmatpush3.bf16.msra.mxu0 %v5041_v42 }
0x2d99   :  { %5046 = vmatprep.subr.bf16.mxu0 %v5045_v60  ;;  %v3804_v19 = vld [vmem:[#allocation6 + $0x38] sm:$0xff] }
0x2d9b   :  { %4797 = vmatmul.mubr.msk.f32.gmra.mrb[50].mxu0 %vm490_vm0, %v3808_v63  ;;  %v4550_v63 = vld [vmem:[%s6669_s16] ss:$0 sm:$0xff] }
0x2d9c   :  { %4799 = vmatprep.mubr.msk.f32.mxu0 %vm490_vm0, %v3809_v51  ;;  %5048 = vmatpush3.bf16.msra.mxu0 %v5045_v60 }
0x2d9d   :  { %5050 = vmatprep.subr.bf16.mxu0 %v5049_v47 }
0x2d9f   :  { %4800 = vmatmul.mubr.msk.f32.gmra.mrb[52].mxu0 %vm490_vm0, %v3810_v1 }
0x2da0   :  { %4802 = vmatprep.mubr.msk.f32.mxu0 %vm490_vm0, %v3811_v28 }
0x2da3   :  { %4803 = vmatmul.mubr.msk.f32.gmra.mrb[54].mxu0 %vm490_vm0, %v3812_v46 }
0x2da4   :  { %4813 = vmatprep.mubr.msk.f32.mxu0 %vm490_vm0, %v3797_v3 }
0x2da7   :  { %4814 = vmatmul.mubr.msk.f32.vlgmr.msra.gmra.mrb[48].mxu0 %vm490_vm0, %v3798_v0 }
0x2da8   :  { %4816 = vmatprep.mubr.msk.f32.mxu0 %vm490_vm0, %v3799_v5  ;;  %5052 = vmatpush3.bf16.msra.mxu0 %v5049_v47 }
0x2da9   :  { %5054 = vmatprep.subr.bf16.mxu0 %v5053_v33 }
0x2dab   :  { %4817 = vmatmul.mubr.msk.f32.gmra.mrb[50].mxu0 %vm490_vm0, %v3800_v62 }
0x2dac   :  { %4819 = vmatprep.mubr.msk.f32.mxu0 %vm490_vm0, %v3801_v8  ;;  %5056 = vmatpush3.bf16.msra.mxu0 %v5053_v33 }
0x2dad   :  { %5058 = vmatprep.subr.bf16.mxu0 %v5057_v52 }
0x2daf   :  { %4820 = vmatmul.mubr.msk.f32.gmra.mrb[52].mxu0 %vm490_vm0, %v3802_v9 }
0x2db0   :  { %4822 = vmatprep.mubr.msk.f32.mxu0 %vm490_vm0, %v3803_v10  ;;  %5060 = vmatpush3.bf16.msra.mxu0 %v5057_v52 }
0x2db1   :  { %5062 = vmatprep.subr.bf16.mxu0 %v5061_v14 }
0x2db3   :  { %4823 = vmatmul.mubr.msk.f32.gmra.mrb[54].mxu0 %vm490_vm0, %v3804_v19 }
0x2db4   :  { %5064 = vmatpush3.bf16.msra.mxu0 %v5061_v14 }
0x2e7a   :  { %v4815_v18 = vpop.f32.mrb[48].mxu0 }
0x2e7b   :  { %v4087_v20 = vadd.f32 %v4815_v18, %v4540_v6  ;;  %v4040_v22 = vpop.f32.mrb[49].mxu0 }
0x2e7c   :  { %v4086_v16 = vadd.f32 %v4540_v6, %v4040_v22 }
0x2e7d   :  { %v4095_v27 = vmax.f32 %v4087_v20, 0.0 }
0x2e7e   :  { %v4094_v23 = vmax.f32 %v4086_v16, 0.0  ;;  %v4818_v26 = vpop.f32.mrb[50].mxu0 }
0x2e7f   :  { %v4089_v29 = vadd.f32 %v4818_v26, %v4540_v6  ;;  %v4050_v30 = vpop.f32.mrb[51].mxu0 }
0x2e80   :  { %v4088_v17 = vadd.f32 %v4540_v6, %v4050_v30  ;;  %4841 = vmatprep.mubr.msk.f32.mxu0 %vm4117_vm3, %v4094_v23 }
0x2e81   :  { %4842 = vmatmul.mubr.msk.f32.vlgmr.msra.gmra.mrb[56].mxu0 %vm4117_vm3, %v4095_v27  ;;  %v4097_v13 = vmax.f32 %v4089_v29, 0.0 }
0x2e82   :  { %v4096_v24 = vmax.f32 %v4088_v17, 0.0  ;;  %v4821_v32 = vpop.f32.mrb[52].mxu0 }
0x2e83   :  { %v4091_v43 = vadd.f32 %v4821_v32, %v4540_v6  ;;  %v4060_v2 = vpop.f32.mrb[53].mxu0 }
0x2e84   :  { %v4090_v35 = vadd.f32 %v4540_v6, %v4060_v2  ;;  %4844 = vmatprep.mubr.msk.f32.mxu1 %vm4117_vm3, %v4096_v24 }
0x2e85   :  { %4845 = vmatmul.mubr.msk.f32.vlgmr.msra.gmra.mrb[48].mxu1 %vm4117_vm3, %v4097_v13  ;;  %v4099_v42 = vmax.f32 %v4091_v43, 0.0 }
0x2e86   :  { %v4098_v39 = vmax.f32 %v4090_v35, 0.0  ;;  %v4824_v40 = vpop.f32.mrb[54].mxu0  ;;  %5068 = vmatpush3.bf16.msra.mxu1 %v5065_v15 }
0x2e87   :  { %v4093_v25 = vadd.f32 %v4824_v40, %v4540_v6  ;;  %v4070_v44 = vpop.f32.mrb[55].mxu0  ;;  %5070 = vmatprep.subr.bf16.mxu1 %v5069_v36 }
0x2e88   :  { %v4092_v49 = vadd.f32 %v4540_v6, %v4070_v44  ;;  %4847 = vmatprep.mubr.msk.f32.mxu1 %vm4117_vm3, %v4098_v39 }
0x2e89   :  { %4848 = vmatmul.mubr.msk.f32.gmra.mrb[50].mxu1 %vm4117_vm3, %v4099_v42  ;;  %v4101_v38 = vmax.f32 %v4093_v25, 0.0 }
0x2e8a   :  { %v4100_v7 = vmax.f32 %v4092_v49, 0.0  ;;  %5072 = vmatpush3.bf16.msra.mxu1 %v5069_v36 }
0x2e8c   :  { %4850 = vmatprep.mubr.msk.f32.mxu1 %vm4117_vm3, %v4100_v7 }
0x2e8d   :  { %4851 = vmatmul.mubr.msk.f32.gmra.mrb[52].mxu1 %vm4117_vm3, %v4101_v38 }
0x2f54   :  { %v4843_v47 = vpop.f32.mrb[56].mxu0 }
0x2f55   :  { %v4208_v55 = vpop.f32.mrb[57].mxu0  ;;  %v4214_v41 = vadd.f32 %v4843_v47, %v4541_v48 }
0x2f56   :  { %v4209_v33 = vadd.f32 %v4541_v48, %v4208_v55 }
0x2f58   :  { %v4846_v50 = vpop.f32.mrb[48].mxu1  ;;  %4861 = vmatprep.mubr.msk.f32.mxu1 %vm490_vm0, %v4209_v33 }
0x2f59   :  { %v4218_v52 = vpop.f32.mrb[49].mxu1  ;;  %4862 = vmatmul.mubr.msk.f32.vlgmr.msra.gmra.mrb[54].mxu1 %vm490_vm0, %v4214_v41  ;;  %v4224_v11 = vadd.f32 %v4846_v50, %v4541_v48 }
0x2f5a   :  { %v4219_v54 = vadd.f32 %v4541_v48, %v4218_v52 }
0x2f5c   :  { %v4849_v56 = vpop.f32.mrb[50].mxu1  ;;  %4864 = vmatprep.mubr.msk.f32.mxu1 %vm490_vm0, %v4219_v54 }
0x2f5d   :  { %v4228_v57 = vpop.f32.mrb[51].mxu1  ;;  %4865 = vmatmul.mubr.msk.f32.gmra.mrb[56].mxu1 %vm490_vm0, %v4224_v11  ;;  %v4234_v59 = vadd.f32 %v4849_v56, %v4541_v48 }
0x2f5e   :  { %v4229_v58 = vadd.f32 %v4541_v48, %v4228_v57 }
0x2f60   :  { %v4852_v37 = vpop.f32.mrb[52].mxu1  ;;  %4867 = vmatprep.mubr.msk.f32.mxu1 %vm490_vm0, %v4229_v58 }
0x2f61   :  { %v4238_v60 = vpop.f32.mrb[53].mxu1  ;;  %4868 = vmatmul.mubr.msk.f32.gmra.mrb[58].mxu1 %vm490_vm0, %v4234_v59  ;;  %v4244_v53 = vadd.f32 %v4852_v37, %v4541_v48 }
0x2f62   :  { %v4239_v61 = vadd.f32 %v4541_v48, %v4238_v60 }
0x2f64   :  { %4870 = vmatprep.mubr.msk.f32.mxu1 %vm490_vm0, %v4239_v61 }
0x2f65   :  { %4871 = vmatmul.mubr.msk.f32.gmra.mrb[60].mxu1 %vm490_vm0, %v4244_v53 }
0x302c   :  { %v4863_v51 = vpop.f32.mrb[54].mxu1 }
0x302d   :  { %v4354_v1 = vadd.f32 %v4863_v51, %v4550_v63  ;;  %v4348_v28 = vpop.f32.mrb[55].mxu1 }
0x302e   :  { %v4349_v46 = vadd.f32 %v4550_v63, %v4348_v28 }
0x302f   :  { %4388 = vst [vmem:[%s6670_s17 + $0x8] sm:$0xff] %v4354_v1 }
0x3030   :  { %4387 = vst [vmem:[%s6670_s17] sm:$0xff] %v4349_v46  ;;  %v4866_v3 = vpop.f32.mrb[56].mxu1 }
0x3031   :  { %v4364_v0 = vadd.f32 %v4866_v3, %v4550_v63  ;;  %v4358_v5 = vpop.f32.mrb[57].mxu1 }
0x3032   :  { %v4359_v62 = vadd.f32 %v4550_v63, %v4358_v5 }
0x3033   :  { %4390 = vst [vmem:[%s6670_s17 + $0x18] sm:$0xff] %v4364_v0 }
0x3034   :  { %4389 = vst [vmem:[%s6670_s17 + $0x10] sm:$0xff] %v4359_v62  ;;  %v4869_v8 = vpop.f32.mrb[58].mxu1 }
0x3035   :  { %v4374_v9 = vadd.f32 %v4869_v8, %v4550_v63  ;;  %v4368_v10 = vpop.f32.mrb[59].mxu1 }
0x3036   :  { %v4369_v19 = vadd.f32 %v4550_v63, %v4368_v10 }
0x3037   :  { %4392 = vst [vmem:[%s6670_s17 + $0x28] sm:$0xff] %v4374_v9 }
0x3038   :  { %4391 = vst [vmem:[%s6670_s17 + $0x20] sm:$0xff] %v4369_v19  ;;  %v4872_v12 = vpop.f32.mrb[60].mxu1 }
0x3039   :  { %v4384_v21 = vadd.f32 %v4872_v12, %v4550_v63  ;;  %v4378_v14 = vpop.f32.mrb[61].mxu1 }
0x303a   :  { %v4379_v34 = vadd.f32 %v4550_v63, %v4378_v14 }
0x303b   :  { %4394 = vst [vmem:[%s6670_s17 + $0x38] sm:$0xff] %v4384_v21 }
0x303c   :  { %4393 = vst [vmem:[%s6670_s17 + $0x30] sm:$0xff] %v4379_v34 }
0x303d   :  { %4399 = vsyncpa [#allocation11], 1 }
0x303e   :  { %4400 = vsyncpa [#allocation13], 1 }
0x303f   :  { %4401 = vsyncpa [#allocation16], 1 }
0x3040   :  { %4402 = vsyncpa [#allocation19], 1 }
0x3041   :  { %4403 = vsyncpa [#allocation22], 1 }
0x3042   :  { %4404 = vsyncpa [#allocation25], 1 }
0x3043   :  { %4405 = vsyncpa [#allocation28], 1 }

</bundles_post_ra>
